<compile_context>
chip_gen: v7x
topology: tpu7x:2x2x1
jax: 0.10.0
libtpu: 0.0.40
codegen_flags: <defaults>
</compile_context>

<pallas_src>
import math

import jax
import jax.numpy as jnp
from jax.experimental import pallas as pl
from jax.experimental.pallas import tpu as pltpu

# ---------------------------------------------------------------------------
# Model hyper-parameters (small, TPU-tile friendly; all powers of two)
# ---------------------------------------------------------------------------
B = 2          # batch
T_ENC = 16     # encoder sequence length
T_DEC = 8      # decoder sequence length
D = 128        # hidden size (lane-dense)
H = 4          # attention heads
DH = D // H    # head dim
FFN = 256      # feed-forward hidden
V = 256        # vocab size (= len(tokenizer) after resize_token_embeddings)
NEG = -1e9
IGNORE_INDEX = -100  # HF CrossEntropyLoss ignore_index

NE = B * T_ENC  # 32 flattened encoder rows
ND = B * T_DEC  # 16 flattened decoder rows

PARAM_ORDER = (
    "embed",
    "enc_ln1_g", "enc_ln1_b", "enc_sa_wqkv", "enc_sa_bqkv", "enc_sa_wo", "enc_sa_bo",
    "enc_ln2_g", "enc_ln2_b", "enc_ffn_w1", "enc_ffn_b1", "enc_ffn_w2", "enc_ffn_b2",
    "enc_lnf_g", "enc_lnf_b",
    "dec_ln1_g", "dec_ln1_b", "dec_sa_wqkv", "dec_sa_bqkv", "dec_sa_wo", "dec_sa_bo",
    "dec_ln2_g", "dec_ln2_b", "dec_ca_wq", "dec_ca_bq", "dec_ca_wkv", "dec_ca_bkv",
    "dec_ca_wo", "dec_ca_bo", "dec_ln3_g", "dec_ln3_b",
    "dec_ffn_w1", "dec_ffn_b1", "dec_ffn_w2", "dec_ffn_b2",
    "dec_lnf_g", "dec_lnf_b",
)


def _log2(n):
    return int(math.log2(n))


# ---------------------------------------------------------------------------
# In-kernel helpers
# ---------------------------------------------------------------------------
def _ln(x, g_ref, b_ref, eps=1e-5):
    mu = jnp.mean(x, axis=-1, keepdims=True)
    var = jnp.mean(jnp.square(x - mu), axis=-1, keepdims=True)
    return (x - mu) * jax.lax.rsqrt(var + eps) * g_ref[...] + b_ref[...]


def _dense(x, w_ref, b_ref):
    # bf16 MXU operands, f32 accumulation, fused bias epilogue.
    return jnp.dot(x.astype(jnp.bfloat16), w_ref[...],
                   preferred_element_type=jnp.float32) + b_ref[...]


def _bd_mask(btq, tq, btk, tk, key_ok, causal):
    """Block-diagonal (same batch) + key-padding (+ causal) additive mask.

    Shapes use flattened rows: query rows are stacked as [head][batch][pos],
    key cols as [batch][pos]. All extents are powers of two, so batch / pos
    indices come from shifts & masks (cheap VPU int ops, no div/mod).
    key_ok: (1, btk) bool.
    Returns (H*btq, btk) f32 additive mask (0 where attendable, NEG otherwise).
    """
    rows = jax.lax.broadcasted_iota(jnp.int32, (H * btq, btk), 0)
    cols = jax.lax.broadcasted_iota(jnp.int32, (H * btq, btk), 1)
    q_batch = (rows & (btq - 1)) >> _log2(tq)
    k_batch = cols >> _log2(tk)
    ok = (q_batch == k_batch) & key_ok
    if causal:
        ok = ok & ((rows & (tq - 1)) >= (cols & (tk - 1)))
    return jnp.where(ok, 0.0, NEG).astype(jnp.float32)


def _mha(q, k, v, add_mask, btq, btk, head_masks):
    """Multi-head attention fused over batch AND heads.

    q: (btq, D) f32, k/v: (btk, D) f32, add_mask: (H*btq, btk) f32.
    Scores: one dot of head-masked queries (H*btq, D) against all keys (btk, D);
    cross-batch / padded / acausal entries are killed by add_mask.
    Context: one dot (H*btq, btk) x (btk, D) then a VPU head-merge
    (lane-mask multiply-add) instead of H serialized dots.
    """
    scale = 1.0 / math.sqrt(DH)
    qm = jnp.concatenate([q * hm for hm in head_masks],
                         axis=0).astype(jnp.bfloat16)          # (H*btq, D)
    kb = k.astype(jnp.bfloat16)                                # (btk, D)
    s = jax.lax.dot_general(qm, kb, (((1,), (1,)), ((), ())),
                            preferred_element_type=jnp.float32) * scale
    s = s + add_mask                                           # (H*btq, btk)
    s = s - jnp.max(s, axis=-1, keepdims=True)
    p = jnp.exp(s)
    p = p / jnp.sum(p, axis=-1, keepdims=True)                 # exact softmax
    ctx_stack = jnp.dot(p.astype(jnp.bfloat16), v.astype(jnp.bfloat16),
                        preferred_element_type=jnp.float32)    # (H*btq, D)
    ctx = ctx_stack[0:btq, :] * head_masks[0]
    for hh in range(1, H):
        ctx = ctx + ctx_stack[hh * btq:(hh + 1) * btq, :] * head_masks[hh]
    return ctx                                                 # (btq, D)


# ---------------------------------------------------------------------------
# The single fused kernel: embeddings + encoder + decoder + LM head + CE loss
# ---------------------------------------------------------------------------
def _seq2seq_loss_kernel(
    # data
    ids_ref, lbl_ref, enc_attn_ref, dec_attn_ref, pos_ref,
    # shared
    embed_ref,
    # encoder layer
    enc_ln1_g_ref, enc_ln1_b_ref, enc_sa_wqkv_ref, enc_sa_bqkv_ref,
    enc_sa_wo_ref, enc_sa_bo_ref, enc_ln2_g_ref, enc_ln2_b_ref,
    enc_ffn_w1_ref, enc_ffn_b1_ref, enc_ffn_w2_ref, enc_ffn_b2_ref,
    enc_lnf_g_ref, enc_lnf_b_ref,
    # decoder layer
    dec_ln1_g_ref, dec_ln1_b_ref, dec_sa_wqkv_ref, dec_sa_bqkv_ref,
    dec_sa_wo_ref, dec_sa_bo_ref, dec_ln2_g_ref, dec_ln2_b_ref,
    dec_ca_wq_ref, dec_ca_bq_ref, dec_ca_wkv_ref, dec_ca_bkv_ref,
    dec_ca_wo_ref, dec_ca_bo_ref, dec_ln3_g_ref, dec_ln3_b_ref,
    dec_ffn_w1_ref, dec_ffn_b1_ref, dec_ffn_w2_ref, dec_ffn_b2_ref,
    dec_lnf_g_ref, dec_lnf_b_ref,
    # output
    loss_ref,
):
    # --- 128-lane masks selecting each head's DH-wide slot (VPU filler) ---
    lane = jax.lax.broadcasted_iota(jnp.int32, (1, D), 1)
    head_masks = [((lane >= h * DH) & (lane < (h + 1) * DH)).astype(jnp.float32)
                  for h in range(H)]

    # --- additive attention masks, built once, block-diagonal over batch ---
    enc_key_ok = enc_attn_ref[...] > 0                          # (1, NE)
    dec_key_ok = dec_attn_ref[...] > 0                          # (1, ND)
    enc_self_mask = _bd_mask(NE, T_ENC, NE, T_ENC, enc_key_ok, causal=False)
    dec_self_mask = _bd_mask(ND, T_DEC, ND, T_DEC, dec_key_ok, causal=True)
    cross_mask = _bd_mask(ND, T_DEC, NE, T_ENC, enc_key_ok, causal=False)

    # --- fused token embedding (encoder + decoder ids in ONE one-hot matmul) ---
    emb_w = embed_ref[...]                                      # (V, D) bf16
    ids = ids_ref[...]                                          # (NE+ND, 1) int32
    cols = jax.lax.broadcasted_iota(jnp.int32, (NE + ND, V), 1)
    onehot = (cols == ids).astype(jnp.bfloat16)
    emb_all = jnp.dot(onehot, emb_w,
                      preferred_element_type=jnp.float32) + pos_ref[...]
    x = emb_all[:NE, :]                                         # encoder input
    y = emb_all[NE:, :]                                         # decoder input

    # ---------------- encoder (1 pre-LN layer) ----------------
    h = _ln(x, enc_ln1_g_ref, enc_ln1_b_ref)
    qkv = _dense(h, enc_sa_wqkv_ref, enc_sa_bqkv_ref)           # fused QKV
    attn = _mha(qkv[:, 0:D], qkv[:, D:2 * D], qkv[:, 2 * D:3 * D],
                enc_self_mask, NE, NE, head_masks)
    x = x + _dense(attn, enc_sa_wo_ref, enc_sa_bo_ref)
    h = _ln(x, enc_ln2_g_ref, enc_ln2_b_ref)
    ff = jnp.maximum(_dense(h, enc_ffn_w1_ref, enc_ffn_b1_ref), 0.0)
    x = x + _dense(ff, enc_ffn_w2_ref, enc_ffn_b2_ref)
    enc_out = _ln(x, enc_lnf_g_ref, enc_lnf_b_ref)              # (NE, D)

    # ---------------- decoder (1 pre-LN layer) ----------------
    h = _ln(y, dec_ln1_g_ref, dec_ln1_b_ref)
    qkv = _dense(h, dec_sa_wqkv_ref, dec_sa_bqkv_ref)           # fused QKV
    attn = _mha(qkv[:, 0:D], qkv[:, D:2 * D], qkv[:, 2 * D:3 * D],
                dec_self_mask, ND, ND, head_masks)
    y = y + _dense(attn, dec_sa_wo_ref, dec_sa_bo_ref)
    h = _ln(y, dec_ln2_g_ref, dec_ln2_b_ref)
    q = _dense(h, dec_ca_wq_ref, dec_ca_bq_ref)                 # (ND, D)
    kv = _dense(enc_out, dec_ca_wkv_ref, dec_ca_bkv_ref)        # fused KV (NE, 2D)
    attn = _mha(q, kv[:, 0:D], kv[:, D:2 * D],
                cross_mask, ND, NE, head_masks)
    y = y + _dense(attn, dec_ca_wo_ref, dec_ca_bo_ref)
    h = _ln(y, dec_ln3_g_ref, dec_ln3_b_ref)
    ff = jnp.maximum(_dense(h, dec_ffn_w1_ref, dec_ffn_b1_ref), 0.0)
    y = y + _dense(ff, dec_ffn_w2_ref, dec_ffn_b2_ref)
    y = _ln(y, dec_lnf_g_ref, dec_lnf_b_ref)                    # (ND, D)

    # ------- tied LM head fused with masked mean cross-entropy -------
    # rhs-transposed contraction: the embedding is never transposed, logits
    # never leave VMEM.
    logits = jax.lax.dot_general(
        y.astype(jnp.bfloat16), emb_w, (((1,), (1,)), ((), ())),
        preferred_element_type=jnp.float32)                     # (ND, V)
    labels = lbl_ref[...]                                       # (ND, 1) int32
    mx = jnp.max(logits, axis=-1, keepdims=True)
    lse = mx + jnp.log(jnp.sum(jnp.exp(logits - mx), axis=-1, keepdims=True))
    vcols = jax.lax.broadcasted_iota(jnp.int32, logits.shape, 1)
    label_logit = jnp.sum(jnp.where(vcols == labels, logits, 0.0),
                          axis=-1, keepdims=True)
    valid = labels != IGNORE_INDEX
    nll = jnp.where(valid, lse - label_logit, 0.0)
    total = jnp.sum(nll)
    count = jnp.sum(valid.astype(jnp.float32))
    # HF semantics: mean over valid labels (NaN iff no valid label at all).
    loss_ref[0, 0] = total / count


# ---------------------------------------------------------------------------
# Wrapper: ONE gridless pallas_call for the whole forward pass
# ---------------------------------------------------------------------------
def forward(params, enc_idxs, enc_attn, dec_idxs, dec_attn, lbl_idxs):
    """Returns the scalar seq2seq LM loss (HF .loss semantics)."""
    b, te = enc_idxs.shape
    _, td = dec_idxs.shape

    # Wrapper-side prep (tiny XLA ops): flatten ids/masks, build positional slab.
    ids_all = jnp.concatenate(
        [enc_idxs.reshape(b * te), dec_idxs.reshape(b * td)]
    ).reshape(b * (te + td), 1).astype(jnp.int32)
    pos = params["pos"].astype(jnp.float32)
    pos_slab = jnp.concatenate(
        [jnp.tile(pos[:te, :], (b, 1)), jnp.tile(pos[:td, :], (b, 1))], axis=0)

    inputs = [
        ids_all,                                            # (NE+ND, 1)
        lbl_idxs.reshape(b * td, 1).astype(jnp.int32),      # (ND, 1)
        enc_attn.reshape(1, b * te).astype(jnp.int32),      # (1, NE)
        dec_attn.reshape(1, b * td).astype(jnp.int32),      # (1, ND)
        pos_slab,                                           # (NE+ND, D)
    ] + [params[name] for name in PARAM_ORDER]

    # No grid: everything (~1 MiB) lives in VMEM for the single invocation;
    # no software pipeline, no double-buffered weights, no per-step overhead.
    loss = pl.pallas_call(
        _seq2seq_loss_kernel,
        out_shape=jax.ShapeDtypeStruct((1, 1), jnp.float32),
        in_specs=[pl.BlockSpec(memory_space=pltpu.MemorySpace.VMEM)
                  for _ in inputs],
        out_specs=pl.BlockSpec(memory_space=pltpu.MemorySpace.SMEM),
    )(*inputs)
    return loss[0, 0]


# ---------------------------------------------------------------------------
# Deterministic parameter init (weights stored in bf16 compute dtype,
# LayerNorm / biases / positions in f32)
# ---------------------------------------------------------------------------
def init_params(key):
    std = 0.02
    keys = iter(jax.random.split(key, 64))
    p = {}

    def normal(shape, dtype=jnp.bfloat16):
        w = std * jax.random.normal(next(keys), shape, dtype=jnp.float32)
        return w.astype(dtype)

    p["embed"] = normal((V, D))
    p["pos"] = normal((max(T_ENC, T_DEC), D), jnp.float32)

    def ln(prefix):
        p[prefix + "_g"] = jnp.ones((1, D), jnp.float32)
        p[prefix + "_b"] = jnp.zeros((1, D), jnp.float32)

    def attn_self(prefix):
        p[prefix + "_wqkv"] = normal((D, 3 * D))
        p[prefix + "_bqkv"] = jnp.zeros((1, 3 * D), jnp.float32)
        p[prefix + "_wo"] = normal((D, D))
        p[prefix + "_bo"] = jnp.zeros((1, D), jnp.float32)

    def attn_cross(prefix):
        p[prefix + "_wq"] = normal((D, D))
        p[prefix + "_bq"] = jnp.zeros((1, D), jnp.float32)
        p[prefix + "_wkv"] = normal((D, 2 * D))
        p[prefix + "_bkv"] = jnp.zeros((1, 2 * D), jnp.float32)
        p[prefix + "_wo"] = normal((D, D))
        p[prefix + "_bo"] = jnp.zeros((1, D), jnp.float32)

    def ffn(prefix):
        p[prefix + "_w1"] = normal((D, FFN))
        p[prefix + "_b1"] = jnp.zeros((1, FFN), jnp.float32)
        p[prefix + "_w2"] = normal((FFN, D))
        p[prefix + "_b2"] = jnp.zeros((1, D), jnp.float32)

    ln("enc_ln1"); attn_self("enc_sa"); ln("enc_ln2"); ffn("enc_ffn"); ln("enc_lnf")
    ln("dec_ln1"); attn_self("dec_sa"); ln("dec_ln2"); attn_cross("dec_ca")
    ln("dec_ln3"); ffn("dec_ffn"); ln("dec_lnf")
    return p


# TODO(synk): `predict()` (beam-search generate + tokenizer.decode) has no clean
# Pallas equivalent and is not implemented; only forward()/loss is kernelized.

# ---------------------------------------------------------------------------
if __name__ == "__main__":
    root = jax.random.PRNGKey(0)
    k_param, k_enc, k_dec, k_lbl = jax.random.split(root, 4)

    params = init_params(k_param)

    # batch.* tensors (HF convention: attn masks are 0/1, label pad = -100)
    enc_idxs = jax.random.randint(k_enc, (B, T_ENC), 0, V, dtype=jnp.int32)
    dec_idxs = jax.random.randint(k_dec, (B, T_DEC), 0, V, dtype=jnp.int32)
    lbl_raw = jax.random.randint(k_lbl, (B, T_DEC), 0, V, dtype=jnp.int32)

    enc_lens = jnp.array([T_ENC, 12], dtype=jnp.int32)
    dec_lens = jnp.array([T_DEC, 6], dtype=jnp.int32)
    enc_attn = (jnp.arange(T_ENC)[None, :] < enc_lens[:, None]).astype(jnp.int32)
    dec_attn = (jnp.arange(T_DEC)[None, :] < dec_lens[:, None]).astype(jnp.int32)
    lbl_idxs = jnp.where(dec_attn > 0, lbl_raw, IGNORE_INDEX).astype(jnp.int32)

    loss_fn = jax.jit(forward)
    loss = loss_fn(params, enc_idxs, enc_attn, dec_idxs, dec_attn, lbl_idxs)
    loss = jax.block_until_ready(loss)

    assert loss.shape == () and jnp.isfinite(loss), loss
    print("KERNEL_OK")
</pallas_src>

<mosaic_0001>
module attributes {stable_mosaic.version = 11 : i64} {
  func.func @_seq2seq_loss_kernel(%arg0: memref<48x1xi32, #tpu.memory_space<vmem>>, %arg1: memref<16x1xi32, #tpu.memory_space<vmem>>, %arg2: memref<1x32xi32, #tpu.memory_space<vmem>>, %arg3: memref<1x16xi32, #tpu.memory_space<vmem>>, %arg4: memref<48x128xf32, #tpu.memory_space<vmem>>, %arg5: memref<256x128xbf16, #tpu.memory_space<vmem>>, %arg6: memref<1x128xf32, #tpu.memory_space<vmem>>, %arg7: memref<1x128xf32, #tpu.memory_space<vmem>>, %arg8: memref<128x384xbf16, #tpu.memory_space<vmem>>, %arg9: memref<1x384xf32, #tpu.memory_space<vmem>>, %arg10: memref<128x128xbf16, #tpu.memory_space<vmem>>, %arg11: memref<1x128xf32, #tpu.memory_space<vmem>>, %arg12: memref<1x128xf32, #tpu.memory_space<vmem>>, %arg13: memref<1x128xf32, #tpu.memory_space<vmem>>, %arg14: memref<128x256xbf16, #tpu.memory_space<vmem>>, %arg15: memref<1x256xf32, #tpu.memory_space<vmem>>, %arg16: memref<256x128xbf16, #tpu.memory_space<vmem>>, %arg17: memref<1x128xf32, #tpu.memory_space<vmem>>, %arg18: memref<1x128xf32, #tpu.memory_space<vmem>>, %arg19: memref<1x128xf32, #tpu.memory_space<vmem>>, %arg20: memref<1x128xf32, #tpu.memory_space<vmem>>, %arg21: memref<1x128xf32, #tpu.memory_space<vmem>>, %arg22: memref<128x384xbf16, #tpu.memory_space<vmem>>, %arg23: memref<1x384xf32, #tpu.memory_space<vmem>>, %arg24: memref<128x128xbf16, #tpu.memory_space<vmem>>, %arg25: memref<1x128xf32, #tpu.memory_space<vmem>>, %arg26: memref<1x128xf32, #tpu.memory_space<vmem>>, %arg27: memref<1x128xf32, #tpu.memory_space<vmem>>, %arg28: memref<128x128xbf16, #tpu.memory_space<vmem>>, %arg29: memref<1x128xf32, #tpu.memory_space<vmem>>, %arg30: memref<128x256xbf16, #tpu.memory_space<vmem>>, %arg31: memref<1x256xf32, #tpu.memory_space<vmem>>, %arg32: memref<128x128xbf16, #tpu.memory_space<vmem>>, %arg33: memref<1x128xf32, #tpu.memory_space<vmem>>, %arg34: memref<1x128xf32, #tpu.memory_space<vmem>>, %arg35: memref<1x128xf32, #tpu.memory_space<vmem>>, %arg36: memref<128x256xbf16, #tpu.memory_space<vmem>>, %arg37: memref<1x256xf32, #tpu.memory_space<vmem>>, %arg38: memref<256x128xbf16, #tpu.memory_space<vmem>>, %arg39: memref<1x128xf32, #tpu.memory_space<vmem>>, %arg40: memref<1x128xf32, #tpu.memory_space<vmem>>, %arg41: memref<1x128xf32, #tpu.memory_space<vmem>>, %arg42: memref<1x1xf32, #tpu.memory_space<smem>>) attributes {dimension_semantics = [], scalar_prefetch = 0 : i64, scratch_operands = 0 : i64, tpu.core_type = #tpu.core_type<tc>} {
    %0 = tpu.iota {dimensions = array<i32: 1>} : vector<1x128xi32>
    %c0_i32 = arith.constant 0 : i32
    %1 = vector.broadcast %c0_i32 : i32 to vector<1x128xi32>
    %2 = arith.cmpi sge, %0, %1 : vector<1x128xi32>
    %c32_i32 = arith.constant 32 : i32
    %3 = vector.broadcast %c32_i32 : i32 to vector<1x128xi32>
    %4 = arith.cmpi slt, %0, %3 : vector<1x128xi32>
    %5 = arith.andi %2, %4 : vector<1x128xi1>
    %6 = arith.extui %5 : vector<1x128xi1> to vector<1x128xi32>
    %7 = arith.sitofp %6 : vector<1x128xi32> to vector<1x128xf32>
    %c32_i32_0 = arith.constant 32 : i32
    %8 = vector.broadcast %c32_i32_0 : i32 to vector<1x128xi32>
    %9 = arith.cmpi sge, %0, %8 : vector<1x128xi32>
    %c64_i32 = arith.constant 64 : i32
    %10 = vector.broadcast %c64_i32 : i32 to vector<1x128xi32>
    %11 = arith.cmpi slt, %0, %10 : vector<1x128xi32>
    %12 = arith.andi %9, %11 : vector<1x128xi1>
    %13 = arith.extui %12 : vector<1x128xi1> to vector<1x128xi32>
    %14 = arith.sitofp %13 : vector<1x128xi32> to vector<1x128xf32>
    %c64_i32_1 = arith.constant 64 : i32
    %15 = vector.broadcast %c64_i32_1 : i32 to vector<1x128xi32>
    %16 = arith.cmpi sge, %0, %15 : vector<1x128xi32>
    %c96_i32 = arith.constant 96 : i32
    %17 = vector.broadcast %c96_i32 : i32 to vector<1x128xi32>
    %18 = arith.cmpi slt, %0, %17 : vector<1x128xi32>
    %19 = arith.andi %16, %18 : vector<1x128xi1>
    %20 = arith.extui %19 : vector<1x128xi1> to vector<1x128xi32>
    %21 = arith.sitofp %20 : vector<1x128xi32> to vector<1x128xf32>
    %c96_i32_2 = arith.constant 96 : i32
    %22 = vector.broadcast %c96_i32_2 : i32 to vector<1x128xi32>
    %23 = arith.cmpi sge, %0, %22 : vector<1x128xi32>
    %c128_i32 = arith.constant 128 : i32
    %24 = vector.broadcast %c128_i32 : i32 to vector<1x128xi32>
    %25 = arith.cmpi slt, %0, %24 : vector<1x128xi32>
    %26 = arith.andi %23, %25 : vector<1x128xi1>
    %27 = arith.extui %26 : vector<1x128xi1> to vector<1x128xi32>
    %28 = arith.sitofp %27 : vector<1x128xi32> to vector<1x128xf32>
    %c0 = arith.constant 0 : index
    %c0_3 = arith.constant 0 : index
    %29 = vector.load %arg2[%c0, %c0_3] : memref<1x32xi32, #tpu.memory_space<vmem>>, vector<1x32xi32>
    %c0_i32_4 = arith.constant 0 : i32
    %30 = vector.broadcast %c0_i32_4 : i32 to vector<1x32xi32>
    %31 = arith.cmpi sgt, %29, %30 : vector<1x32xi32>
    %c0_5 = arith.constant 0 : index
    %c0_6 = arith.constant 0 : index
    %32 = vector.load %arg3[%c0_5, %c0_6] : memref<1x16xi32, #tpu.memory_space<vmem>>, vector<1x16xi32>
    %c0_i32_7 = arith.constant 0 : i32
    %33 = vector.broadcast %c0_i32_7 : i32 to vector<1x16xi32>
    %34 = arith.cmpi sgt, %32, %33 : vector<1x16xi32>
    %35 = tpu.iota {dimensions = array<i32: 0>} : vector<128x32xi32>
    %36 = tpu.iota {dimensions = array<i32: 1>} : vector<128x32xi32>
    %c31_i32 = arith.constant 31 : i32
    %37 = vector.broadcast %c31_i32 : i32 to vector<128x32xi32>
    %38 = arith.andi %35, %37 : vector<128x32xi32>
    %c4_i32 = arith.constant 4 : i32
    %39 = vector.broadcast %c4_i32 : i32 to vector<128x32xi32>
    %40 = arith.shrsi %38, %39 : vector<128x32xi32>
    %c4_i32_8 = arith.constant 4 : i32
    %41 = vector.broadcast %c4_i32_8 : i32 to vector<128x32xi32>
    %42 = arith.shrsi %36, %41 : vector<128x32xi32>
    %43 = arith.cmpi eq, %40, %42 : vector<128x32xi32>
    %44 = vector.broadcast %31 : vector<1x32xi1> to vector<128x32xi1>
    %45 = arith.andi %43, %44 : vector<128x32xi1>
    %cst = arith.constant 0.000000e+00 : f32
    %cst_9 = arith.constant -1.000000e+09 : f32
    %46 = vector.broadcast %cst : f32 to vector<128x32xf32>
    %47 = vector.broadcast %cst_9 : f32 to vector<128x32xf32>
    %48 = arith.select %45, %46, %47 : vector<128x32xi1>, vector<128x32xf32>
    %49 = tpu.iota {dimensions = array<i32: 0>} : vector<64x16xi32>
    %50 = tpu.iota {dimensions = array<i32: 1>} : vector<64x16xi32>
    %c15_i32 = arith.constant 15 : i32
    %51 = vector.broadcast %c15_i32 : i32 to vector<64x16xi32>
    %52 = arith.andi %49, %51 : vector<64x16xi32>
    %c3_i32 = arith.constant 3 : i32
    %53 = vector.broadcast %c3_i32 : i32 to vector<64x16xi32>
    %54 = arith.shrsi %52, %53 : vector<64x16xi32>
    %c3_i32_10 = arith.constant 3 : i32
    %55 = vector.broadcast %c3_i32_10 : i32 to vector<64x16xi32>
    %56 = arith.shrsi %50, %55 : vector<64x16xi32>
    %57 = arith.cmpi eq, %54, %56 : vector<64x16xi32>
    %58 = vector.broadcast %34 : vector<1x16xi1> to vector<64x16xi1>
    %59 = arith.andi %57, %58 : vector<64x16xi1>
    %c7_i32 = arith.constant 7 : i32
    %60 = vector.broadcast %c7_i32 : i32 to vector<64x16xi32>
    %61 = arith.andi %49, %60 : vector<64x16xi32>
    %c7_i32_11 = arith.constant 7 : i32
    %62 = vector.broadcast %c7_i32_11 : i32 to vector<64x16xi32>
    %63 = arith.andi %50, %62 : vector<64x16xi32>
    %64 = arith.cmpi sge, %61, %63 : vector<64x16xi32>
    %65 = arith.andi %59, %64 : vector<64x16xi1>
    %cst_12 = arith.constant 0.000000e+00 : f32
    %cst_13 = arith.constant -1.000000e+09 : f32
    %66 = vector.broadcast %cst_12 : f32 to vector<64x16xf32>
    %67 = vector.broadcast %cst_13 : f32 to vector<64x16xf32>
    %68 = arith.select %65, %66, %67 : vector<64x16xi1>, vector<64x16xf32>
    %69 = tpu.iota {dimensions = array<i32: 0>} : vector<64x32xi32>
    %70 = tpu.iota {dimensions = array<i32: 1>} : vector<64x32xi32>
    %c15_i32_14 = arith.constant 15 : i32
    %71 = vector.broadcast %c15_i32_14 : i32 to vector<64x32xi32>
    %72 = arith.andi %69, %71 : vector<64x32xi32>
    %c3_i32_15 = arith.constant 3 : i32
    %73 = vector.broadcast %c3_i32_15 : i32 to vector<64x32xi32>
    %74 = arith.shrsi %72, %73 : vector<64x32xi32>
    %c4_i32_16 = arith.constant 4 : i32
    %75 = vector.broadcast %c4_i32_16 : i32 to vector<64x32xi32>
    %76 = arith.shrsi %70, %75 : vector<64x32xi32>
    %77 = arith.cmpi eq, %74, %76 : vector<64x32xi32>
    %78 = vector.broadcast %31 : vector<1x32xi1> to vector<64x32xi1>
    %79 = arith.andi %77, %78 : vector<64x32xi1>
    %cst_17 = arith.constant 0.000000e+00 : f32
    %cst_18 = arith.constant -1.000000e+09 : f32
    %80 = vector.broadcast %cst_17 : f32 to vector<64x32xf32>
    %81 = vector.broadcast %cst_18 : f32 to vector<64x32xf32>
    %82 = arith.select %79, %80, %81 : vector<64x32xi1>, vector<64x32xf32>
    %c0_19 = arith.constant 0 : index
    %c0_20 = arith.constant 0 : index
    %83 = vector.load %arg5[%c0_19, %c0_20] : memref<256x128xbf16, #tpu.memory_space<vmem>>, vector<256x128xbf16>
    %c0_21 = arith.constant 0 : index
    %c0_22 = arith.constant 0 : index
    %84 = vector.load %arg0[%c0_21, %c0_22] : memref<48x1xi32, #tpu.memory_space<vmem>>, vector<48x1xi32>
    %85 = tpu.iota {dimensions = array<i32: 1>} : vector<48x256xi32>
    %86 = vector.broadcast %84 : vector<48x1xi32> to vector<48x256xi32>
    %87 = arith.cmpi eq, %85, %86 : vector<48x256xi32>
    %88 = arith.extui %87 : vector<48x256xi1> to vector<48x256xi32>
    %89 = arith.sitofp %88 : vector<48x256xi32> to vector<48x256xf32>
    %90 = arith.truncf %89 : vector<48x256xf32> to vector<48x256xbf16>
    %cst_23 = arith.constant dense<0.000000e+00> : vector<48x128xf32>
    %91 = tpu.matmul %90, %83, %cst_23 {dimension_numbers = #tpu.dot_dimension_numbers<[1], [0], [0], [1], [0, 0, 1, 1], [], []>} : vector<48x256xbf16>, vector<256x128xbf16>, vector<48x128xf32> -> vector<48x128xf32>
    %c0_24 = arith.constant 0 : index
    %c0_25 = arith.constant 0 : index
    %92 = vector.load %arg4[%c0_24, %c0_25] : memref<48x128xf32, #tpu.memory_space<vmem>>, vector<48x128xf32>
    %93 = arith.addf %91, %92 : vector<48x128xf32>
    %94 = vector.extract_strided_slice %93 {offsets = [0, 0], sizes = [32, 128], strides = [1, 1]} : vector<48x128xf32> to vector<32x128xf32>
    %95 = vector.extract_strided_slice %93 {offsets = [32, 0], sizes = [16, 128], strides = [1, 1]} : vector<48x128xf32> to vector<16x128xf32>
    %cst_26 = arith.constant dense<0.000000e+00> : vector<32xf32>
    %96 = vector.multi_reduction <add>, %94, %cst_26 [1] : vector<32x128xf32> to vector<32xf32>
    %97 = vector.shape_cast %96 : vector<32xf32> to vector<32x1xf32>
    %cst_27 = arith.constant 1.280000e+02 : f32
    %98 = vector.broadcast %cst_27 : f32 to vector<32x1xf32>
    %99 = arith.divf %97, %98 : vector<32x1xf32>
    %100 = vector.broadcast %99 : vector<32x1xf32> to vector<32x128xf32>
    %101 = arith.subf %94, %100 : vector<32x128xf32>
    %102 = arith.mulf %101, %101 : vector<32x128xf32>
    %cst_28 = arith.constant dense<0.000000e+00> : vector<32xf32>
    %103 = vector.multi_reduction <add>, %102, %cst_28 [1] : vector<32x128xf32> to vector<32xf32>
    %104 = vector.shape_cast %103 : vector<32xf32> to vector<32x1xf32>
    %cst_29 = arith.constant 1.280000e+02 : f32
    %105 = vector.broadcast %cst_29 : f32 to vector<32x1xf32>
    %106 = arith.divf %104, %105 : vector<32x1xf32>
    %107 = vector.broadcast %99 : vector<32x1xf32> to vector<32x128xf32>
    %108 = arith.subf %94, %107 : vector<32x128xf32>
    %cst_30 = arith.constant 9.99999974E-6 : f32
    %109 = vector.broadcast %cst_30 : f32 to vector<32x1xf32>
    %110 = arith.addf %106, %109 : vector<32x1xf32>
    %111 = math.rsqrt %110 : vector<32x1xf32>
    %112 = vector.broadcast %111 : vector<32x1xf32> to vector<32x128xf32>
    %113 = arith.mulf %108, %112 : vector<32x128xf32>
    %c0_31 = arith.constant 0 : index
    %c0_32 = arith.constant 0 : index
    %114 = vector.load %arg6[%c0_31, %c0_32] : memref<1x128xf32, #tpu.memory_space<vmem>>, vector<1x128xf32>
    %115 = vector.broadcast %114 : vector<1x128xf32> to vector<32x128xf32>
    %116 = arith.mulf %113, %115 : vector<32x128xf32>
    %c0_33 = arith.constant 0 : index
    %c0_34 = arith.constant 0 : index
    %117 = vector.load %arg7[%c0_33, %c0_34] : memref<1x128xf32, #tpu.memory_space<vmem>>, vector<1x128xf32>
    %118 = vector.broadcast %117 : vector<1x128xf32> to vector<32x128xf32>
    %119 = arith.addf %116, %118 : vector<32x128xf32>
    %120 = arith.truncf %119 : vector<32x128xf32> to vector<32x128xbf16>
    %c0_35 = arith.constant 0 : index
    %c0_36 = arith.constant 0 : index
    %121 = vector.load %arg8[%c0_35, %c0_36] : memref<128x384xbf16, #tpu.memory_space<vmem>>, vector<128x384xbf16>
    %cst_37 = arith.constant dense<0.000000e+00> : vector<32x384xf32>
    %122 = tpu.matmul %120, %121, %cst_37 {dimension_numbers = #tpu.dot_dimension_numbers<[1], [0], [0], [1], [0, 0, 1, 1], [], []>} : vector<32x128xbf16>, vector<128x384xbf16>, vector<32x384xf32> -> vector<32x384xf32>
    %c0_38 = arith.constant 0 : index
    %c0_39 = arith.constant 0 : index
    %123 = vector.load %arg9[%c0_38, %c0_39] : memref<1x384xf32, #tpu.memory_space<vmem>>, vector<1x384xf32>
    %124 = vector.broadcast %123 : vector<1x384xf32> to vector<32x384xf32>
    %125 = arith.addf %122, %124 : vector<32x384xf32>
    %126 = vector.extract_strided_slice %125 {offsets = [0, 0], sizes = [32, 128], strides = [1, 1]} : vector<32x384xf32> to vector<32x128xf32>
    %127 = vector.extract_strided_slice %125 {offsets = [0, 128], sizes = [32, 128], strides = [1, 1]} : vector<32x384xf32> to vector<32x128xf32>
    %128 = vector.extract_strided_slice %125 {offsets = [0, 256], sizes = [32, 128], strides = [1, 1]} : vector<32x384xf32> to vector<32x128xf32>
    %129 = vector.broadcast %7 : vector<1x128xf32> to vector<32x128xf32>
    %130 = arith.mulf %126, %129 : vector<32x128xf32>
    %131 = vector.broadcast %14 : vector<1x128xf32> to vector<32x128xf32>
    %132 = arith.mulf %126, %131 : vector<32x128xf32>
    %133 = vector.broadcast %21 : vector<1x128xf32> to vector<32x128xf32>
    %134 = arith.mulf %126, %133 : vector<32x128xf32>
    %135 = vector.broadcast %28 : vector<1x128xf32> to vector<32x128xf32>
    %136 = arith.mulf %126, %135 : vector<32x128xf32>
    %137 = tpu.concatenate %130, %132, %134, %136 in 0 : vector<32x128xf32>, vector<32x128xf32>, vector<32x128xf32>, vector<32x128xf32> -> vector<128x128xf32>
    %138 = arith.truncf %137 : vector<128x128xf32> to vector<128x128xbf16>
    %139 = arith.truncf %127 : vector<32x128xf32> to vector<32x128xbf16>
    %cst_40 = arith.constant dense<0.000000e+00> : vector<128x32xf32>
    %140 = tpu.matmul %138, %139, %cst_40 {dimension_numbers = #tpu.dot_dimension_numbers<[1], [1], [0], [0], [0, 0, 1, 0], [], []>} : vector<128x128xbf16>, vector<32x128xbf16>, vector<128x32xf32> -> vector<128x32xf32>
    %cst_41 = arith.constant 0.176776692 : f32
    %141 = vector.broadcast %cst_41 : f32 to vector<128x32xf32>
    %142 = arith.mulf %140, %141 : vector<128x32xf32>
    %143 = arith.addf %142, %48 : vector<128x32xf32>
    %cst_42 = arith.constant dense<0xFF800000> : vector<128xf32>
    %144 = vector.multi_reduction <maximumf>, %143, %cst_42 [1] : vector<128x32xf32> to vector<128xf32>
    %145 = vector.shape_cast %144 : vector<128xf32> to vector<128x1xf32>
    %146 = vector.broadcast %145 : vector<128x1xf32> to vector<128x32xf32>
    %147 = arith.subf %143, %146 : vector<128x32xf32>
    %148 = math.exp %147 : vector<128x32xf32>
    %cst_43 = arith.constant dense<0.000000e+00> : vector<128xf32>
    %149 = vector.multi_reduction <add>, %148, %cst_43 [1] : vector<128x32xf32> to vector<128xf32>
    %150 = vector.shape_cast %149 : vector<128xf32> to vector<128x1xf32>
    %151 = vector.broadcast %150 : vector<128x1xf32> to vector<128x32xf32>
    %152 = arith.divf %148, %151 : vector<128x32xf32>
    %153 = arith.truncf %152 : vector<128x32xf32> to vector<128x32xbf16>
    %154 = arith.truncf %128 : vector<32x128xf32> to vector<32x128xbf16>
    %cst_44 = arith.constant dense<0.000000e+00> : vector<128x128xf32>
    %155 = tpu.matmul %153, %154, %cst_44 {dimension_numbers = #tpu.dot_dimension_numbers<[1], [0], [0], [1], [0, 0, 1, 1], [], []>} : vector<128x32xbf16>, vector<32x128xbf16>, vector<128x128xf32> -> vector<128x128xf32>
    %156 = vector.extract_strided_slice %155 {offsets = [0, 0], sizes = [32, 128], strides = [1, 1]} : vector<128x128xf32> to vector<32x128xf32>
    %157 = vector.broadcast %7 : vector<1x128xf32> to vector<32x128xf32>
    %158 = arith.mulf %156, %157 : vector<32x128xf32>
    %159 = vector.extract_strided_slice %155 {offsets = [32, 0], sizes = [32, 128], strides = [1, 1]} : vector<128x128xf32> to vector<32x128xf32>
    %160 = vector.broadcast %14 : vector<1x128xf32> to vector<32x128xf32>
    %161 = arith.mulf %159, %160 : vector<32x128xf32>
    %162 = arith.addf %158, %161 : vector<32x128xf32>
    %163 = vector.extract_strided_slice %155 {offsets = [64, 0], sizes = [32, 128], strides = [1, 1]} : vector<128x128xf32> to vector<32x128xf32>
    %164 = vector.broadcast %21 : vector<1x128xf32> to vector<32x128xf32>
    %165 = arith.mulf %163, %164 : vector<32x128xf32>
    %166 = arith.addf %162, %165 : vector<32x128xf32>
    %167 = vector.extract_strided_slice %155 {offsets = [96, 0], sizes = [32, 128], strides = [1, 1]} : vector<128x128xf32> to vector<32x128xf32>
    %168 = vector.broadcast %28 : vector<1x128xf32> to vector<32x128xf32>
    %169 = arith.mulf %167, %168 : vector<32x128xf32>
    %170 = arith.addf %166, %169 : vector<32x128xf32>
    %171 = arith.truncf %170 : vector<32x128xf32> to vector<32x128xbf16>
    %c0_45 = arith.constant 0 : index
    %c0_46 = arith.constant 0 : index
    %172 = vector.load %arg10[%c0_45, %c0_46] : memref<128x128xbf16, #tpu.memory_space<vmem>>, vector<128x128xbf16>
    %cst_47 = arith.constant dense<0.000000e+00> : vector<32x128xf32>
    %173 = tpu.matmul %171, %172, %cst_47 {dimension_numbers = #tpu.dot_dimension_numbers<[1], [0], [0], [1], [0, 0, 1, 1], [], []>} : vector<32x128xbf16>, vector<128x128xbf16>, vector<32x128xf32> -> vector<32x128xf32>
    %c0_48 = arith.constant 0 : index
    %c0_49 = arith.constant 0 : index
    %174 = vector.load %arg11[%c0_48, %c0_49] : memref<1x128xf32, #tpu.memory_space<vmem>>, vector<1x128xf32>
    %175 = vector.broadcast %174 : vector<1x128xf32> to vector<32x128xf32>
    %176 = arith.addf %173, %175 : vector<32x128xf32>
    %177 = arith.addf %94, %176 : vector<32x128xf32>
    %cst_50 = arith.constant dense<0.000000e+00> : vector<32xf32>
    %178 = vector.multi_reduction <add>, %177, %cst_50 [1] : vector<32x128xf32> to vector<32xf32>
    %179 = vector.shape_cast %178 : vector<32xf32> to vector<32x1xf32>
    %cst_51 = arith.constant 1.280000e+02 : f32
    %180 = vector.broadcast %cst_51 : f32 to vector<32x1xf32>
    %181 = arith.divf %179, %180 : vector<32x1xf32>
    %182 = vector.broadcast %181 : vector<32x1xf32> to vector<32x128xf32>
    %183 = arith.subf %177, %182 : vector<32x128xf32>
    %184 = arith.mulf %183, %183 : vector<32x128xf32>
    %cst_52 = arith.constant dense<0.000000e+00> : vector<32xf32>
    %185 = vector.multi_reduction <add>, %184, %cst_52 [1] : vector<32x128xf32> to vector<32xf32>
    %186 = vector.shape_cast %185 : vector<32xf32> to vector<32x1xf32>
    %cst_53 = arith.constant 1.280000e+02 : f32
    %187 = vector.broadcast %cst_53 : f32 to vector<32x1xf32>
    %188 = arith.divf %186, %187 : vector<32x1xf32>
    %189 = vector.broadcast %181 : vector<32x1xf32> to vector<32x128xf32>
    %190 = arith.subf %177, %189 : vector<32x128xf32>
    %cst_54 = arith.constant 9.99999974E-6 : f32
    %191 = vector.broadcast %cst_54 : f32 to vector<32x1xf32>
    %192 = arith.addf %188, %191 : vector<32x1xf32>
    %193 = math.rsqrt %192 : vector<32x1xf32>
    %194 = vector.broadcast %193 : vector<32x1xf32> to vector<32x128xf32>
    %195 = arith.mulf %190, %194 : vector<32x128xf32>
    %c0_55 = arith.constant 0 : index
    %c0_56 = arith.constant 0 : index
    %196 = vector.load %arg12[%c0_55, %c0_56] : memref<1x128xf32, #tpu.memory_space<vmem>>, vector<1x128xf32>
    %197 = vector.broadcast %196 : vector<1x128xf32> to vector<32x128xf32>
    %198 = arith.mulf %195, %197 : vector<32x128xf32>
    %c0_57 = arith.constant 0 : index
    %c0_58 = arith.constant 0 : index
    %199 = vector.load %arg13[%c0_57, %c0_58] : memref<1x128xf32, #tpu.memory_space<vmem>>, vector<1x128xf32>
    %200 = vector.broadcast %199 : vector<1x128xf32> to vector<32x128xf32>
    %201 = arith.addf %198, %200 : vector<32x128xf32>
    %202 = arith.truncf %201 : vector<32x128xf32> to vector<32x128xbf16>
    %c0_59 = arith.constant 0 : index
    %c0_60 = arith.constant 0 : index
    %203 = vector.load %arg14[%c0_59, %c0_60] : memref<128x256xbf16, #tpu.memory_space<vmem>>, vector<128x256xbf16>
    %cst_61 = arith.constant dense<0.000000e+00> : vector<32x256xf32>
    %204 = tpu.matmul %202, %203, %cst_61 {dimension_numbers = #tpu.dot_dimension_numbers<[1], [0], [0], [1], [0, 0, 1, 1], [], []>} : vector<32x128xbf16>, vector<128x256xbf16>, vector<32x256xf32> -> vector<32x256xf32>
    %c0_62 = arith.constant 0 : index
    %c0_63 = arith.constant 0 : index
    %205 = vector.load %arg15[%c0_62, %c0_63] : memref<1x256xf32, #tpu.memory_space<vmem>>, vector<1x256xf32>
    %206 = vector.broadcast %205 : vector<1x256xf32> to vector<32x256xf32>
    %207 = arith.addf %204, %206 : vector<32x256xf32>
    %cst_64 = arith.constant 0.000000e+00 : f32
    %208 = vector.broadcast %cst_64 : f32 to vector<32x256xf32>
    %209 = arith.maximumf %207, %208 : vector<32x256xf32>
    %210 = arith.truncf %209 : vector<32x256xf32> to vector<32x256xbf16>
    %c0_65 = arith.constant 0 : index
    %c0_66 = arith.constant 0 : index
    %211 = vector.load %arg16[%c0_65, %c0_66] : memref<256x128xbf16, #tpu.memory_space<vmem>>, vector<256x128xbf16>
    %cst_67 = arith.constant dense<0.000000e+00> : vector<32x128xf32>
    %212 = tpu.matmul %210, %211, %cst_67 {dimension_numbers = #tpu.dot_dimension_numbers<[1], [0], [0], [1], [0, 0, 1, 1], [], []>} : vector<32x256xbf16>, vector<256x128xbf16>, vector<32x128xf32> -> vector<32x128xf32>
    %c0_68 = arith.constant 0 : index
    %c0_69 = arith.constant 0 : index
    %213 = vector.load %arg17[%c0_68, %c0_69] : memref<1x128xf32, #tpu.memory_space<vmem>>, vector<1x128xf32>
    %214 = vector.broadcast %213 : vector<1x128xf32> to vector<32x128xf32>
    %215 = arith.addf %212, %214 : vector<32x128xf32>
    %216 = arith.addf %177, %215 : vector<32x128xf32>
    %cst_70 = arith.constant dense<0.000000e+00> : vector<32xf32>
    %217 = vector.multi_reduction <add>, %216, %cst_70 [1] : vector<32x128xf32> to vector<32xf32>
    %218 = vector.shape_cast %217 : vector<32xf32> to vector<32x1xf32>
    %cst_71 = arith.constant 1.280000e+02 : f32
    %219 = vector.broadcast %cst_71 : f32 to vector<32x1xf32>
    %220 = arith.divf %218, %219 : vector<32x1xf32>
    %221 = vector.broadcast %220 : vector<32x1xf32> to vector<32x128xf32>
    %222 = arith.subf %216, %221 : vector<32x128xf32>
    %223 = arith.mulf %222, %222 : vector<32x128xf32>
    %cst_72 = arith.constant dense<0.000000e+00> : vector<32xf32>
    %224 = vector.multi_reduction <add>, %223, %cst_72 [1] : vector<32x128xf32> to vector<32xf32>
    %225 = vector.shape_cast %224 : vector<32xf32> to vector<32x1xf32>
    %cst_73 = arith.constant 1.280000e+02 : f32
    %226 = vector.broadcast %cst_73 : f32 to vector<32x1xf32>
    %227 = arith.divf %225, %226 : vector<32x1xf32>
    %228 = vector.broadcast %220 : vector<32x1xf32> to vector<32x128xf32>
    %229 = arith.subf %216, %228 : vector<32x128xf32>
    %cst_74 = arith.constant 9.99999974E-6 : f32
    %230 = vector.broadcast %cst_74 : f32 to vector<32x1xf32>
    %231 = arith.addf %227, %230 : vector<32x1xf32>
    %232 = math.rsqrt %231 : vector<32x1xf32>
    %233 = vector.broadcast %232 : vector<32x1xf32> to vector<32x128xf32>
    %234 = arith.mulf %229, %233 : vector<32x128xf32>
    %c0_75 = arith.constant 0 : index
    %c0_76 = arith.constant 0 : index
    %235 = vector.load %arg18[%c0_75, %c0_76] : memref<1x128xf32, #tpu.memory_space<vmem>>, vector<1x128xf32>
    %236 = vector.broadcast %235 : vector<1x128xf32> to vector<32x128xf32>
    %237 = arith.mulf %234, %236 : vector<32x128xf32>
    %c0_77 = arith.constant 0 : index
    %c0_78 = arith.constant 0 : index
    %238 = vector.load %arg19[%c0_77, %c0_78] : memref<1x128xf32, #tpu.memory_space<vmem>>, vector<1x128xf32>
    %239 = vector.broadcast %238 : vector<1x128xf32> to vector<32x128xf32>
    %240 = arith.addf %237, %239 : vector<32x128xf32>
    %cst_79 = arith.constant dense<0.000000e+00> : vector<16xf32>
    %241 = vector.multi_reduction <add>, %95, %cst_79 [1] : vector<16x128xf32> to vector<16xf32>
    %242 = vector.shape_cast %241 : vector<16xf32> to vector<16x1xf32>
    %cst_80 = arith.constant 1.280000e+02 : f32
    %243 = vector.broadcast %cst_80 : f32 to vector<16x1xf32>
    %244 = arith.divf %242, %243 : vector<16x1xf32>
    %245 = vector.broadcast %244 : vector<16x1xf32> to vector<16x128xf32>
    %246 = arith.subf %95, %245 : vector<16x128xf32>
    %247 = arith.mulf %246, %246 : vector<16x128xf32>
    %cst_81 = arith.constant dense<0.000000e+00> : vector<16xf32>
    %248 = vector.multi_reduction <add>, %247, %cst_81 [1] : vector<16x128xf32> to vector<16xf32>
    %249 = vector.shape_cast %248 : vector<16xf32> to vector<16x1xf32>
    %cst_82 = arith.constant 1.280000e+02 : f32
    %250 = vector.broadcast %cst_82 : f32 to vector<16x1xf32>
    %251 = arith.divf %249, %250 : vector<16x1xf32>
    %252 = vector.broadcast %244 : vector<16x1xf32> to vector<16x128xf32>
    %253 = arith.subf %95, %252 : vector<16x128xf32>
    %cst_83 = arith.constant 9.99999974E-6 : f32
    %254 = vector.broadcast %cst_83 : f32 to vector<16x1xf32>
    %255 = arith.addf %251, %254 : vector<16x1xf32>
    %256 = math.rsqrt %255 : vector<16x1xf32>
    %257 = vector.broadcast %256 : vector<16x1xf32> to vector<16x128xf32>
    %258 = arith.mulf %253, %257 : vector<16x128xf32>
    %c0_84 = arith.constant 0 : index
    %c0_85 = arith.constant 0 : index
    %259 = vector.load %arg20[%c0_84, %c0_85] : memref<1x128xf32, #tpu.memory_space<vmem>>, vector<1x128xf32>
    %260 = vector.broadcast %259 : vector<1x128xf32> to vector<16x128xf32>
    %261 = arith.mulf %258, %260 : vector<16x128xf32>
    %c0_86 = arith.constant 0 : index
    %c0_87 = arith.constant 0 : index
    %262 = vector.load %arg21[%c0_86, %c0_87] : memref<1x128xf32, #tpu.memory_space<vmem>>, vector<1x128xf32>
    %263 = vector.broadcast %262 : vector<1x128xf32> to vector<16x128xf32>
    %264 = arith.addf %261, %263 : vector<16x128xf32>
    %265 = arith.truncf %264 : vector<16x128xf32> to vector<16x128xbf16>
    %c0_88 = arith.constant 0 : index
    %c0_89 = arith.constant 0 : index
    %266 = vector.load %arg22[%c0_88, %c0_89] : memref<128x384xbf16, #tpu.memory_space<vmem>>, vector<128x384xbf16>
    %cst_90 = arith.constant dense<0.000000e+00> : vector<16x384xf32>
    %267 = tpu.matmul %265, %266, %cst_90 {dimension_numbers = #tpu.dot_dimension_numbers<[1], [0], [0], [1], [0, 0, 1, 1], [], []>} : vector<16x128xbf16>, vector<128x384xbf16>, vector<16x384xf32> -> vector<16x384xf32>
    %c0_91 = arith.constant 0 : index
    %c0_92 = arith.constant 0 : index
    %268 = vector.load %arg23[%c0_91, %c0_92] : memref<1x384xf32, #tpu.memory_space<vmem>>, vector<1x384xf32>
    %269 = vector.broadcast %268 : vector<1x384xf32> to vector<16x384xf32>
    %270 = arith.addf %267, %269 : vector<16x384xf32>
    %271 = vector.extract_strided_slice %270 {offsets = [0, 0], sizes = [16, 128], strides = [1, 1]} : vector<16x384xf32> to vector<16x128xf32>
    %272 = vector.extract_strided_slice %270 {offsets = [0, 128], sizes = [16, 128], strides = [1, 1]} : vector<16x384xf32> to vector<16x128xf32>
    %273 = vector.extract_strided_slice %270 {offsets = [0, 256], sizes = [16, 128], strides = [1, 1]} : vector<16x384xf32> to vector<16x128xf32>
    %274 = vector.broadcast %7 : vector<1x128xf32> to vector<16x128xf32>
    %275 = arith.mulf %271, %274 : vector<16x128xf32>
    %276 = vector.broadcast %14 : vector<1x128xf32> to vector<16x128xf32>
    %277 = arith.mulf %271, %276 : vector<16x128xf32>
    %278 = vector.broadcast %21 : vector<1x128xf32> to vector<16x128xf32>
    %279 = arith.mulf %271, %278 : vector<16x128xf32>
    %280 = vector.broadcast %28 : vector<1x128xf32> to vector<16x128xf32>
    %281 = arith.mulf %271, %280 : vector<16x128xf32>
    %282 = tpu.concatenate %275, %277, %279, %281 in 0 : vector<16x128xf32>, vector<16x128xf32>, vector<16x128xf32>, vector<16x128xf32> -> vector<64x128xf32>
    %283 = arith.truncf %282 : vector<64x128xf32> to vector<64x128xbf16>
    %284 = arith.truncf %272 : vector<16x128xf32> to vector<16x128xbf16>
    %cst_93 = arith.constant dense<0.000000e+00> : vector<64x16xf32>
    %285 = tpu.matmul %283, %284, %cst_93 {dimension_numbers = #tpu.dot_dimension_numbers<[1], [1], [0], [0], [0, 0, 1, 0], [], []>} : vector<64x128xbf16>, vector<16x128xbf16>, vector<64x16xf32> -> vector<64x16xf32>
    %cst_94 = arith.constant 0.176776692 : f32
    %286 = vector.broadcast %cst_94 : f32 to vector<64x16xf32>
    %287 = arith.mulf %285, %286 : vector<64x16xf32>
    %288 = arith.addf %287, %68 : vector<64x16xf32>
    %cst_95 = arith.constant dense<0xFF800000> : vector<64xf32>
    %289 = vector.multi_reduction <maximumf>, %288, %cst_95 [1] : vector<64x16xf32> to vector<64xf32>
    %290 = vector.shape_cast %289 : vector<64xf32> to vector<64x1xf32>
    %291 = vector.broadcast %290 : vector<64x1xf32> to vector<64x16xf32>
    %292 = arith.subf %288, %291 : vector<64x16xf32>
    %293 = math.exp %292 : vector<64x16xf32>
    %cst_96 = arith.constant dense<0.000000e+00> : vector<64xf32>
    %294 = vector.multi_reduction <add>, %293, %cst_96 [1] : vector<64x16xf32> to vector<64xf32>
    %295 = vector.shape_cast %294 : vector<64xf32> to vector<64x1xf32>
    %296 = vector.broadcast %295 : vector<64x1xf32> to vector<64x16xf32>
    %297 = arith.divf %293, %296 : vector<64x16xf32>
    %298 = arith.truncf %297 : vector<64x16xf32> to vector<64x16xbf16>
    %299 = arith.truncf %273 : vector<16x128xf32> to vector<16x128xbf16>
    %cst_97 = arith.constant dense<0.000000e+00> : vector<64x128xf32>
    %300 = tpu.matmul %298, %299, %cst_97 {dimension_numbers = #tpu.dot_dimension_numbers<[1], [0], [0], [1], [0, 0, 1, 1], [], []>} : vector<64x16xbf16>, vector<16x128xbf16>, vector<64x128xf32> -> vector<64x128xf32>
    %301 = vector.extract_strided_slice %300 {offsets = [0, 0], sizes = [16, 128], strides = [1, 1]} : vector<64x128xf32> to vector<16x128xf32>
    %302 = vector.broadcast %7 : vector<1x128xf32> to vector<16x128xf32>
    %303 = arith.mulf %301, %302 : vector<16x128xf32>
    %304 = vector.extract_strided_slice %300 {offsets = [16, 0], sizes = [16, 128], strides = [1, 1]} : vector<64x128xf32> to vector<16x128xf32>
    %305 = vector.broadcast %14 : vector<1x128xf32> to vector<16x128xf32>
    %306 = arith.mulf %304, %305 : vector<16x128xf32>
    %307 = arith.addf %303, %306 : vector<16x128xf32>
    %308 = vector.extract_strided_slice %300 {offsets = [32, 0], sizes = [16, 128], strides = [1, 1]} : vector<64x128xf32> to vector<16x128xf32>
    %309 = vector.broadcast %21 : vector<1x128xf32> to vector<16x128xf32>
    %310 = arith.mulf %308, %309 : vector<16x128xf32>
    %311 = arith.addf %307, %310 : vector<16x128xf32>
    %312 = vector.extract_strided_slice %300 {offsets = [48, 0], sizes = [16, 128], strides = [1, 1]} : vector<64x128xf32> to vector<16x128xf32>
    %313 = vector.broadcast %28 : vector<1x128xf32> to vector<16x128xf32>
    %314 = arith.mulf %312, %313 : vector<16x128xf32>
    %315 = arith.addf %311, %314 : vector<16x128xf32>
    %316 = arith.truncf %315 : vector<16x128xf32> to vector<16x128xbf16>
    %c0_98 = arith.constant 0 : index
    %c0_99 = arith.constant 0 : index
    %317 = vector.load %arg24[%c0_98, %c0_99] : memref<128x128xbf16, #tpu.memory_space<vmem>>, vector<128x128xbf16>
    %cst_100 = arith.constant dense<0.000000e+00> : vector<16x128xf32>
    %318 = tpu.matmul %316, %317, %cst_100 {dimension_numbers = #tpu.dot_dimension_numbers<[1], [0], [0], [1], [0, 0, 1, 1], [], []>} : vector<16x128xbf16>, vector<128x128xbf16>, vector<16x128xf32> -> vector<16x128xf32>
    %c0_101 = arith.constant 0 : index
    %c0_102 = arith.constant 0 : index
    %319 = vector.load %arg25[%c0_101, %c0_102] : memref<1x128xf32, #tpu.memory_space<vmem>>, vector<1x128xf32>
    %320 = vector.broadcast %319 : vector<1x128xf32> to vector<16x128xf32>
    %321 = arith.addf %318, %320 : vector<16x128xf32>
    %322 = arith.addf %95, %321 : vector<16x128xf32>
    %cst_103 = arith.constant dense<0.000000e+00> : vector<16xf32>
    %323 = vector.multi_reduction <add>, %322, %cst_103 [1] : vector<16x128xf32> to vector<16xf32>
    %324 = vector.shape_cast %323 : vector<16xf32> to vector<16x1xf32>
    %cst_104 = arith.constant 1.280000e+02 : f32
    %325 = vector.broadcast %cst_104 : f32 to vector<16x1xf32>
    %326 = arith.divf %324, %325 : vector<16x1xf32>
    %327 = vector.broadcast %326 : vector<16x1xf32> to vector<16x128xf32>
    %328 = arith.subf %322, %327 : vector<16x128xf32>
    %329 = arith.mulf %328, %328 : vector<16x128xf32>
    %cst_105 = arith.constant dense<0.000000e+00> : vector<16xf32>
    %330 = vector.multi_reduction <add>, %329, %cst_105 [1] : vector<16x128xf32> to vector<16xf32>
    %331 = vector.shape_cast %330 : vector<16xf32> to vector<16x1xf32>
    %cst_106 = arith.constant 1.280000e+02 : f32
    %332 = vector.broadcast %cst_106 : f32 to vector<16x1xf32>
    %333 = arith.divf %331, %332 : vector<16x1xf32>
    %334 = vector.broadcast %326 : vector<16x1xf32> to vector<16x128xf32>
    %335 = arith.subf %322, %334 : vector<16x128xf32>
    %cst_107 = arith.constant 9.99999974E-6 : f32
    %336 = vector.broadcast %cst_107 : f32 to vector<16x1xf32>
    %337 = arith.addf %333, %336 : vector<16x1xf32>
    %338 = math.rsqrt %337 : vector<16x1xf32>
    %339 = vector.broadcast %338 : vector<16x1xf32> to vector<16x128xf32>
    %340 = arith.mulf %335, %339 : vector<16x128xf32>
    %c0_108 = arith.constant 0 : index
    %c0_109 = arith.constant 0 : index
    %341 = vector.load %arg26[%c0_108, %c0_109] : memref<1x128xf32, #tpu.memory_space<vmem>>, vector<1x128xf32>
    %342 = vector.broadcast %341 : vector<1x128xf32> to vector<16x128xf32>
    %343 = arith.mulf %340, %342 : vector<16x128xf32>
    %c0_110 = arith.constant 0 : index
    %c0_111 = arith.constant 0 : index
    %344 = vector.load %arg27[%c0_110, %c0_111] : memref<1x128xf32, #tpu.memory_space<vmem>>, vector<1x128xf32>
    %345 = vector.broadcast %344 : vector<1x128xf32> to vector<16x128xf32>
    %346 = arith.addf %343, %345 : vector<16x128xf32>
    %347 = arith.truncf %346 : vector<16x128xf32> to vector<16x128xbf16>
    %c0_112 = arith.constant 0 : index
    %c0_113 = arith.constant 0 : index
    %348 = vector.load %arg28[%c0_112, %c0_113] : memref<128x128xbf16, #tpu.memory_space<vmem>>, vector<128x128xbf16>
    %cst_114 = arith.constant dense<0.000000e+00> : vector<16x128xf32>
    %349 = tpu.matmul %347, %348, %cst_114 {dimension_numbers = #tpu.dot_dimension_numbers<[1], [0], [0], [1], [0, 0, 1, 1], [], []>} : vector<16x128xbf16>, vector<128x128xbf16>, vector<16x128xf32> -> vector<16x128xf32>
    %c0_115 = arith.constant 0 : index
    %c0_116 = arith.constant 0 : index
    %350 = vector.load %arg29[%c0_115, %c0_116] : memref<1x128xf32, #tpu.memory_space<vmem>>, vector<1x128xf32>
    %351 = vector.broadcast %350 : vector<1x128xf32> to vector<16x128xf32>
    %352 = arith.addf %349, %351 : vector<16x128xf32>
    %353 = arith.truncf %240 : vector<32x128xf32> to vector<32x128xbf16>
    %c0_117 = arith.constant 0 : index
    %c0_118 = arith.constant 0 : index
    %354 = vector.load %arg30[%c0_117, %c0_118] : memref<128x256xbf16, #tpu.memory_space<vmem>>, vector<128x256xbf16>
    %cst_119 = arith.constant dense<0.000000e+00> : vector<32x256xf32>
    %355 = tpu.matmul %353, %354, %cst_119 {dimension_numbers = #tpu.dot_dimension_numbers<[1], [0], [0], [1], [0, 0, 1, 1], [], []>} : vector<32x128xbf16>, vector<128x256xbf16>, vector<32x256xf32> -> vector<32x256xf32>
    %c0_120 = arith.constant 0 : index
    %c0_121 = arith.constant 0 : index
    %356 = vector.load %arg31[%c0_120, %c0_121] : memref<1x256xf32, #tpu.memory_space<vmem>>, vector<1x256xf32>
    %357 = vector.broadcast %356 : vector<1x256xf32> to vector<32x256xf32>
    %358 = arith.addf %355, %357 : vector<32x256xf32>
    %359 = vector.extract_strided_slice %358 {offsets = [0, 0], sizes = [32, 128], strides = [1, 1]} : vector<32x256xf32> to vector<32x128xf32>
    %360 = vector.extract_strided_slice %358 {offsets = [0, 128], sizes = [32, 128], strides = [1, 1]} : vector<32x256xf32> to vector<32x128xf32>
    %361 = vector.broadcast %7 : vector<1x128xf32> to vector<16x128xf32>
    %362 = arith.mulf %352, %361 : vector<16x128xf32>
    %363 = vector.broadcast %14 : vector<1x128xf32> to vector<16x128xf32>
    %364 = arith.mulf %352, %363 : vector<16x128xf32>
    %365 = vector.broadcast %21 : vector<1x128xf32> to vector<16x128xf32>
    %366 = arith.mulf %352, %365 : vector<16x128xf32>
    %367 = vector.broadcast %28 : vector<1x128xf32> to vector<16x128xf32>
    %368 = arith.mulf %352, %367 : vector<16x128xf32>
    %369 = tpu.concatenate %362, %364, %366, %368 in 0 : vector<16x128xf32>, vector<16x128xf32>, vector<16x128xf32>, vector<16x128xf32> -> vector<64x128xf32>
    %370 = arith.truncf %369 : vector<64x128xf32> to vector<64x128xbf16>
    %371 = arith.truncf %359 : vector<32x128xf32> to vector<32x128xbf16>
    %cst_122 = arith.constant dense<0.000000e+00> : vector<64x32xf32>
    %372 = tpu.matmul %370, %371, %cst_122 {dimension_numbers = #tpu.dot_dimension_numbers<[1], [1], [0], [0], [0, 0, 1, 0], [], []>} : vector<64x128xbf16>, vector<32x128xbf16>, vector<64x32xf32> -> vector<64x32xf32>
    %cst_123 = arith.constant 0.176776692 : f32
    %373 = vector.broadcast %cst_123 : f32 to vector<64x32xf32>
    %374 = arith.mulf %372, %373 : vector<64x32xf32>
    %375 = arith.addf %374, %82 : vector<64x32xf32>
    %cst_124 = arith.constant dense<0xFF800000> : vector<64xf32>
    %376 = vector.multi_reduction <maximumf>, %375, %cst_124 [1] : vector<64x32xf32> to vector<64xf32>
    %377 = vector.shape_cast %376 : vector<64xf32> to vector<64x1xf32>
    %378 = vector.broadcast %377 : vector<64x1xf32> to vector<64x32xf32>
    %379 = arith.subf %375, %378 : vector<64x32xf32>
    %380 = math.exp %379 : vector<64x32xf32>
    %cst_125 = arith.constant dense<0.000000e+00> : vector<64xf32>
    %381 = vector.multi_reduction <add>, %380, %cst_125 [1] : vector<64x32xf32> to vector<64xf32>
    %382 = vector.shape_cast %381 : vector<64xf32> to vector<64x1xf32>
    %383 = vector.broadcast %382 : vector<64x1xf32> to vector<64x32xf32>
    %384 = arith.divf %380, %383 : vector<64x32xf32>
    %385 = arith.truncf %384 : vector<64x32xf32> to vector<64x32xbf16>
    %386 = arith.truncf %360 : vector<32x128xf32> to vector<32x128xbf16>
    %cst_126 = arith.constant dense<0.000000e+00> : vector<64x128xf32>
    %387 = tpu.matmul %385, %386, %cst_126 {dimension_numbers = #tpu.dot_dimension_numbers<[1], [0], [0], [1], [0, 0, 1, 1], [], []>} : vector<64x32xbf16>, vector<32x128xbf16>, vector<64x128xf32> -> vector<64x128xf32>
    %388 = vector.extract_strided_slice %387 {offsets = [0, 0], sizes = [16, 128], strides = [1, 1]} : vector<64x128xf32> to vector<16x128xf32>
    %389 = vector.broadcast %7 : vector<1x128xf32> to vector<16x128xf32>
    %390 = arith.mulf %388, %389 : vector<16x128xf32>
    %391 = vector.extract_strided_slice %387 {offsets = [16, 0], sizes = [16, 128], strides = [1, 1]} : vector<64x128xf32> to vector<16x128xf32>
    %392 = vector.broadcast %14 : vector<1x128xf32> to vector<16x128xf32>
    %393 = arith.mulf %391, %392 : vector<16x128xf32>
    %394 = arith.addf %390, %393 : vector<16x128xf32>
    %395 = vector.extract_strided_slice %387 {offsets = [32, 0], sizes = [16, 128], strides = [1, 1]} : vector<64x128xf32> to vector<16x128xf32>
    %396 = vector.broadcast %21 : vector<1x128xf32> to vector<16x128xf32>
    %397 = arith.mulf %395, %396 : vector<16x128xf32>
    %398 = arith.addf %394, %397 : vector<16x128xf32>
    %399 = vector.extract_strided_slice %387 {offsets = [48, 0], sizes = [16, 128], strides = [1, 1]} : vector<64x128xf32> to vector<16x128xf32>
    %400 = vector.broadcast %28 : vector<1x128xf32> to vector<16x128xf32>
    %401 = arith.mulf %399, %400 : vector<16x128xf32>
    %402 = arith.addf %398, %401 : vector<16x128xf32>
    %403 = arith.truncf %402 : vector<16x128xf32> to vector<16x128xbf16>
    %c0_127 = arith.constant 0 : index
    %c0_128 = arith.constant 0 : index
    %404 = vector.load %arg32[%c0_127, %c0_128] : memref<128x128xbf16, #tpu.memory_space<vmem>>, vector<128x128xbf16>
    %cst_129 = arith.constant dense<0.000000e+00> : vector<16x128xf32>
    %405 = tpu.matmul %403, %404, %cst_129 {dimension_numbers = #tpu.dot_dimension_numbers<[1], [0], [0], [1], [0, 0, 1, 1], [], []>} : vector<16x128xbf16>, vector<128x128xbf16>, vector<16x128xf32> -> vector<16x128xf32>
    %c0_130 = arith.constant 0 : index
    %c0_131 = arith.constant 0 : index
    %406 = vector.load %arg33[%c0_130, %c0_131] : memref<1x128xf32, #tpu.memory_space<vmem>>, vector<1x128xf32>
    %407 = vector.broadcast %406 : vector<1x128xf32> to vector<16x128xf32>
    %408 = arith.addf %405, %407 : vector<16x128xf32>
    %409 = arith.addf %322, %408 : vector<16x128xf32>
    %cst_132 = arith.constant dense<0.000000e+00> : vector<16xf32>
    %410 = vector.multi_reduction <add>, %409, %cst_132 [1] : vector<16x128xf32> to vector<16xf32>
    %411 = vector.shape_cast %410 : vector<16xf32> to vector<16x1xf32>
    %cst_133 = arith.constant 1.280000e+02 : f32
    %412 = vector.broadcast %cst_133 : f32 to vector<16x1xf32>
    %413 = arith.divf %411, %412 : vector<16x1xf32>
    %414 = vector.broadcast %413 : vector<16x1xf32> to vector<16x128xf32>
    %415 = arith.subf %409, %414 : vector<16x128xf32>
    %416 = arith.mulf %415, %415 : vector<16x128xf32>
    %cst_134 = arith.constant dense<0.000000e+00> : vector<16xf32>
    %417 = vector.multi_reduction <add>, %416, %cst_134 [1] : vector<16x128xf32> to vector<16xf32>
    %418 = vector.shape_cast %417 : vector<16xf32> to vector<16x1xf32>
    %cst_135 = arith.constant 1.280000e+02 : f32
    %419 = vector.broadcast %cst_135 : f32 to vector<16x1xf32>
    %420 = arith.divf %418, %419 : vector<16x1xf32>
    %421 = vector.broadcast %413 : vector<16x1xf32> to vector<16x128xf32>
    %422 = arith.subf %409, %421 : vector<16x128xf32>
    %cst_136 = arith.constant 9.99999974E-6 : f32
    %423 = vector.broadcast %cst_136 : f32 to vector<16x1xf32>
    %424 = arith.addf %420, %423 : vector<16x1xf32>
    %425 = math.rsqrt %424 : vector<16x1xf32>
    %426 = vector.broadcast %425 : vector<16x1xf32> to vector<16x128xf32>
    %427 = arith.mulf %422, %426 : vector<16x128xf32>
    %c0_137 = arith.constant 0 : index
    %c0_138 = arith.constant 0 : index
    %428 = vector.load %arg34[%c0_137, %c0_138] : memref<1x128xf32, #tpu.memory_space<vmem>>, vector<1x128xf32>
    %429 = vector.broadcast %428 : vector<1x128xf32> to vector<16x128xf32>
    %430 = arith.mulf %427, %429 : vector<16x128xf32>
    %c0_139 = arith.constant 0 : index
    %c0_140 = arith.constant 0 : index
    %431 = vector.load %arg35[%c0_139, %c0_140] : memref<1x128xf32, #tpu.memory_space<vmem>>, vector<1x128xf32>
    %432 = vector.broadcast %431 : vector<1x128xf32> to vector<16x128xf32>
    %433 = arith.addf %430, %432 : vector<16x128xf32>
    %434 = arith.truncf %433 : vector<16x128xf32> to vector<16x128xbf16>
    %c0_141 = arith.constant 0 : index
    %c0_142 = arith.constant 0 : index
    %435 = vector.load %arg36[%c0_141, %c0_142] : memref<128x256xbf16, #tpu.memory_space<vmem>>, vector<128x256xbf16>
    %cst_143 = arith.constant dense<0.000000e+00> : vector<16x256xf32>
    %436 = tpu.matmul %434, %435, %cst_143 {dimension_numbers = #tpu.dot_dimension_numbers<[1], [0], [0], [1], [0, 0, 1, 1], [], []>} : vector<16x128xbf16>, vector<128x256xbf16>, vector<16x256xf32> -> vector<16x256xf32>
    %c0_144 = arith.constant 0 : index
    %c0_145 = arith.constant 0 : index
    %437 = vector.load %arg37[%c0_144, %c0_145] : memref<1x256xf32, #tpu.memory_space<vmem>>, vector<1x256xf32>
    %438 = vector.broadcast %437 : vector<1x256xf32> to vector<16x256xf32>
    %439 = arith.addf %436, %438 : vector<16x256xf32>
    %cst_146 = arith.constant 0.000000e+00 : f32
    %440 = vector.broadcast %cst_146 : f32 to vector<16x256xf32>
    %441 = arith.maximumf %439, %440 : vector<16x256xf32>
    %442 = arith.truncf %441 : vector<16x256xf32> to vector<16x256xbf16>
    %c0_147 = arith.constant 0 : index
    %c0_148 = arith.constant 0 : index
    %443 = vector.load %arg38[%c0_147, %c0_148] : memref<256x128xbf16, #tpu.memory_space<vmem>>, vector<256x128xbf16>
    %cst_149 = arith.constant dense<0.000000e+00> : vector<16x128xf32>
    %444 = tpu.matmul %442, %443, %cst_149 {dimension_numbers = #tpu.dot_dimension_numbers<[1], [0], [0], [1], [0, 0, 1, 1], [], []>} : vector<16x256xbf16>, vector<256x128xbf16>, vector<16x128xf32> -> vector<16x128xf32>
    %c0_150 = arith.constant 0 : index
    %c0_151 = arith.constant 0 : index
    %445 = vector.load %arg39[%c0_150, %c0_151] : memref<1x128xf32, #tpu.memory_space<vmem>>, vector<1x128xf32>
    %446 = vector.broadcast %445 : vector<1x128xf32> to vector<16x128xf32>
    %447 = arith.addf %444, %446 : vector<16x128xf32>
    %448 = arith.addf %409, %447 : vector<16x128xf32>
    %cst_152 = arith.constant dense<0.000000e+00> : vector<16xf32>
    %449 = vector.multi_reduction <add>, %448, %cst_152 [1] : vector<16x128xf32> to vector<16xf32>
    %450 = vector.shape_cast %449 : vector<16xf32> to vector<16x1xf32>
    %cst_153 = arith.constant 1.280000e+02 : f32
    %451 = vector.broadcast %cst_153 : f32 to vector<16x1xf32>
    %452 = arith.divf %450, %451 : vector<16x1xf32>
    %453 = vector.broadcast %452 : vector<16x1xf32> to vector<16x128xf32>
    %454 = arith.subf %448, %453 : vector<16x128xf32>
    %455 = arith.mulf %454, %454 : vector<16x128xf32>
    %cst_154 = arith.constant dense<0.000000e+00> : vector<16xf32>
    %456 = vector.multi_reduction <add>, %455, %cst_154 [1] : vector<16x128xf32> to vector<16xf32>
    %457 = vector.shape_cast %456 : vector<16xf32> to vector<16x1xf32>
    %cst_155 = arith.constant 1.280000e+02 : f32
    %458 = vector.broadcast %cst_155 : f32 to vector<16x1xf32>
    %459 = arith.divf %457, %458 : vector<16x1xf32>
    %460 = vector.broadcast %452 : vector<16x1xf32> to vector<16x128xf32>
    %461 = arith.subf %448, %460 : vector<16x128xf32>
    %cst_156 = arith.constant 9.99999974E-6 : f32
    %462 = vector.broadcast %cst_156 : f32 to vector<16x1xf32>
    %463 = arith.addf %459, %462 : vector<16x1xf32>
    %464 = math.rsqrt %463 : vector<16x1xf32>
    %465 = vector.broadcast %464 : vector<16x1xf32> to vector<16x128xf32>
    %466 = arith.mulf %461, %465 : vector<16x128xf32>
    %c0_157 = arith.constant 0 : index
    %c0_158 = arith.constant 0 : index
    %467 = vector.load %arg40[%c0_157, %c0_158] : memref<1x128xf32, #tpu.memory_space<vmem>>, vector<1x128xf32>
    %468 = vector.broadcast %467 : vector<1x128xf32> to vector<16x128xf32>
    %469 = arith.mulf %466, %468 : vector<16x128xf32>
    %c0_159 = arith.constant 0 : index
    %c0_160 = arith.constant 0 : index
    %470 = vector.load %arg41[%c0_159, %c0_160] : memref<1x128xf32, #tpu.memory_space<vmem>>, vector<1x128xf32>
    %471 = vector.broadcast %470 : vector<1x128xf32> to vector<16x128xf32>
    %472 = arith.addf %469, %471 : vector<16x128xf32>
    %473 = arith.truncf %472 : vector<16x128xf32> to vector<16x128xbf16>
    %cst_161 = arith.constant dense<0.000000e+00> : vector<16x256xf32>
    %474 = tpu.matmul %473, %83, %cst_161 {dimension_numbers = #tpu.dot_dimension_numbers<[1], [1], [0], [0], [0, 0, 1, 0], [], []>} : vector<16x128xbf16>, vector<256x128xbf16>, vector<16x256xf32> -> vector<16x256xf32>
    %c0_162 = arith.constant 0 : index
    %c0_163 = arith.constant 0 : index
    %475 = vector.load %arg1[%c0_162, %c0_163] : memref<16x1xi32, #tpu.memory_space<vmem>>, vector<16x1xi32>
    %cst_164 = arith.constant dense<0xFF800000> : vector<16xf32>
    %476 = vector.multi_reduction <maximumf>, %474, %cst_164 [1] : vector<16x256xf32> to vector<16xf32>
    %477 = vector.shape_cast %476 : vector<16xf32> to vector<16x1xf32>
    %478 = vector.broadcast %477 : vector<16x1xf32> to vector<16x256xf32>
    %479 = arith.subf %474, %478 : vector<16x256xf32>
    %480 = math.exp %479 : vector<16x256xf32>
    %cst_165 = arith.constant dense<0.000000e+00> : vector<16xf32>
    %481 = vector.multi_reduction <add>, %480, %cst_165 [1] : vector<16x256xf32> to vector<16xf32>
    %482 = vector.shape_cast %481 : vector<16xf32> to vector<16x1xf32>
    %483 = math.log %482 : vector<16x1xf32>
    %484 = arith.addf %477, %483 : vector<16x1xf32>
    %485 = tpu.iota {dimensions = array<i32: 1>} : vector<16x256xi32>
    %486 = vector.broadcast %475 : vector<16x1xi32> to vector<16x256xi32>
    %487 = arith.cmpi eq, %485, %486 : vector<16x256xi32>
    %cst_166 = arith.constant 0.000000e+00 : f32
    %488 = vector.broadcast %cst_166 : f32 to vector<16x256xf32>
    %489 = arith.select %487, %474, %488 : vector<16x256xi1>, vector<16x256xf32>
    %cst_167 = arith.constant dense<0.000000e+00> : vector<16xf32>
    %490 = vector.multi_reduction <add>, %489, %cst_167 [1] : vector<16x256xf32> to vector<16xf32>
    %491 = vector.shape_cast %490 : vector<16xf32> to vector<16x1xf32>
    %c-100_i32 = arith.constant -100 : i32
    %492 = vector.broadcast %c-100_i32 : i32 to vector<16x1xi32>
    %493 = arith.cmpi ne, %475, %492 : vector<16x1xi32>
    %494 = arith.subf %484, %491 : vector<16x1xf32>
    %cst_168 = arith.constant 0.000000e+00 : f32
    %495 = vector.broadcast %cst_168 : f32 to vector<16x1xf32>
    %496 = arith.select %493, %494, %495 : vector<16x1xi1>, vector<16x1xf32>
    %497 = vector.shape_cast %496 : vector<16x1xf32> to vector<1x16x1xf32>
    %cst_169 = arith.constant dense<0.000000e+00> : vector<1xf32>
    %498 = vector.multi_reduction <add>, %497, %cst_169 [1, 2] : vector<1x16x1xf32> to vector<1xf32>
    %499 = vector.shape_cast %498 : vector<1xf32> to vector<1x1x1xf32>
    %500 = vector.extract %499[0, 0, 0] : f32 from vector<1x1x1xf32>
    %501 = arith.extui %493 : vector<16x1xi1> to vector<16x1xi32>
    %502 = arith.sitofp %501 : vector<16x1xi32> to vector<16x1xf32>
    %503 = vector.shape_cast %502 : vector<16x1xf32> to vector<1x16x1xf32>
    %cst_170 = arith.constant dense<0.000000e+00> : vector<1xf32>
    %504 = vector.multi_reduction <add>, %503, %cst_170 [1, 2] : vector<1x16x1xf32> to vector<1xf32>
    %505 = vector.shape_cast %504 : vector<1xf32> to vector<1x1x1xf32>
    %506 = vector.extract %505[0, 0, 0] : f32 from vector<1x1x1xf32>
    %507 = arith.divf %500, %506 : f32
    %c0_171 = arith.constant 0 : index
    %c0_172 = arith.constant 0 : index
    %508 = memref.load %arg42[%c0_171, %c0_172] : memref<1x1xf32, #tpu.memory_space<smem>>
    memref.store %507, %arg42[%c0_171, %c0_172] : memref<1x1xf32, #tpu.memory_space<smem>>
    return
  }
}

</mosaic_0001>

<bundles_post_ra>
// kernel: forward.1
= control target key start
LH: loop header
LB: loop body
LE: loop exit
PB: predicated region body
PF: predicated region fallthrough
CT: control target
= control target key end

     0   :  { %s6477_s6 = smov 1   ;;  %s6478_s10 = smov 2   ;;  %s8076_s0 = inlined_call_operand.smem [shape: u32[43], index: -1, kind: input, shape index: {}] }
   0x1   :  { %s6572_s5 = sld [smem:[%s8076_s0]]   ;;  %s6479_s14 = smov 3  }
   0x2   :  { %s6577_s9 = sld [smem:[%s8076_s0 + %s6477_s6]]   ;;  %s6480_s18 = smov 4  }
   0x3   :  { %s6582_s13 = sld [smem:[%s8076_s0 + %s6478_s10]]   ;;  %s6481_s22 = smov 5  }
   0x4   :  { %s6587_s17 = sld [smem:[%s8076_s0 + %s6479_s14]]   ;;  %s6482_s26 = smov 6  }
   0x5   :  { %s6592_s21 = sld [smem:[%s8076_s0 + %s6480_s18]]   ;;  %s6483_s30 = smov 7  }
   0x6   :  { %s6597_s25 = sld [smem:[%s8076_s0 + %s6481_s22]]   ;;  %s6484_s4 = smov 8  }
   0x7   :  { %8102 = sst [smem:[#allocation72_spill]] %s6572_s5  ;;  %s6485_s10 = smov 9  }
   0x8   :  { %8103 = sst [smem:[#allocation73_spill]] %s6577_s9  ;;  %s6486_s15 = smov 10  }
   0x9   :  { %8104 = sst [smem:[#allocation74_spill]] %s6582_s13  ;;  %s6487_s20 = smov 11  }
   0xa   :  { %8105 = sst [smem:[#allocation75_spill]] %s6587_s17  ;;  %s6489_s1 = smov 13  }
   0xb   :  { %8106 = sst [smem:[#allocation76_spill]] %s6592_s21  ;;  %s6490_s7 = smov 14  }
   0xc   :  { %8107 = sst [smem:[#allocation77_spill]] %s6597_s25  ;;  %s6492_s22 = smov 16  }
   0xd   :  { %s6602_s29 = sld [smem:[%s8076_s0 + %s6482_s26]]   ;;  %s6488_s26 = smov 12  }
   0xe   :  { %s6607_s3 = sld [smem:[%s8076_s0 + %s6483_s30]]   ;;  %s6493_s28 = smov 17  }
   0xf   :  { %s6612_s8 = sld [smem:[%s8076_s0 + %s6484_s4]]  }
  0x10   :  { %s6617_s14 = sld [smem:[%s8076_s0 + %s6485_s10]]  }
  0x11   :  { %s6622_s19 = sld [smem:[%s8076_s0 + %s6486_s15]]   ;;  %s6491_s15 = smov 15  }
  0x12   :  { %s6627_s24 = sld [smem:[%s8076_s0 + %s6487_s20]]  }
  0x13   :  { %8108 = sst [smem:[#allocation78_spill]] %s6602_s29 }
  0x14   :  { %8109 = sst [smem:[#allocation79_spill]] %s6607_s3 }
  0x15   :  { %8110 = sst [smem:[#allocation80_spill]] %s6612_s8 }
  0x16   :  { %s6632_s30 = sld [smem:[%s8076_s0 + %s6488_s26]]  }
  0x17   :  { %8111 = sst [smem:[#allocation81_spill]] %s6622_s19 }
  0x18   :  { %8112 = sst [smem:[#allocation82_spill]] %s6627_s24 }
  0x19   :  { %s6637_s6 = sld [smem:[%s8076_s0 + %s6489_s1]]  }
  0x1a   :  { %s6642_s12 = sld [smem:[%s8076_s0 + %s6490_s7]]   ;;  %s6494_s7 = smov 18  }
  0x1b   :  { %s6647_s20 = sld [smem:[%s8076_s0 + %s6491_s15]]   ;;  %s6495_s15 = smov 19  }
  0x1c   :  { %s6652_s27 = sld [smem:[%s8076_s0 + %s6492_s22]]   ;;  %s6496_s22 = smov 20  }
  0x1d   :  { %s6657_s4 = sld [smem:[%s8076_s0 + %s6493_s28]]   ;;  %s6497_s28 = smov 21  }
  0x1e   :  { %s6662_s9 = sld [smem:[%s8076_s0 + %s6494_s7]]   ;;  %s6498_s7 = smov 22  }
  0x1f   :  { %8113 = sst [smem:[#allocation83_spill]] %s6637_s6 }
  0x20   :  { %s6667_s17 = sld [smem:[%s8076_s0 + %s6495_s15]]   ;;  %s6499_s15 = smov 23  }
  0x21   :  { %8114 = sst [smem:[#allocation84_spill]] %s6647_s20 }
  0x22   :  { %s6672_s19 = sld [smem:[%s8076_s0 + %s6496_s22]]   ;;  %s6500_s22 = smov 24  }
  0x23   :  { %8115 = sst [smem:[#allocation85_spill]] %s6657_s4 }
  0x24   :  { %s6677_s13 = sld [smem:[%s8076_s0 + %s6497_s28]]   ;;  %s6501_s28 = smov 25  }
  0x25   :  { %s6682_s29 = sld [smem:[%s8076_s0 + %s6498_s7]]   ;;  %s6502_s7 = smov 26  }
  0x26   :  { %8116 = sst [smem:[#allocation86_spill]] %s6667_s17 }
  0x27   :  { %s6687_s8 = sld [smem:[%s8076_s0 + %s6499_s15]]   ;;  %s6503_s15 = smov 27  }
  0x28   :  { %s6692_s21 = sld [smem:[%s8076_s0 + %s6500_s22]]   ;;  %s6504_s22 = smov 28  }
  0x29   :  { %s6697_s25 = sld [smem:[%s8076_s0 + %s6501_s28]]   ;;  %s6505_s28 = smov 29  }
  0x2a   :  { %8117 = sst [smem:[#allocation87_spill]] %s6677_s13 }
  0x2b   :  { %s6702_s5 = sld [smem:[%s8076_s0 + %s6502_s7]]   ;;  %s6506_s7 = smov 30  }
  0x2c   :  { %s6712_s13 = sld [smem:[%s8076_s0 + %s6504_s22]]   ;;  %s6508_s22 = smov 32  }
  0x2d   :  { %8118 = sst [smem:[#allocation88_spill]] %s6687_s8 }
  0x2e   :  { %s6707_s8 = sld [smem:[%s8076_s0 + %s6503_s15]]   ;;  %s6507_s15 = smov 31  }
  0x2f   :  { %8119 = sst [smem:[#allocation89_spill]] %s6697_s25 }
  0x30   :  { %s6717_s25 = sld [smem:[%s8076_s0 + %s6505_s28]]   ;;  %s6509_s28 = smov 33  }
  0x31   :  { %s6722_s17 = sld [smem:[%s8076_s0 + %s6506_s7]]   ;;  %s6510_s7 = smov 34  }
  0x32   :  { %s6732_s4 = sld [smem:[%s8076_s0 + %s6508_s22]]   ;;  %s6512_s22 = smov 36  }
  0x33   :  { %s6742_s20 = sld [smem:[%s8076_s0 + %s6510_s7]]   ;;  %s6514_s7 = smov 38  }
  0x34   :  { %8120 = sst [smem:[#allocation90_spill]] %s6707_s8 }
  0x35   :  { %s6727_s8 = sld [smem:[%s8076_s0 + %s6507_s15]]   ;;  %s6511_s15 = smov 35  }
  0x36   :  { %8121 = sst [smem:[#allocation91_spill]] %s6717_s25 }
  0x37   :  { %s6737_s25 = sld [smem:[%s8076_s0 + %s6509_s28]]   ;;  %s6513_s28 = smov 37  }
  0x38   :  { %s6752_s6 = sld [smem:[%s8076_s0 + %s6512_s22]]   ;;  %s6516_s22 = smov 40  }
  0x39   :  { %s6762_s24 = sld [smem:[%s8076_s0 + %s6514_s7]]   ;;  %s6518_s7 = smov 42  }
  0x3a   :  { %s6772_s3 = sld [smem:[%s8076_s0 + %s6516_s22]]  }
  0x3b   :  { %8122 = sst [smem:[#allocation92_spill]] %s6727_s8 }
  0x3c   :  { %s6747_s8 = sld [smem:[%s8076_s0 + %s6511_s15]]   ;;  %s6515_s15 = smov 39  }
  0x3d   :  { %8123 = sst [smem:[#allocation93_spill]] %s6737_s25 }
  0x3e   :  { %s6757_s25 = sld [smem:[%s8076_s0 + %s6513_s28]]   ;;  %s6517_s28 = smov 41  }
  0x3f   :  { %8126 = sst [smem:[#allocation96_spill]] %s6762_s24 }
  0x40   :  { %s6782_s24 = sld [smem:[%s8076_s0 + %s6518_s7]]  }
  0x42   :  { %8124 = sst [smem:[#allocation94_spill]] %s6747_s8 }
  0x43   :  { %s6767_s8 = sld [smem:[%s8076_s0 + %s6515_s15]]  }
  0x44   :  { %8125 = sst [smem:[#allocation95_spill]] %s6757_s25 }
  0x45   :  { %s6777_s25 = sld [smem:[%s8076_s0 + %s6517_s28]]  }
  0x46   :  { %90 = vsyncpa [#allocation3], 0 }
  0x47   :  { %91 = vsyncpa [#allocation6], 0 }
  0x48   :  { %92 = vsyncpa [#allocation9], 0 }
  0x49   :  { %93 = vsyncpa [#allocation12], 0 }
  0x4a   :  { %94 = vsyncpa [#allocation15], 0 }
  0x4b   :  { %95 = vsyncpa [#allocation18], 0 }
  0x4c   :  { %96 = vsyncpa [#allocation21], 0 }
  0x4d   :  { %97 = vsyncpa [#allocation24], 0 }
  0x4e   :  { %98 = vsyncpa [#allocation27], 0 }
  0x4f   :  { %99 = vsyncpa [#allocation30], 0 }
  0x50   :  { %100 = vsyncpa [#allocation33], 0 }
  0x51   :  { %101 = vsyncpa [#allocation36], 0 }
  0x52   :  { %102 = vsyncpa [#allocation39], 0 }
  0x53   :  { %103 = vsyncpa [#allocation42], 0 }
  0x54   :  { %104 = vsyncpa [#allocation45], 0 }
  0x55   :  { %105 = vsyncpa [#allocation48], 0 }
  0x56   :  { %106 = vsyncpa [#allocation51], 0 }
  0x57   :  { %107 = vsyncpa [#allocation4], 0  ;;  %s6519_s0 = smov [#allocation5]   ;;  %s6520_s16 = smov [#allocation8]  }
  0x58   :  { %s140_s15 = sshll.u32 %s6519_s0, 4  ;;  %s162_s18 = sshll.u32 %s6520_s16, 4  ;;  %s141_s15 = int_to_ptr.vmem [resolvable:$true] %s140_s15  ;;  %s163_s18 = int_to_ptr.vmem [resolvable:$true] %s162_s18 }
  0x59   :  { %s5705_s22 = scalar_lea.hbm %s6617_s14, 48 }
  0x5a   :  { %p5706_p0 = scmp.ne.s32.totalorder %s6617_s14, %s5705_s22  ;;  %p5709_p1 = scmp.lt.u32.totalorder %s5705_s22, %s6617_s14 }
  0x5c   :  { %p5711_p2 = pnand %p5709_p1, %p5706_p0 }
  0x5e   :  { %5714 = shalt.err (!%p5711_p2)
}
  0x5f   :  { %s5715_s23 = scalar_lea.vmem %s141_s15, 48  ;;  %s5719_s26 = scalar_lea.vmem %s141_s15, 64 }
  0x60   :  { %p5716_p3 = scmp.ne.s32.totalorder %s141_s15, %s5715_s23  ;;  %p5720_p4 = scmp.lt.s32.totalorder %s141_s15, %s141_s15 }
  0x61   :  { %p5721_p5 = scmp.lt.s32.totalorder %s5719_s26, %s5715_s23 }
  0x63   :  { %p5722_p6 = por %p5721_p5, %p5720_p4 }
  0x65   :  { %p5723_p7 = pnand %p5722_p6, %p5716_p3 }
  0x67   :  { %5726 = shalt.err (!%p5723_p7)
}
  0x68   :  { %143 = dma.hbm_to_vmem [thread:$0]  %s6617_s14, 48, %s141_s15, [#allocation6]  }
  0x69   :  { %s5727_s28 = scalar_lea.hbm %s6632_s30, 16 }
  0x6a   :  { %p5728_p8 = scmp.ne.s32.totalorder %s6632_s30, %s5727_s28  ;;  %p5731_p9 = scmp.lt.u32.totalorder %s5727_s28, %s6632_s30 }
  0x6c   :  { %p5733_p10 = pnand %p5731_p9, %p5728_p8 }
  0x6e   :  { %5736 = shalt.err (!%p5733_p10)
}
  0x6f   :  { %s5737_s1 = scalar_lea.vmem %s163_s18, 16  ;;  %s5741_s2 = scalar_lea.vmem %s163_s18, 32 }
  0x70   :  { %p5738_p11 = scmp.ne.s32.totalorder %s163_s18, %s5737_s1  ;;  %p5742_p12 = scmp.lt.s32.totalorder %s163_s18, %s163_s18 }
  0x71   :  { %p5743_p13 = scmp.lt.s32.totalorder %s5741_s2, %s5737_s1 }
  0x73   :  { %p5744_p0 = por %p5743_p13, %p5742_p12 }
  0x75   :  { %p5745_p1 = pnand %p5744_p0, %p5738_p11 }
  0x77   :  { %5748 = shalt.err (!%p5745_p1)
}
  0x78   :  { %165 = dma.hbm_to_vmem [thread:$0]  %s6632_s30, 16, %s163_s18, [#allocation9]  }
  0x79   :  { %s6521_s7 = smov [#allocation11]   ;;  %s5749_s10 = scalar_lea.hbm %s6642_s12, 2048 }
  0x7a   :  { %s181_s14 = sshll.u32 %s6521_s7, 4  ;;  %p5750_p2 = scmp.ne.s32.totalorder %s6642_s12, %s5749_s10  ;;  %s182_s14 = int_to_ptr.vmem [resolvable:$true] %s181_s14 }
  0x7b   :  { %p5753_p3 = scmp.lt.u32.totalorder %s5749_s10, %s6642_s12 }
  0x7d   :  { %p5755_p4 = pnand %p5753_p3, %p5750_p2 }
  0x7f   :  { %5758 = shalt.err (!%p5755_p4)
}
  0x80   :  { %s5759_s11 = scalar_lea.vmem %s182_s14, 2048  ;;  %p5764_p6 = scmp.lt.s32.totalorder %s182_s14, %s182_s14 }
  0x81   :  { %p5760_p5 = scmp.ne.s32.totalorder %s182_s14, %s5759_s11  ;;  %p5765_p7 = scmp.lt.s32.totalorder %s5759_s11, %s5759_s11 }
  0x83   :  { %p5766_p8 = por %p5765_p7, %p5764_p6 }
  0x85   :  { %p5767_p9 = pnand %p5766_p8, %p5760_p5 }
  0x87   :  { %5770 = shalt.err (!%p5767_p9)
}
  0x88   :  { %s6522_s0 = smov 128   ;;  %s6523_s30 = smov 8  }
  0x89   :  { %187 = dma.hbm_to_vmem [thread:$0]  %s6642_s12, 2048, %s182_s14, [#allocation12], %s6522_s0, %s6522_s0, %s6523_s30  }
  0x8a   :  { %s6524_s15 = smov [#allocation14]   ;;  %s5771_s18 = scalar_lea.hbm %s6652_s27, 2048 }
  0x8b   :  { %s203_s16 = sshll.u32 %s6524_s15, 4  ;;  %p5772_p10 = scmp.ne.s32.totalorder %s6652_s27, %s5771_s18  ;;  %s204_s16 = int_to_ptr.vmem [resolvable:$true] %s203_s16 }
  0x8c   :  { %p5775_p11 = scmp.lt.u32.totalorder %s5771_s18, %s6652_s27 }
  0x8e   :  { %p5777_p12 = pnand %p5775_p11, %p5772_p10 }
  0x90   :  { %5780 = shalt.err (!%p5777_p12)
}
  0x91   :  { %s5781_s22 = scalar_lea.vmem %s204_s16, 2048  ;;  %p5786_p0 = scmp.lt.s32.totalorder %s204_s16, %s204_s16 }
  0x92   :  { %p5782_p13 = scmp.ne.s32.totalorder %s204_s16, %s5781_s22  ;;  %p5787_p1 = scmp.lt.s32.totalorder %s5781_s22, %s5781_s22 }
  0x94   :  { %p5788_p2 = por %p5787_p1, %p5786_p0 }
  0x96   :  { %p5789_p3 = pnand %p5788_p2, %p5782_p13 }
  0x98   :  { %5792 = shalt.err (!%p5789_p3)
}
  0x99   :  { %s6525_s23 = smov 64   ;;  %s6526_s12 = smov 4  }
  0x9a   :  { %209 = dma.hbm_to_vmem [thread:$0]  %s6652_s27, 2048, %s204_s16, [#allocation15], %s6525_s23, %s6525_s23, %s6526_s12  }
  0x9b   :  { %s6527_s26 = smov [#allocation17]   ;;  %s6528_s1 = smov [#allocation20]  }
  0x9c   :  { %s226_s28 = sshll.u32 %s6527_s26, 4  ;;  %s246_s2 = sshll.u32 %s6528_s1, 4  ;;  %s227_s28 = int_to_ptr.vmem [resolvable:$true] %s226_s28  ;;  %s247_s2 = int_to_ptr.vmem [resolvable:$true] %s246_s2 }
  0x9d   :  { %s5793_s7 = scalar_lea.hbm %s6662_s9, 16 }
  0x9e   :  { %p5794_p4 = scmp.ne.s32.totalorder %s6662_s9, %s5793_s7  ;;  %p5797_p5 = scmp.lt.u32.totalorder %s5793_s7, %s6662_s9 }
  0xa0   :  { %p5799_p6 = pnand %p5797_p5, %p5794_p4 }
  0xa2   :  { %5802 = shalt.err (!%p5799_p6)
}
  0xa3   :  { %s5803_s14 = scalar_lea.vmem %s227_s28, 16  ;;  %s5807_s10 = scalar_lea.vmem %s227_s28, 32 }
  0xa4   :  { %p5804_p7 = scmp.ne.s32.totalorder %s227_s28, %s5803_s14  ;;  %p5808_p8 = scmp.lt.s32.totalorder %s227_s28, %s227_s28 }
  0xa5   :  { %p5809_p9 = scmp.lt.s32.totalorder %s5807_s10, %s5803_s14 }
  0xa7   :  { %p5810_p10 = por %p5809_p9, %p5808_p8 }
  0xa9   :  { %p5811_p11 = pnand %p5810_p10, %p5804_p7 }
  0xab   :  { %5814 = shalt.err (!%p5811_p11)
}
  0xac   :  { %229 = dma.hbm_to_vmem [thread:$0]  %s6662_s9, 16, %s227_s28, [#allocation18]  }
  0xad   :  { %s5815_s27 = scalar_lea.hbm %s6672_s19, 16 }
  0xae   :  { %p5816_p12 = scmp.ne.s32.totalorder %s6672_s19, %s5815_s27  ;;  %p5819_p13 = scmp.lt.u32.totalorder %s5815_s27, %s6672_s19 }
  0xb0   :  { %p5821_p0 = pnand %p5819_p13, %p5816_p12 }
  0xb2   :  { %5824 = shalt.err (!%p5821_p0)
}
  0xb3   :  { %s5825_s11 = scalar_lea.vmem %s247_s2, 16  ;;  %s5829_s15 = scalar_lea.vmem %s247_s2, 32 }
  0xb4   :  { %p5826_p1 = scmp.ne.s32.totalorder %s247_s2, %s5825_s11  ;;  %p5830_p2 = scmp.lt.s32.totalorder %s247_s2, %s247_s2 }
  0xb5   :  { %p5831_p3 = scmp.lt.s32.totalorder %s5829_s15, %s5825_s11 }
  0xb7   :  { %p5832_p4 = por %p5831_p3, %p5830_p2 }
  0xb9   :  { %p5833_p5 = pnand %p5832_p4, %p5826_p1 }
  0xbb   :  { %5836 = shalt.err (!%p5833_p5)
}
  0xbc   :  { %249 = dma.hbm_to_vmem [thread:$0]  %s6672_s19, 16, %s247_s2, [#allocation21]  }
  0xbd   :  { %s6529_s16 = smov [#allocation23]   ;;  %s5837_s18 = scalar_lea.hbm %s6682_s29, 3072 }
  0xbe   :  { %s265_s9 = sshll.u32 %s6529_s16, 4  ;;  %p5838_p6 = scmp.ne.s32.totalorder %s6682_s29, %s5837_s18  ;;  %s266_s9 = int_to_ptr.vmem [resolvable:$true] %s265_s9 }
  0xbf   :  { %p5841_p7 = scmp.lt.u32.totalorder %s5837_s18, %s6682_s29 }
  0xc1   :  { %p5843_p8 = pnand %p5841_p7, %p5838_p6 }
  0xc3   :  { %5846 = shalt.err (!%p5843_p8)
}
  0xc4   :  { %s5847_s22 = scalar_lea.vmem %s266_s9, 3072  ;;  %p5852_p10 = scmp.lt.s32.totalorder %s266_s9, %s266_s9 }
  0xc5   :  { %p5848_p9 = scmp.ne.s32.totalorder %s266_s9, %s5847_s22  ;;  %p5853_p11 = scmp.lt.s32.totalorder %s5847_s22, %s5847_s22 }
  0xc7   :  { %p5854_p12 = por %p5853_p11, %p5852_p10 }
  0xc9   :  { %p5855_p13 = pnand %p5854_p12, %p5848_p9 }
  0xcb   :  { %5858 = shalt.err (!%p5855_p13)
}
  0xcc   :  { %s6530_s26 = smov 192   ;;  %s6531_s19 = smov 12  }
  0xcd   :  { %271 = dma.hbm_to_vmem [thread:$0]  %s6682_s29, 3072, %s266_s9, [#allocation24], %s6530_s26, %s6530_s26, %s6531_s19  }
  0xce   :  { %s6532_s28 = smov [#allocation26]   ;;  %s6533_s2 = smov [#allocation29]  }
  0xcf   :  { %s287_s1 = sshll.u32 %s6532_s28, 4  ;;  %s310_s7 = sshll.u32 %s6533_s2, 4  ;;  %s288_s1 = int_to_ptr.vmem [resolvable:$true] %s287_s1  ;;  %s311_s7 = int_to_ptr.vmem [resolvable:$true] %s310_s7 }
  0xd0   :  { %s5859_s14 = scalar_lea.hbm %s6692_s21, 1024 }
  0xd1   :  { %p5860_p0 = scmp.ne.s32.totalorder %s6692_s21, %s5859_s14  ;;  %p5863_p1 = scmp.lt.u32.totalorder %s5859_s14, %s6692_s21 }
  0xd3   :  { %p5865_p2 = pnand %p5863_p1, %p5860_p0 }
  0xd5   :  { %5868 = shalt.err (!%p5865_p2)
}
  0xd6   :  { %s5869_s10 = scalar_lea.vmem %s288_s1, 1024  ;;  %p5874_p4 = scmp.lt.s32.totalorder %s288_s1, %s288_s1 }
  0xd7   :  { %p5870_p3 = scmp.ne.s32.totalorder %s288_s1, %s5869_s10  ;;  %p5875_p5 = scmp.lt.s32.totalorder %s5869_s10, %s5869_s10 }
  0xd9   :  { %p5876_p6 = por %p5875_p5, %p5874_p4 }
  0xdb   :  { %p5877_p7 = pnand %p5876_p6, %p5870_p3 }
  0xdd   :  { %5880 = shalt.err (!%p5877_p7)
}
  0xde   :  { %293 = dma.hbm_to_vmem [thread:$0]  %s6692_s21, 1024, %s288_s1, [#allocation27], %s6525_s23, %s6525_s23, %s6526_s12  }
  0xdf   :  { %s5881_s29 = scalar_lea.hbm %s6702_s5, 16 }
  0xe0   :  { %p5882_p8 = scmp.ne.s32.totalorder %s6702_s5, %s5881_s29  ;;  %p5885_p9 = scmp.lt.u32.totalorder %s5881_s29, %s6702_s5 }
  0xe2   :  { %p5887_p10 = pnand %p5885_p9, %p5882_p8 }
  0xe4   :  { %5890 = shalt.err (!%p5887_p10)
}
  0xe5   :  { %s5891_s27 = scalar_lea.vmem %s311_s7, 16  ;;  %s5895_s11 = scalar_lea.vmem %s311_s7, 32 }
  0xe6   :  { %p5892_p11 = scmp.ne.s32.totalorder %s311_s7, %s5891_s27  ;;  %p5896_p12 = scmp.lt.s32.totalorder %s311_s7, %s311_s7 }
  0xe7   :  { %p5897_p13 = scmp.lt.s32.totalorder %s5895_s11, %s5891_s27 }
  0xe9   :  { %p5898_p0 = por %p5897_p13, %p5896_p12 }
  0xeb   :  { %p5899_p1 = pnand %p5898_p0, %p5892_p11 }
  0xed   :  { %5902 = shalt.err (!%p5899_p1)
}
  0xee   :  { %313 = dma.hbm_to_vmem [thread:$0]  %s6702_s5, 16, %s311_s7, [#allocation30]  }
  0xef   :  { %s6534_s21 = smov [#allocation32]   ;;  %s6535_s16 = smov [#allocation35]  }
  0xf0   :  { %s329_s15 = sshll.u32 %s6534_s21, 4  ;;  %s351_s9 = sshll.u32 %s6535_s16, 4  ;;  %s330_s15 = int_to_ptr.vmem [resolvable:$true] %s329_s15  ;;  %s352_s9 = int_to_ptr.vmem [resolvable:$true] %s351_s9 }
  0xf1   :  { %s5903_s18 = scalar_lea.hbm %s6712_s13, 1024 }
  0xf2   :  { %p5904_p2 = scmp.ne.s32.totalorder %s6712_s13, %s5903_s18  ;;  %p5907_p3 = scmp.lt.u32.totalorder %s5903_s18, %s6712_s13 }
  0xf4   :  { %p5909_p4 = pnand %p5907_p3, %p5904_p2 }
  0xf6   :  { %5912 = shalt.err (!%p5909_p4)
}
  0xf7   :  { %s5913_s22 = scalar_lea.vmem %s330_s15, 1024  ;;  %p5918_p6 = scmp.lt.s32.totalorder %s330_s15, %s330_s15 }
  0xf8   :  { %p5914_p5 = scmp.ne.s32.totalorder %s330_s15, %s5913_s22  ;;  %p5919_p7 = scmp.lt.s32.totalorder %s5913_s22, %s5913_s22 }
  0xfa   :  { %p5920_p8 = por %p5919_p7, %p5918_p6 }
  0xfc   :  { %p5921_p9 = pnand %p5920_p8, %p5914_p5 }
  0xfe   :  { %5924 = shalt.err (!%p5921_p9)
}
  0xff   :  { %335 = dma.hbm_to_vmem [thread:$0]  %s6712_s13, 1024, %s330_s15, [#allocation33], %s6525_s23, %s6525_s23, %s6526_s12  }
 0x100   :  { %s5925_s5 = scalar_lea.hbm %s6722_s17, 2048 }
 0x101   :  { %p5926_p10 = scmp.ne.s32.totalorder %s6722_s17, %s5925_s5  ;;  %p5929_p11 = scmp.lt.u32.totalorder %s5925_s5, %s6722_s17 }
 0x103   :  { %p5931_p12 = pnand %p5929_p11, %p5926_p10 }
 0x105   :  { %5934 = shalt.err (!%p5931_p12)
}
 0x106   :  { %s5935_s26 = scalar_lea.vmem %s352_s9, 2048  ;;  %p5940_p0 = scmp.lt.s32.totalorder %s352_s9, %s352_s9 }
 0x107   :  { %p5936_p13 = scmp.ne.s32.totalorder %s352_s9, %s5935_s26  ;;  %p5941_p1 = scmp.lt.s32.totalorder %s5935_s26, %s5935_s26 }
 0x109   :  { %p5942_p2 = por %p5941_p1, %p5940_p0 }
 0x10b   :  { %p5943_p3 = pnand %p5942_p2, %p5936_p13 }
 0x10d   :  { %5946 = shalt.err (!%p5943_p3)
}
 0x10e   :  { %357 = dma.hbm_to_vmem [thread:$0]  %s6722_s17, 2048, %s352_s9, [#allocation36], %s6522_s0, %s6522_s0, %s6523_s30  }
 0x10f   :  { %s6536_s13 = smov [#allocation38]   ;;  %s6537_s28 = smov [#allocation41]  }
 0x110   :  { %s373_s19 = sshll.u32 %s6536_s13, 4  ;;  %s396_s1 = sshll.u32 %s6537_s28, 4  ;;  %s374_s19 = int_to_ptr.vmem [resolvable:$true] %s373_s19  ;;  %s397_s1 = int_to_ptr.vmem [resolvable:$true] %s396_s1 }
 0x111   :  { %s5947_s2 = scalar_lea.hbm %s6732_s4, 1024 }
 0x112   :  { %p5948_p4 = scmp.ne.s32.totalorder %s6732_s4, %s5947_s2  ;;  %p5951_p5 = scmp.lt.u32.totalorder %s5947_s2, %s6732_s4 }
 0x114   :  { %p5953_p6 = pnand %p5951_p5, %p5948_p4 }
 0x116   :  { %5956 = shalt.err (!%p5953_p6)
}
 0x117   :  { %s5957_s7 = scalar_lea.vmem %s374_s19, 1024  ;;  %p5962_p8 = scmp.lt.s32.totalorder %s374_s19, %s374_s19 }
 0x118   :  { %p5958_p7 = scmp.ne.s32.totalorder %s374_s19, %s5957_s7  ;;  %p5963_p9 = scmp.lt.s32.totalorder %s5957_s7, %s5957_s7 }
 0x11a   :  { %p5964_p10 = por %p5963_p9, %p5962_p8 }
 0x11c   :  { %p5965_p11 = pnand %p5964_p10, %p5958_p7 }
 0x11e   :  { %5968 = shalt.err (!%p5965_p11)
}
 0x11f   :  { %379 = dma.hbm_to_vmem [thread:$0]  %s6732_s4, 1024, %s374_s19, [#allocation39], %s6525_s23, %s6525_s23, %s6526_s12  }
 0x120   :  { %s5969_s17 = scalar_lea.hbm %s6742_s20, 16 }
 0x121   :  { %p5970_p12 = scmp.ne.s32.totalorder %s6742_s20, %s5969_s17  ;;  %p5973_p13 = scmp.lt.u32.totalorder %s5969_s17, %s6742_s20 }
 0x123   :  { %p5975_p0 = pnand %p5973_p13, %p5970_p12 }
 0x125   :  { %5978 = shalt.err (!%p5975_p0)
}
 0x126   :  { %s5979_s14 = scalar_lea.vmem %s397_s1, 16  ;;  %s5983_s10 = scalar_lea.vmem %s397_s1, 32 }
 0x127   :  { %p5980_p1 = scmp.ne.s32.totalorder %s397_s1, %s5979_s14  ;;  %p5984_p2 = scmp.lt.s32.totalorder %s397_s1, %s397_s1 }
 0x128   :  { %p5985_p3 = scmp.lt.s32.totalorder %s5983_s10, %s5979_s14 }
 0x12a   :  { %p5986_p4 = por %p5985_p3, %p5984_p2 }
 0x12c   :  { %p5987_p5 = pnand %p5986_p4, %p5980_p1 }
 0x12e   :  { %5990 = shalt.err (!%p5987_p5)
}
 0x12f   :  { %399 = dma.hbm_to_vmem [thread:$0]  %s6742_s20, 16, %s397_s1, [#allocation42]  }
 0x130   :  { %s6538_s4 = smov [#allocation44]   ;;  %s6539_s27 = smov [#allocation47]  }
 0x131   :  { %s415_s29 = sshll.u32 %s6538_s4, 4  ;;  %s437_s11 = sshll.u32 %s6539_s27, 4  ;;  %s416_s29 = int_to_ptr.vmem [resolvable:$true] %s415_s29  ;;  %s438_s11 = int_to_ptr.vmem [resolvable:$true] %s437_s11 }
 0x132   :  { %s5991_s21 = scalar_lea.hbm %s6752_s6, 2048 }
 0x133   :  { %p5992_p6 = scmp.ne.s32.totalorder %s6752_s6, %s5991_s21  ;;  %p5995_p7 = scmp.lt.u32.totalorder %s5991_s21, %s6752_s6 }
 0x135   :  { %p5997_p8 = pnand %p5995_p7, %p5992_p6 }
 0x137   :  { %6000 = shalt.err (!%p5997_p8)
}
 0x138   :  { %s6001_s15 = scalar_lea.vmem %s416_s29, 2048  ;;  %p6006_p10 = scmp.lt.s32.totalorder %s416_s29, %s416_s29 }
 0x139   :  { %p6002_p9 = scmp.ne.s32.totalorder %s416_s29, %s6001_s15  ;;  %p6007_p11 = scmp.lt.s32.totalorder %s6001_s15, %s6001_s15 }
 0x13b   :  { %p6008_p12 = por %p6007_p11, %p6006_p10 }
 0x13d   :  { %p6009_p13 = pnand %p6008_p12, %p6002_p9 }
 0x13f   :  { %6012 = shalt.err (!%p6009_p13)
}
 0x140   :  { %s8127_s20 = sld [smem:[#allocation96_spill]] }
 0x141   :  { %421 = dma.hbm_to_vmem [thread:$0]  %s6752_s6, 2048, %s416_s29, [#allocation45], %s6522_s0, %s6522_s0, %s6523_s30  }
 0x146   :  { %s6013_s16 = scalar_lea.hbm %s8127_s20, 2048 }
 0x147   :  { %p6014_p0 = scmp.ne.s32.totalorder %s8127_s20, %s6013_s16  ;;  %p6017_p1 = scmp.lt.u32.totalorder %s6013_s16, %s8127_s20 }
 0x149   :  { %p6019_p2 = pnand %p6017_p1, %p6014_p0 }
 0x14b   :  { %6022 = shalt.err (!%p6019_p2)
}
 0x14c   :  { %s6023_s9 = scalar_lea.vmem %s438_s11, 2048  ;;  %p6028_p4 = scmp.lt.s32.totalorder %s438_s11, %s438_s11 }
 0x14d   :  { %p6024_p3 = scmp.ne.s32.totalorder %s438_s11, %s6023_s9  ;;  %p6029_p5 = scmp.lt.s32.totalorder %s6023_s9, %s6023_s9 }
 0x14f   :  { %p6030_p6 = por %p6029_p5, %p6028_p4 }
 0x151   :  { %p6031_p7 = pnand %p6030_p6, %p6024_p3 }
 0x153   :  { %6034 = shalt.err (!%p6031_p7)
}
 0x154   :  { %443 = dma.hbm_to_vmem [thread:$0]  %s8127_s20, 2048, %s438_s11, [#allocation48], %s6525_s23, %s6525_s23, %s6526_s12  }
 0x155   :  { %s6540_s6 = smov [#allocation50]   ;;  %s6541_s30 = smov [#allocation2]  }
 0x156   :  { %s460_s0 = sshll.u32 %s6540_s6, 4  ;;  %s128_s18 = sshll.u32 %s6541_s30, 4  ;;  %s461_s0 = int_to_ptr.vmem [resolvable:$true] %s460_s0  ;;  %s129_s18 = int_to_ptr.vmem [resolvable:$true] %s128_s18 }
 0x157   :  { %s6035_s22 = scalar_lea.hbm %s6772_s3, 16 }
 0x158   :  { %p6036_p8 = scmp.ne.s32.totalorder %s6772_s3, %s6035_s22  ;;  %p6039_p9 = scmp.lt.u32.totalorder %s6035_s22, %s6772_s3 }
 0x15a   :  { %p6041_p10 = pnand %p6039_p9, %p6036_p8 }
 0x15c   :  { %6044 = shalt.err (!%p6041_p10)
}
 0x15d   :  { %s6045_s5 = scalar_lea.vmem %s461_s0, 16  ;;  %s6049_s26 = scalar_lea.vmem %s461_s0, 32 }
 0x15e   :  { %p6046_p11 = scmp.ne.s32.totalorder %s461_s0, %s6045_s5  ;;  %p6050_p12 = scmp.lt.s32.totalorder %s461_s0, %s461_s0 }
 0x15f   :  { %p6051_p13 = scmp.lt.s32.totalorder %s6049_s26, %s6045_s5 }
 0x161   :  { %p6052_p0 = por %p6051_p13, %p6050_p12 }
 0x163   :  { %p6053_p1 = pnand %p6052_p0, %p6046_p11 }
 0x165   :  { %6056 = shalt.err (!%p6053_p1)
}
 0x166   :  { %s8128_s23 = sld [smem:[#allocation79_spill]] }
 0x167   :  { %463 = dma.hbm_to_vmem [thread:$0]  %s6772_s3, 16, %s461_s0, [#allocation51]  }
 0x16c   :  { %s6057_s12 = scalar_lea.hbm %s8128_s23, 16 }
 0x16d   :  { %p6058_p2 = scmp.ne.s32.totalorder %s8128_s23, %s6057_s12  ;;  %p6061_p3 = scmp.lt.u32.totalorder %s6057_s12, %s8128_s23 }
 0x16f   :  { %p6063_p4 = pnand %p6061_p3, %p6058_p2 }
 0x171   :  { %6066 = shalt.err (!%p6063_p4)
}
 0x172   :  { %s6067_s13 = scalar_lea.vmem %s129_s18, 16  ;;  %s6071_s19 = scalar_lea.vmem %s129_s18, 32 }
 0x173   :  { %p6068_p5 = scmp.ne.s32.totalorder %s129_s18, %s6067_s13  ;;  %p6072_p6 = scmp.lt.s32.totalorder %s129_s18, %s129_s18 }
 0x174   :  { %p6073_p7 = scmp.lt.s32.totalorder %s6071_s19, %s6067_s13 }
 0x176   :  { %p6074_p8 = por %p6073_p7, %p6072_p6 }
 0x178   :  { %p6075_p9 = pnand %p6074_p8, %p6068_p5 }
 0x17a   :  { %6078 = shalt.err (!%p6075_p9)
}
 0x17b   :  { %s8129_s28 = sld [smem:[#allocation82_spill]]  ;;  %s6542_s3 = smov [#allocation7]  }
 0x17c   :  { %131 = dma.hbm_to_vmem [thread:$0]  %s8128_s23, 16, %s129_s18, [#allocation3]  }
 0x17d   :  { %s152_s1 = sshll.u32 %s6542_s3, 4  ;;  %s6543_s2 = smov [#allocation10]   ;;  %s153_s1 = int_to_ptr.vmem [resolvable:$true] %s152_s1 }
 0x17e   :  { %s172_s7 = sshll.u32 %s6543_s2, 4  ;;  %s173_s7 = int_to_ptr.vmem [resolvable:$true] %s172_s7 }
 0x181   :  { %s6079_s17 = scalar_lea.hbm %s8129_s28, 16 }
 0x182   :  { %p6080_p10 = scmp.ne.s32.totalorder %s8129_s28, %s6079_s17  ;;  %p6083_p11 = scmp.lt.u32.totalorder %s6079_s17, %s8129_s28 }
 0x184   :  { %p6085_p12 = pnand %p6083_p11, %p6080_p10 }
 0x186   :  { %6088 = shalt.err (!%p6085_p12)
}
 0x187   :  { %s6089_s14 = scalar_lea.vmem %s153_s1, 16  ;;  %s6093_s10 = scalar_lea.vmem %s153_s1, 32 }
 0x188   :  { %p6090_p13 = scmp.ne.s32.totalorder %s153_s1, %s6089_s14  ;;  %p6094_p0 = scmp.lt.s32.totalorder %s153_s1, %s153_s1 }
 0x189   :  { %p6095_p1 = scmp.lt.s32.totalorder %s6093_s10, %s6089_s14 }
 0x18b   :  { %p6096_p2 = por %p6095_p1, %p6094_p0 }
 0x18d   :  { %p6097_p3 = pnand %p6096_p2, %p6090_p13 }
 0x18f   :  { %6100 = shalt.err (!%p6097_p3)
}
 0x190   :  { %s8130_s4 = sld [smem:[#allocation83_spill]] }
 0x191   :  { %155 = dma.hbm_to_vmem [thread:$0]  %s8129_s28, 16, %s153_s1, [#allocation6]  }
 0x196   :  { %s6101_s29 = scalar_lea.hbm %s8130_s4, 16 }
 0x197   :  { %p6102_p4 = scmp.ne.s32.totalorder %s8130_s4, %s6101_s29  ;;  %p6105_p5 = scmp.lt.u32.totalorder %s6101_s29, %s8130_s4 }
 0x199   :  { %p6107_p6 = pnand %p6105_p5, %p6102_p4 }
 0x19b   :  { %6110 = shalt.err (!%p6107_p6)
}
 0x19c   :  { %s6111_s27 = scalar_lea.vmem %s173_s7, 16  ;;  %s6115_s11 = scalar_lea.vmem %s173_s7, 32 }
 0x19d   :  { %p6112_p7 = scmp.ne.s32.totalorder %s173_s7, %s6111_s27  ;;  %p6116_p8 = scmp.lt.s32.totalorder %s173_s7, %s173_s7 }
 0x19e   :  { %p6117_p9 = scmp.lt.s32.totalorder %s6115_s11, %s6111_s27 }
 0x1a0   :  { %p6118_p10 = por %p6117_p9, %p6116_p8 }
 0x1a2   :  { %p6119_p11 = pnand %p6118_p10, %p6112_p7 }
 0x1a4   :  { %6122 = shalt.err (!%p6119_p11)
}
 0x1a5   :  { %s8131_s21 = sld [smem:[#allocation84_spill]]  ;;  %s6544_s15 = smov [#allocation13]  }
 0x1a6   :  { %175 = dma.hbm_to_vmem [thread:$0]  %s8130_s4, 16, %s173_s7, [#allocation9]  }
 0x1a7   :  { %s194_s20 = sshll.u32 %s6544_s15, 4  ;;  %s6545_s16 = smov [#allocation16]   ;;  %s195_s20 = int_to_ptr.vmem [resolvable:$true] %s194_s20 }
 0x1a8   :  { %s216_s9 = sshll.u32 %s6545_s16, 4  ;;  %s217_s9 = int_to_ptr.vmem [resolvable:$true] %s216_s9 }
 0x1ab   :  { %s6123_s6 = scalar_lea.hbm %s8131_s21, 32 }
 0x1ac   :  { %p6124_p12 = scmp.ne.s32.totalorder %s8131_s21, %s6123_s6  ;;  %p6127_p13 = scmp.lt.u32.totalorder %s6123_s6, %s8131_s21 }
 0x1ae   :  { %p6129_p0 = pnand %p6127_p13, %p6124_p12 }
 0x1b0   :  { %6132 = shalt.err (!%p6129_p0)
}
 0x1b1   :  { %s6133_s0 = scalar_lea.vmem %s195_s20, 32  ;;  %p6138_p2 = scmp.lt.s32.totalorder %s195_s20, %s195_s20 }
 0x1b2   :  { %p6134_p1 = scmp.ne.s32.totalorder %s195_s20, %s6133_s0  ;;  %p6139_p3 = scmp.lt.s32.totalorder %s6133_s0, %s6133_s0 }
 0x1b4   :  { %p6140_p4 = por %p6139_p3, %p6138_p2 }
 0x1b6   :  { %p6141_p5 = pnand %p6140_p4, %p6134_p1 }
 0x1b8   :  { %6144 = shalt.err (!%p6141_p5)
}
 0x1b9   :  { %s8132_s30 = sld [smem:[#allocation85_spill]] }
 0x1ba   :  { %197 = dma.hbm_to_vmem [thread:$0]  %s8131_s21, 32, %s195_s20, [#allocation12]  }
 0x1bf   :  { %s6145_s18 = scalar_lea.hbm %s8132_s30, 16 }
 0x1c0   :  { %p6146_p6 = scmp.ne.s32.totalorder %s8132_s30, %s6145_s18  ;;  %p6149_p7 = scmp.lt.u32.totalorder %s6145_s18, %s8132_s30 }
 0x1c2   :  { %p6151_p8 = pnand %p6149_p7, %p6146_p6 }
 0x1c4   :  { %6154 = shalt.err (!%p6151_p8)
}
 0x1c5   :  { %s6155_s22 = scalar_lea.vmem %s217_s9, 16  ;;  %s6159_s5 = scalar_lea.vmem %s217_s9, 32 }
 0x1c6   :  { %p6156_p9 = scmp.ne.s32.totalorder %s217_s9, %s6155_s22  ;;  %p6160_p10 = scmp.lt.s32.totalorder %s217_s9, %s217_s9 }
 0x1c7   :  { %p6161_p11 = scmp.lt.s32.totalorder %s6159_s5, %s6155_s22 }
 0x1c9   :  { %p6162_p12 = por %p6161_p11, %p6160_p10 }
 0x1cb   :  { %p6163_p13 = pnand %p6162_p12, %p6156_p9 }
 0x1cd   :  { %6166 = shalt.err (!%p6163_p13)
}
 0x1ce   :  { %s8133_s26 = sld [smem:[#allocation86_spill]]  ;;  %s6546_s23 = smov [#allocation19]  }
 0x1cf   :  { %219 = dma.hbm_to_vmem [thread:$0]  %s8132_s30, 16, %s217_s9, [#allocation15]  }
 0x1d0   :  { %s236_s12 = sshll.u32 %s6546_s23, 4  ;;  %s6547_s13 = smov [#allocation22]   ;;  %s237_s12 = int_to_ptr.vmem [resolvable:$true] %s236_s12 }
 0x1d1   :  { %s256_s19 = sshll.u32 %s6547_s13, 4  ;;  %s257_s19 = int_to_ptr.vmem [resolvable:$true] %s256_s19 }
 0x1d4   :  { %s6167_s28 = scalar_lea.hbm %s8133_s26, 16 }
 0x1d5   :  { %p6168_p0 = scmp.ne.s32.totalorder %s8133_s26, %s6167_s28  ;;  %p6171_p1 = scmp.lt.u32.totalorder %s6167_s28, %s8133_s26 }
 0x1d7   :  { %p6173_p2 = pnand %p6171_p1, %p6168_p0 }
 0x1d9   :  { %6176 = shalt.err (!%p6173_p2)
}
 0x1da   :  { %s6177_s3 = scalar_lea.vmem %s237_s12, 16  ;;  %s6181_s1 = scalar_lea.vmem %s237_s12, 32 }
 0x1db   :  { %p6178_p3 = scmp.ne.s32.totalorder %s237_s12, %s6177_s3  ;;  %p6182_p4 = scmp.lt.s32.totalorder %s237_s12, %s237_s12 }
 0x1dc   :  { %p6183_p5 = scmp.lt.s32.totalorder %s6181_s1, %s6177_s3 }
 0x1de   :  { %p6184_p6 = por %p6183_p5, %p6182_p4 }
 0x1e0   :  { %p6185_p7 = pnand %p6184_p6, %p6178_p3 }
 0x1e2   :  { %6188 = shalt.err (!%p6185_p7)
}
 0x1e3   :  { %s8134_s2 = sld [smem:[#allocation87_spill]] }
 0x1e4   :  { %239 = dma.hbm_to_vmem [thread:$0]  %s8133_s26, 16, %s237_s12, [#allocation18]  }
 0x1e9   :  { %s6189_s7 = scalar_lea.hbm %s8134_s2, 16 }
 0x1ea   :  { %p6190_p8 = scmp.ne.s32.totalorder %s8134_s2, %s6189_s7  ;;  %p6193_p9 = scmp.lt.u32.totalorder %s6189_s7, %s8134_s2 }
 0x1ec   :  { %p6195_p10 = pnand %p6193_p9, %p6190_p8 }
 0x1ee   :  { %6198 = shalt.err (!%p6195_p10)
}
 0x1ef   :  { %s6199_s17 = scalar_lea.vmem %s257_s19, 16  ;;  %s6203_s14 = scalar_lea.vmem %s257_s19, 32 }
 0x1f0   :  { %p6200_p11 = scmp.ne.s32.totalorder %s257_s19, %s6199_s17  ;;  %p6204_p12 = scmp.lt.s32.totalorder %s257_s19, %s257_s19 }
 0x1f1   :  { %p6205_p13 = scmp.lt.s32.totalorder %s6203_s14, %s6199_s17 }
 0x1f3   :  { %p6206_p0 = por %p6205_p13, %p6204_p12 }
 0x1f5   :  { %p6207_p1 = pnand %p6206_p0, %p6200_p11 }
 0x1f7   :  { %6210 = shalt.err (!%p6207_p1)
}
 0x1f8   :  { %s8135_s10 = sld [smem:[#allocation88_spill]]  ;;  %s6548_s4 = smov [#allocation25]  }
 0x1f9   :  { %259 = dma.hbm_to_vmem [thread:$0]  %s8134_s2, 16, %s257_s19, [#allocation21]  }
 0x1fa   :  { %s278_s29 = sshll.u32 %s6548_s4, 4  ;;  %s6549_s27 = smov [#allocation28]   ;;  %s279_s29 = int_to_ptr.vmem [resolvable:$true] %s278_s29 }
 0x1fb   :  { %s300_s11 = sshll.u32 %s6549_s27, 4  ;;  %s301_s11 = int_to_ptr.vmem [resolvable:$true] %s300_s11 }
 0x1fe   :  { %s6211_s21 = scalar_lea.hbm %s8135_s10, 48 }
 0x1ff   :  { %p6212_p2 = scmp.ne.s32.totalorder %s8135_s10, %s6211_s21  ;;  %p6215_p3 = scmp.lt.u32.totalorder %s6211_s21, %s8135_s10 }
 0x201   :  { %p6217_p4 = pnand %p6215_p3, %p6212_p2 }
 0x203   :  { %6220 = shalt.err (!%p6217_p4)
}
 0x204   :  { %s6221_s15 = scalar_lea.vmem %s279_s29, 48  ;;  %s6225_s20 = scalar_lea.vmem %s279_s29, 64 }
 0x205   :  { %p6222_p5 = scmp.ne.s32.totalorder %s279_s29, %s6221_s15  ;;  %p6226_p6 = scmp.lt.s32.totalorder %s279_s29, %s279_s29 }
 0x206   :  { %p6227_p7 = scmp.lt.s32.totalorder %s6225_s20, %s6221_s15 }
 0x208   :  { %p6228_p8 = por %p6227_p7, %p6226_p6 }
 0x20a   :  { %p6229_p9 = pnand %p6228_p8, %p6222_p5 }
 0x20c   :  { %6232 = shalt.err (!%p6229_p9)
}
 0x20d   :  { %s8136_s16 = sld [smem:[#allocation89_spill]] }
 0x20e   :  { %281 = dma.hbm_to_vmem [thread:$0]  %s8135_s10, 48, %s279_s29, [#allocation24]  }
 0x213   :  { %s6233_s9 = scalar_lea.hbm %s8136_s16, 16 }
 0x214   :  { %p6234_p10 = scmp.ne.s32.totalorder %s8136_s16, %s6233_s9  ;;  %p6237_p11 = scmp.lt.u32.totalorder %s6233_s9, %s8136_s16 }
 0x216   :  { %p6239_p12 = pnand %p6237_p11, %p6234_p10 }
 0x218   :  { %6242 = shalt.err (!%p6239_p12)
}
 0x219   :  { %s6243_s6 = scalar_lea.vmem %s301_s11, 16  ;;  %s6247_s0 = scalar_lea.vmem %s301_s11, 32 }
 0x21a   :  { %p6244_p13 = scmp.ne.s32.totalorder %s301_s11, %s6243_s6  ;;  %p6248_p0 = scmp.lt.s32.totalorder %s301_s11, %s301_s11 }
 0x21b   :  { %p6249_p1 = scmp.lt.s32.totalorder %s6247_s0, %s6243_s6 }
 0x21d   :  { %p6250_p2 = por %p6249_p1, %p6248_p0 }
 0x21f   :  { %p6251_p3 = pnand %p6250_p2, %p6244_p13 }
 0x221   :  { %6254 = shalt.err (!%p6251_p3)
}
 0x222   :  { %s8137_s30 = sld [smem:[#allocation90_spill]]  ;;  %s6550_s18 = smov [#allocation31]  }
 0x223   :  { %303 = dma.hbm_to_vmem [thread:$0]  %s8136_s16, 16, %s301_s11, [#allocation27]  }
 0x224   :  { %s320_s22 = sshll.u32 %s6550_s18, 4  ;;  %s6551_s5 = smov [#allocation34]   ;;  %s321_s22 = int_to_ptr.vmem [resolvable:$true] %s320_s22 }
 0x225   :  { %s342_s26 = sshll.u32 %s6551_s5, 4  ;;  %s343_s26 = int_to_ptr.vmem [resolvable:$true] %s342_s26 }
 0x228   :  { %s6255_s23 = scalar_lea.hbm %s8137_s30, 16 }
 0x229   :  { %p6256_p4 = scmp.ne.s32.totalorder %s8137_s30, %s6255_s23  ;;  %p6259_p5 = scmp.lt.u32.totalorder %s6255_s23, %s8137_s30 }
 0x22b   :  { %p6261_p6 = pnand %p6259_p5, %p6256_p4 }
 0x22d   :  { %6264 = shalt.err (!%p6261_p6)
}
 0x22e   :  { %s6265_s12 = scalar_lea.vmem %s321_s22, 16  ;;  %s6269_s13 = scalar_lea.vmem %s321_s22, 32 }
 0x22f   :  { %p6266_p7 = scmp.ne.s32.totalorder %s321_s22, %s6265_s12  ;;  %p6270_p8 = scmp.lt.s32.totalorder %s321_s22, %s321_s22 }
 0x230   :  { %p6271_p9 = scmp.lt.s32.totalorder %s6269_s13, %s6265_s12 }
 0x232   :  { %p6272_p10 = por %p6271_p9, %p6270_p8 }
 0x234   :  { %p6273_p11 = pnand %p6272_p10, %p6266_p7 }
 0x236   :  { %6276 = shalt.err (!%p6273_p11)
}
 0x237   :  { %s8138_s19 = sld [smem:[#allocation91_spill]] }
 0x238   :  { %323 = dma.hbm_to_vmem [thread:$0]  %s8137_s30, 16, %s321_s22, [#allocation30]  }
 0x23d   :  { %s6277_s28 = scalar_lea.hbm %s8138_s19, 16 }
 0x23e   :  { %p6278_p12 = scmp.ne.s32.totalorder %s8138_s19, %s6277_s28  ;;  %p6281_p13 = scmp.lt.u32.totalorder %s6277_s28, %s8138_s19 }
 0x240   :  { %p6283_p0 = pnand %p6281_p13, %p6278_p12 }
 0x242   :  { %6286 = shalt.err (!%p6283_p0)
}
 0x243   :  { %s6287_s3 = scalar_lea.vmem %s343_s26, 16  ;;  %s6291_s1 = scalar_lea.vmem %s343_s26, 32 }
 0x244   :  { %p6288_p1 = scmp.ne.s32.totalorder %s343_s26, %s6287_s3  ;;  %p6292_p2 = scmp.lt.s32.totalorder %s343_s26, %s343_s26 }
 0x245   :  { %p6293_p3 = scmp.lt.s32.totalorder %s6291_s1, %s6287_s3 }
 0x247   :  { %p6294_p4 = por %p6293_p3, %p6292_p2 }
 0x249   :  { %p6295_p5 = pnand %p6294_p4, %p6288_p1 }
 0x24b   :  { %6298 = shalt.err (!%p6295_p5)
}
 0x24c   :  { %s8139_s2 = sld [smem:[#allocation92_spill]]  ;;  %s6552_s7 = smov [#allocation37]  }
 0x24d   :  { %345 = dma.hbm_to_vmem [thread:$0]  %s8138_s19, 16, %s343_s26, [#allocation33]  }
 0x24e   :  { %s364_s17 = sshll.u32 %s6552_s7, 4  ;;  %s6553_s14 = smov [#allocation40]   ;;  %s365_s17 = int_to_ptr.vmem [resolvable:$true] %s364_s17 }
 0x24f   :  { %s386_s10 = sshll.u32 %s6553_s14, 4  ;;  %s387_s10 = int_to_ptr.vmem [resolvable:$true] %s386_s10 }
 0x252   :  { %s6299_s4 = scalar_lea.hbm %s8139_s2, 32 }
 0x253   :  { %p6300_p6 = scmp.ne.s32.totalorder %s8139_s2, %s6299_s4  ;;  %p6303_p7 = scmp.lt.u32.totalorder %s6299_s4, %s8139_s2 }
 0x255   :  { %p6305_p8 = pnand %p6303_p7, %p6300_p6 }
 0x257   :  { %6308 = shalt.err (!%p6305_p8)
}
 0x258   :  { %s6309_s29 = scalar_lea.vmem %s365_s17, 32  ;;  %p6314_p10 = scmp.lt.s32.totalorder %s365_s17, %s365_s17 }
 0x259   :  { %p6310_p9 = scmp.ne.s32.totalorder %s365_s17, %s6309_s29  ;;  %p6315_p11 = scmp.lt.s32.totalorder %s6309_s29, %s6309_s29 }
 0x25b   :  { %p6316_p12 = por %p6315_p11, %p6314_p10 }
 0x25d   :  { %p6317_p13 = pnand %p6316_p12, %p6310_p9 }
 0x25f   :  { %6320 = shalt.err (!%p6317_p13)
}
 0x260   :  { %s8140_s27 = sld [smem:[#allocation93_spill]] }
 0x261   :  { %367 = dma.hbm_to_vmem [thread:$0]  %s8139_s2, 32, %s365_s17, [#allocation36]  }
 0x266   :  { %s6321_s11 = scalar_lea.hbm %s8140_s27, 16 }
 0x267   :  { %p6322_p0 = scmp.ne.s32.totalorder %s8140_s27, %s6321_s11  ;;  %p6325_p1 = scmp.lt.u32.totalorder %s6321_s11, %s8140_s27 }
 0x269   :  { %p6327_p2 = pnand %p6325_p1, %p6322_p0 }
 0x26b   :  { %6330 = shalt.err (!%p6327_p2)
}
 0x26c   :  { %s6331_s21 = scalar_lea.vmem %s387_s10, 16  ;;  %s6335_s15 = scalar_lea.vmem %s387_s10, 32 }
 0x26d   :  { %p6332_p3 = scmp.ne.s32.totalorder %s387_s10, %s6331_s21  ;;  %p6336_p4 = scmp.lt.s32.totalorder %s387_s10, %s387_s10 }
 0x26e   :  { %p6337_p5 = scmp.lt.s32.totalorder %s6335_s15, %s6331_s21 }
 0x270   :  { %p6338_p6 = por %p6337_p5, %p6336_p4 }
 0x272   :  { %p6339_p7 = pnand %p6338_p6, %p6332_p3 }
 0x274   :  { %6342 = shalt.err (!%p6339_p7)
}
 0x275   :  { %s8141_s20 = sld [smem:[#allocation94_spill]]  ;;  %s6554_s16 = smov [#allocation43]  }
 0x276   :  { %389 = dma.hbm_to_vmem [thread:$0]  %s8140_s27, 16, %s387_s10, [#allocation39]  }
 0x277   :  { %s406_s9 = sshll.u32 %s6554_s16, 4  ;;  %s6555_s6 = smov [#allocation46]   ;;  %s407_s9 = int_to_ptr.vmem [resolvable:$true] %s406_s9 }
 0x278   :  { %s428_s0 = sshll.u32 %s6555_s6, 4  ;;  %s429_s0 = int_to_ptr.vmem [resolvable:$true] %s428_s0 }
 0x27b   :  { %s6343_s30 = scalar_lea.hbm %s8141_s20, 16 }
 0x27c   :  { %p6344_p8 = scmp.ne.s32.totalorder %s8141_s20, %s6343_s30  ;;  %p6347_p9 = scmp.lt.u32.totalorder %s6343_s30, %s8141_s20 }
 0x27e   :  { %p6349_p10 = pnand %p6347_p9, %p6344_p8 }
 0x280   :  { %6352 = shalt.err (!%p6349_p10)
}
 0x281   :  { %s6353_s18 = scalar_lea.vmem %s407_s9, 16  ;;  %s6357_s22 = scalar_lea.vmem %s407_s9, 32 }
 0x282   :  { %p6354_p11 = scmp.ne.s32.totalorder %s407_s9, %s6353_s18  ;;  %p6358_p12 = scmp.lt.s32.totalorder %s407_s9, %s407_s9 }
 0x283   :  { %p6359_p13 = scmp.lt.s32.totalorder %s6357_s22, %s6353_s18 }
 0x285   :  { %p6360_p0 = por %p6359_p13, %p6358_p12 }
 0x287   :  { %p6361_p1 = pnand %p6360_p0, %p6354_p11 }
 0x289   :  { %6364 = shalt.err (!%p6361_p1)
}
 0x28a   :  { %s8142_s5 = sld [smem:[#allocation95_spill]] }
 0x28b   :  { %409 = dma.hbm_to_vmem [thread:$0]  %s8141_s20, 16, %s407_s9, [#allocation42]  }
 0x290   :  { %s6365_s26 = scalar_lea.hbm %s8142_s5, 32 }
 0x291   :  { %p6366_p2 = scmp.ne.s32.totalorder %s8142_s5, %s6365_s26  ;;  %p6369_p3 = scmp.lt.u32.totalorder %s6365_s26, %s8142_s5 }
 0x293   :  { %p6371_p4 = pnand %p6369_p3, %p6366_p2 }
 0x295   :  { %6374 = shalt.err (!%p6371_p4)
}
 0x296   :  { %s6375_s23 = scalar_lea.vmem %s429_s0, 32  ;;  %p6380_p6 = scmp.lt.s32.totalorder %s429_s0, %s429_s0 }
 0x297   :  { %p6376_p5 = scmp.ne.s32.totalorder %s429_s0, %s6375_s23  ;;  %p6381_p7 = scmp.lt.s32.totalorder %s6375_s23, %s6375_s23 }
 0x299   :  { %p6382_p8 = por %p6381_p7, %p6380_p6 }
 0x29b   :  { %p6383_p9 = pnand %p6382_p8, %p6376_p5 }
 0x29d   :  { %6386 = shalt.err (!%p6383_p9)
}
 0x29e   :  { %431 = dma.hbm_to_vmem [thread:$0]  %s8142_s5, 32, %s429_s0, [#allocation45]  }
 0x29f   :  { %s6556_s12 = smov [#allocation49]   ;;  %s6557_s19 = smov [#allocation52]  }
 0x2a0   :  { %s450_s13 = sshll.u32 %s6556_s12, 4  ;;  %s470_s28 = sshll.u32 %s6557_s19, 4  ;;  %s451_s13 = int_to_ptr.vmem [resolvable:$true] %s450_s13  ;;  %s471_s28 = int_to_ptr.vmem [resolvable:$true] %s470_s28 }
 0x2a1   :  { %s6387_s3 = scalar_lea.hbm %s6767_s8, 16 }
 0x2a2   :  { %p6388_p10 = scmp.ne.s32.totalorder %s6767_s8, %s6387_s3  ;;  %p6391_p11 = scmp.lt.u32.totalorder %s6387_s3, %s6767_s8 }
 0x2a4   :  { %p6393_p12 = pnand %p6391_p11, %p6388_p10 }
 0x2a6   :  { %6396 = shalt.err (!%p6393_p12)
}
 0x2a7   :  { %s6397_s1 = scalar_lea.vmem %s451_s13, 16  ;;  %s6401_s2 = scalar_lea.vmem %s451_s13, 32 }
 0x2a8   :  { %p6398_p13 = scmp.ne.s32.totalorder %s451_s13, %s6397_s1  ;;  %p6402_p0 = scmp.lt.s32.totalorder %s451_s13, %s451_s13 }
 0x2a9   :  { %p6403_p1 = scmp.lt.s32.totalorder %s6401_s2, %s6397_s1 }
 0x2ab   :  { %p6404_p2 = por %p6403_p1, %p6402_p0 }
 0x2ad   :  { %p6405_p3 = pnand %p6404_p2, %p6398_p13 }
 0x2af   :  { %6408 = shalt.err (!%p6405_p3)
}
 0x2b0   :  { %453 = dma.hbm_to_vmem [thread:$0]  %s6767_s8, 16, %s451_s13, [#allocation48]  }
 0x2b1   :  { %s6409_s7 = scalar_lea.hbm %s6777_s25, 16 }
 0x2b2   :  { %p6410_p4 = scmp.ne.s32.totalorder %s6777_s25, %s6409_s7  ;;  %p6413_p5 = scmp.lt.u32.totalorder %s6409_s7, %s6777_s25 }
 0x2b4   :  { %p6415_p6 = pnand %p6413_p5, %p6410_p4 }
 0x2b6   :  { %6418 = shalt.err (!%p6415_p6)
}
 0x2b7   :  { %s6419_s17 = scalar_lea.vmem %s471_s28, 16  ;;  %s6423_s14 = scalar_lea.vmem %s471_s28, 32 }
 0x2b8   :  { %p6420_p7 = scmp.ne.s32.totalorder %s471_s28, %s6419_s17  ;;  %p6424_p8 = scmp.lt.s32.totalorder %s471_s28, %s471_s28 }
 0x2b9   :  { %p6425_p9 = scmp.lt.s32.totalorder %s6423_s14, %s6419_s17 }
 0x2bb   :  { %p6426_p10 = por %p6425_p9, %p6424_p8 }
 0x2bd   :  { %p6427_p11 = pnand %p6426_p10, %p6420_p7 }
 0x2bf   :  { %6430 = shalt.err (!%p6427_p11)
}
 0x2c0   :  { %473 = dma.hbm_to_vmem [thread:$0]  %s6777_s25, 16, %s471_s28, [#allocation51]  }
 0x2c1   :  { %6441 = dma.done.wait [#allocation3], 16  }
 0x2c2   :  { %6442 = vsyncadd [#allocation3], 4294967280 }
 0x2c3   :  { %6443 = dma.done.wait [#allocation6], 64  }
 0x2c4   :  { %6444 = vsyncadd [#allocation6], 4294967232 }
 0x2c5   :  { %6445 = dma.done.wait [#allocation9], 32  }
 0x2c6   :  { %6446 = vsyncadd [#allocation9], 4294967264 }
 0x2c7   :  { %6447 = dma.done.wait [#allocation12], 2080  }
 0x2c8   :  { %6448 = vsyncadd [#allocation12], 4294965216 }
 0x2c9   :  { %6449 = dma.done.wait [#allocation15], 2064  }
 0x2ca   :  { %6450 = vsyncadd [#allocation15], 4294965232 }
 0x2cb   :  { %6451 = dma.done.wait [#allocation18], 32  }
 0x2cc   :  { %6452 = vsyncadd [#allocation18], 4294967264 }
 0x2cd   :  { %6453 = dma.done.wait [#allocation21], 32  }
 0x2ce   :  { %6454 = vsyncadd [#allocation21], 4294967264 }
 0x2cf   :  { %6455 = dma.done.wait [#allocation24], 3120  }
 0x2d0   :  { %6456 = vsyncadd [#allocation24], 4294964176 }
 0x2d1   :  { %6457 = dma.done.wait [#allocation27], 1040  }
 0x2d2   :  { %6458 = vsyncadd [#allocation27], 4294966256 }
 0x2d3   :  { %6459 = dma.done.wait [#allocation30], 32  }
 0x2d4   :  { %6460 = vsyncadd [#allocation30], 4294967264 }
 0x2d5   :  { %6461 = dma.done.wait [#allocation33], 1040  }
 0x2d6   :  { %6462 = vsyncadd [#allocation33], 4294966256 }
 0x2d7   :  { %6463 = dma.done.wait [#allocation36], 2080  }
 0x2d8   :  { %6464 = vsyncadd [#allocation36], 4294965216 }
 0x2d9   :  { %6465 = dma.done.wait [#allocation39], 1040  }
 0x2da   :  { %6466 = vsyncadd [#allocation39], 4294966256 }
 0x2db   :  { %6467 = dma.done.wait [#allocation42], 32  }
 0x2dc   :  { %6468 = vsyncadd [#allocation42], 4294967264 }
 0x2dd   :  { %6469 = dma.done.wait [#allocation45], 2080  }
 0x2de   :  { %6470 = vsyncadd [#allocation45], 4294965216 }
 0x2df   :  { %6471 = dma.done.wait [#allocation48], 2064  }
 0x2e0   :  { %6472 = vsyncadd [#allocation48], 4294965232 }
 0x2e1   :  { %6473 = dma.done.wait [#allocation51], 32  }
 0x2e2   :  { %6474 = vsyncadd [#allocation51], 4294967264  ;;  %s8143_s25 = sld [smem:[#allocation72_spill]]  ;;  %s8144_s8 = sld [smem:[#allocation77_spill]]  ;;  %v6558_v0 = vmov 0   ;;  %v574_v21 = vlaneseq }
 0x2e3   :  { %5289 = vset.pattern.permute.xlu0 %v6558_v0  ;;  %5290 = vset.pattern.permute.xlu1 %v6558_v0  ;;  %s8145_s10 = sld [smem:[#allocation76_spill]]  ;;  %v6559_v28 = vmov 1.0|1.0   ;;  %s8146_s4 = sld [smem:[#allocation80_spill]] }
 0x2e4   :  { %1336 = vmatprep.mubr.bf16.mxu1 %v6558_v0  ;;  %v6964_v22 = vand.u32 127, %v574_v21  ;;  %s8147_s29 = sld [smem:[#allocation78_spill]]  ;;  %s8148_s27 = sld [smem:[#allocation74_spill]] }
 0x2e5   :  { %s8159_s11 = sld [smem:[#allocation81_spill]]  ;;  %s8160_s21 = sld [smem:[#allocation75_spill]] }
 0x2e6   :  { %v6967_v25 = vadd.s32 128, %v6964_v22  ;;  %s8241_s15 = sld [smem:[#allocation73_spill]]  ;;  %s6431_s0 = scalar_lea.hbm %s6782_s24, 16 }
 0x2e7   :  { %p6432_p12 = scmp.ne.s32.totalorder %s6782_s24, %s6431_s0  ;;  %p6435_p13 = scmp.lt.u32.totalorder %s6431_s0, %s6782_s24 }
 0x2e8   :  { %v832_v1 = vld [vmem:[%s8143_s25] sm:$0xff]  ;;  %v834_v2 = vld [vmem:[%s8143_s25 + $0x10] sm:$0xff]  ;;  %v833_v3 = vld [vmem:[%s8143_s25 + $0x8] sm:$0xff] }
 0x2e9   :  { %840 = vperm.xlu0 %5289, %v832_v1   ;;  %846 = vperm.xlu1 %5290, %v834_v2   ;;  %v835_v4 = vld [vmem:[%s8143_s25 + $0x18] sm:$0xff]  ;;  %v5291_v5 = vld [vmem:[%s8144_s8 + $0x40] sm:$0xff]   ;;  %v5293_v7 = vld [vmem:[%s8144_s8 + $0x48] sm:$0xff]   ;;  %p6437_p0 = pnand %p6435_p13, %p6432_p12 }
 0x2ea   :  { %v5292_v6 = vld [vmem:[%s8144_s8] sm:$0xff]   ;;  %4792 = vmatprep.subr.bf16.mxu0 %v5291_v5  ;;  %v5294_v8 = vld [vmem:[%s8144_s8 + $0x8] sm:$0xff]   ;;  %v5295_v9 = vld [vmem:[%s8144_s8 + $0x50] sm:$0xff]  }
 0x2eb   :  { %4793 = vmatpush3.bf16.msra.mxu0 %v5292_v6  ;;  %v5296_v10 = vld [vmem:[%s8144_s8 + $0x10] sm:$0xff]   ;;  %v5297_v11 = vld [vmem:[%s8144_s8 + $0x58] sm:$0xff]   ;;  %v5299_v13 = vld [vmem:[%s8144_s8 + $0x60] sm:$0xff]  }
 0x2ec   :  { %4794 = vmatprep.subr.bf16.mxu0 %v5293_v7  ;;  %v5298_v12 = vld [vmem:[%s8144_s8 + $0x18] sm:$0xff]   ;;  %v5300_v14 = vld [vmem:[%s8144_s8 + $0x20] sm:$0xff]   ;;  %v5301_v15 = vld [vmem:[%s8144_s8 + $0x68] sm:$0xff]  }
 0x2ed   :  { %843 = vperm.xlu0 %5289, %v833_v3   ;;  %849 = vperm.xlu1 %5290, %v835_v4   ;;  %v5302_v16 = vld [vmem:[%s8144_s8 + $0x28] sm:$0xff]   ;;  %v5303_v17 = vld [vmem:[%s8144_s8 + $0x70] sm:$0xff]   ;;  %v5305_v19 = vld [vmem:[%s8144_s8 + $0x78] sm:$0xff]  }
 0x2ee   :  { %v5304_v18 = vld [vmem:[%s8144_s8 + $0x30] sm:$0xff]   ;;  %v5306_v20 = vld [vmem:[%s8144_s8 + $0x38] sm:$0xff]   ;;  %v899_v30 = vld [vmem:[%s8145_s10] sm:$0xff] }
 0x2ef   :  { %4795 = vmatpush3.bf16.msra.mxu0 %v5294_v8  ;;  %v900_v34 = vld [vmem:[%s8145_s10 + $0x8] sm:$0xff]  ;;  %v901_v40 = vld [vmem:[%s8145_s10 + $0x10] sm:$0xff]  ;;  %v902_v47 = vld [vmem:[%s8145_s10 + $0x18] sm:$0xff] }
 0x2f0   :  { %4796 = vmatprep.subr.bf16.mxu0 %v5295_v9  ;;  %v5307_v49 = vld [vmem:[%s8146_s4 + $0x4] ss:$12 sps:$4 sm:$0xff]   ;;  %v5309_v50 = vld [vmem:[%s8146_s4] ss:$12 sps:$4 sm:$0xff]   ;;  %v5310_v51 = vld [vmem:[%s8146_s4 + $0x1c] ss:$12 sps:$4 sm:$0xff]  }
 0x2f1   :  { %1304 = vmatprep.subr.bf16.mxu1 %v5307_v49  ;;  %v5312_v52 = vld [vmem:[%s8146_s4 + $0x18] ss:$12 sps:$4 sm:$0xff]   ;;  %v5313_v6 = vld [vmem:[%s8146_s4 + $0x34] ss:$12 sps:$4 sm:$0xff]   ;;  %v5315_v7 = vld [vmem:[%s8146_s4 + $0x30] ss:$12 sps:$4 sm:$0xff]  }
 0x2f2   :  { %1305 = vmatpush1.bf16.msra.mxu1 %v5309_v50  ;;  %v5316_v8 = vld [vmem:[%s8146_s4 + $0x8] ss:$12 sps:$4 sm:$0xff]   ;;  %v5317_v9 = vld [vmem:[%s8146_s4 + $0x4c] ss:$12 sps:$4 sm:$0xff]   ;;  %v4594_v49 = vld [vmem:[%s8147_s29] ss:$0 sm:$0xff] }
 0x2f3   :  { %4797 = vmatpush3.bf16.msra.mxu0 %v5296_v10  ;;  %1306 = vmatprep.subr.bf16.mxu1 %v5310_v51  ;;  %v5319_v10 = vld [vmem:[%s8146_s4 + $0x48] ss:$12 sps:$4 sm:$0xff]  }
 0x2f4   :  { %4798 = vmatprep.subr.bf16.mxu0 %v5297_v11  ;;  %v5320_v11 = vld [vmem:[%s8146_s4 + $0x20] ss:$12 sps:$4 sm:$0xff]  }
 0x2f6   :  { %1307 = vmatpush1.bf16.msra.mxu1 %v5312_v52 }
 0x2f7   :  { %4799 = vmatpush3.bf16.msra.mxu0 %v5298_v12  ;;  %1308 = vmatprep.subr.bf16.mxu1 %v5313_v6  ;;  %v836_v12 = vld [vmem:[%s8143_s25 + $0x20] sm:$0xff] }
 0x2f8   :  { %4800 = vmatprep.subr.bf16.mxu0 %v5299_v13  ;;  %v5321_v13 = vld [vmem:[%s8146_s4 + $0x64] ss:$12 sps:$4 sm:$0xff]  }
 0x2fa   :  { %1309 = vmatpush1.bf16.msra.mxu1 %v5315_v7 }
 0x2fb   :  { %4801 = vmatpush3.bf16.msra.mxu0 %v5300_v14  ;;  %1310 = vmatprep.subr.bf16.mxu1 %v5317_v9  ;;  %v5323_v14 = vld [vmem:[%s8146_s4 + $0x60] ss:$12 sps:$4 sm:$0xff]   ;;  %v7056_v9 = vshrl.u32 %v574_v21, 7 }
 0x2fc   :  { %4802 = vmatprep.subr.bf16.mxu0 %v5301_v15  ;;  %v5324_v15 = vld [vmem:[%s8146_s4 + $0x38] ss:$12 sps:$4 sm:$0xff]  }
 0x2fe   :  { %1311 = vmatpush1.bf16.msra.mxu1 %v5319_v10 }
 0x2ff   :  { %4803 = vmatpush3.bf16.msra.mxu0 %v5302_v16  ;;  %1312 = vmatprep.subr.bf16.mxu1 %v5321_v13  ;;  %v5325_v16 = vld [vmem:[%s8146_s4 + $0x7c] ss:$12 sps:$4 sm:$0xff]  }
 0x300   :  { %4804 = vmatprep.subr.bf16.mxu0 %v5303_v17  ;;  %v5327_v17 = vld [vmem:[%s8146_s4 + $0x78] ss:$12 sps:$4 sm:$0xff]  }
 0x302   :  { %1313 = vmatpush1.bf16.msra.mxu1 %v5323_v14 }
 0x303   :  { %4805 = vmatpush3.bf16.msra.mxu0 %v5304_v18  ;;  %1314 = vmatprep.subr.bf16.mxu1 %v5325_v16  ;;  %v5328_v18 = vld [vmem:[%s8146_s4 + $0x50] ss:$12 sps:$4 sm:$0xff]   ;;  %v6560_v16 = vmov 0.0  }
 0x304   :  { %4806 = vmatprep.subr.bf16.mxu0 %v5305_v19  ;;  %v5329_v19 = vld [vmem:[%s8146_s4 + $0x94] ss:$12 sps:$4 sm:$0xff]  }
 0x306   :  { %1315 = vmatpush1.bf16.msra.mxu1 %v5327_v17 }
 0x307   :  { %4807 = vmatpush3.bf16.msra.mxu0 %v5306_v20  ;;  %v5331_v20 = vld [vmem:[%s8146_s4 + $0x90] ss:$12 sps:$4 sm:$0xff]   ;;  %1316 = vmatprep.subr.bf16.mxu1 %v5329_v19 }
 0x308   :  { %4992 = vmatprep.subr.bf16.mxu0 %v5316_v8 }
 0x30a   :  { %1317 = vmatpush1.bf16.msra.mxu1 %v5331_v20 }
 0x368   :  { %v841_v23 = vpop.permute.xlu0 %840  ;;  %v847_v24 = vpop.permute.xlu1 %846 }
 0x369   :  { %vm862_vm0 = vcmp.eq.s32.totalorder %v6967_v25, %v847_v24  ;;  %vm858_vm2 = vcmp.eq.s32.totalorder %v6967_v25, %v841_v23  ;;  %vm857_vm5 = vcmp.eq.s32.totalorder %v6964_v22, %v841_v23  ;;  %vm861_vm9 = vcmp.eq.s32.totalorder %v6964_v22, %v847_v24  ;;  %v5332_v23 = vld [vmem:[%s8146_s4 + $0x68] ss:$12 sps:$4 sm:$0xff]  }
 0x36a   :  { %v837_v24 = vld [vmem:[%s8143_s25 + $0x28] sm:$0xff] }
 0x36c   :  { %v844_v26 = vpop.permute.xlu0 %843  ;;  %v850_v27 = vpop.permute.xlu1 %849 }
 0x36d   :  { %vm859_vm1 = vcmp.eq.s32.totalorder %v6964_v22, %v844_v26  ;;  %vm860_vm3 = vcmp.eq.s32.totalorder %v6967_v25, %v844_v26  ;;  %vm864_vm4 = vcmp.eq.s32.totalorder %v6967_v25, %v850_v27  ;;  %vm863_vm10 = vcmp.eq.s32.totalorder %v6964_v22, %v850_v27  ;;  %v5333_v26 = vld [vmem:[%s8146_s4 + $0xac] ss:$12 sps:$4 sm:$0xff]   ;;  %v5335_v27 = vld [vmem:[%s8146_s4 + $0xa8] ss:$12 sps:$4 sm:$0xff]  }
 0x36e   :  { %vm4582_vm6 = vmpackc.low %vm860_vm3, %vm858_vm2  ;;  %1318 = vmatprep.subr.bf16.mxu1 %v5333_v26  ;;  %vm581_vm2 = vcmp.ge.s32.totalorder %v6964_v22, 32  ;;  %vm582_vm3 = vcmp.lt.s32.totalorder %v6964_v22, 64 }
 0x36f   :  { %4583 = vmatprep.mubr.msk.bf16.mxu0 %vm4582_vm6, %v6559_v28  ;;  %vm4584_vm7 = vmpackc.low %vm859_vm1, %vm857_vm5  ;;  %1319 = vmatpush1.bf16.msra.mxu1 %v5335_v27  ;;  %vm587_vm5 = vcmp.lt.s32.totalorder %v6964_v22, 96  ;;  %vm577_vm6 = vcmp.lt.s32.totalorder %v6964_v22, 32 }
 0x370   :  { %4585 = vmatmul.mubr.msk.bf16.vlgmr.msra.gmra.mrb[0].mxu0 %vm4584_vm7, %v6559_v28  ;;  %vm4586_vm8 = vmpackc.low %vm864_vm4, %vm862_vm0  ;;  %vm586_vm4 = vcmp.ge.s32.totalorder %v6964_v22, 64  ;;  %v7075_v17 = vsel %vm577_vm6, 1.0, %v6560_v16 }
 0x371   :  { %4587 = vmatprep.mubr.msk.bf16.mxu0 %vm4586_vm8, %v6559_v28  ;;  %vm4588_vm11 = vmpackc.low %vm863_vm10, %vm861_vm9  ;;  %4993 = vmatpush3.bf16.msra.mxu0 %v5316_v8  ;;  %vm591_vm9 = vcmp.ge.s32.totalorder %v6964_v22, 96 }
 0x372   :  { %4994 = vmatprep.subr.bf16.mxu0 %v5320_v11  ;;  %vm583_vm7 = vmand %vm581_vm2, %vm582_vm3  ;;  %v7084_v26 = vsel %vm591_vm9, 1.0, %v6560_v16  ;;  %vm8099_vm3 = vcmask 261120  }
 0x373   :  { %vm588_vm8 = vmand %vm586_vm4, %vm587_vm5 }
 0x375   :  { %4995 = vmatpush3.bf16.msra.mxu0 %v5320_v11 }
 0x376   :  { %4996 = vmatprep.subr.bf16.mxu0 %v5324_v15 }
 0x378   :  { %4589 = vmatmul.mubr.msk.bf16.gmra.mrb[4].mxu0 %vm4588_vm11, %v6559_v28 }
 0x379   :  { %4997 = vmatpush3.bf16.msra.mxu0 %v5324_v15 }
 0x37a   :  { %4998 = vmatprep.subr.bf16.mxu0 %v5328_v18 }
 0x37d   :  { %4999 = vmatpush3.bf16.msra.mxu0 %v5328_v18 }
 0x37e   :  { %5000 = vmatprep.subr.bf16.mxu0 %v5332_v23 }
 0x381   :  { %5001 = vmatpush3.bf16.msra.mxu0 %v5332_v23  ;;  %v7078_v23 = vsel %vm583_vm7, 1.0, %v6560_v16 }
 0x443   :  { %v4808_v29 = vpop.f32.mrb[0].mxu0 }
 0x444   :  { %v4809_v31 = vpop.f32.mrb[1].mxu0 }
 0x445   :  { %v4810_v32 = vadd.f32 %v4809_v31, %v4808_v29  ;;  %v4811_v33 = vpop.f32.mrb[2].mxu0  ;;  %v5336_v29 = vld [vmem:[%s8146_s4 + $0x80] ss:$12 sps:$4 sm:$0xff]   ;;  %v5338_v31 = vld [vmem:[%s8146_s4 + $0xb0] ss:$12 sps:$4 sm:$0xff]  }
 0x446   :  { %v4812_v35 = vpop.f32.mrb[3].mxu0  ;;  %5002 = vmatprep.subr.bf16.mxu0 %v5336_v29 }
 0x447   :  { %v6983_v36 = vadd.f32 %v4810_v32, %v899_v30  ;;  %v4813_v37 = vadd.f32 %v4812_v35, %v4811_v33  ;;  %5003 = vmatpush3.bf16.msra.mxu0 %v5336_v29  ;;  %v5337_v30 = vld [vmem:[%s8146_s4 + $0x98] ss:$12 sps:$4 sm:$0xff]  }
 0x448   :  { %5004 = vmatprep.subr.bf16.mxu0 %v5337_v30 }
 0x449   :  { %v6985_v38 = vadd.f32 %v4813_v37, %v900_v34  ;;  %1058 = vadd.xlane.f32.xlu0 %v6983_v36 }
 0x44b   :  { %v4814_v39 = vpop.f32.mrb[4].mxu0  ;;  %1060 = vadd.xlane.f32.xlu1 %v6985_v38  ;;  %5005 = vmatpush3.bf16.msra.mxu0 %v5337_v30 }
 0x44c   :  { %v4815_v41 = vpop.f32.mrb[5].mxu0  ;;  %5006 = vmatprep.subr.bf16.mxu0 %v5338_v31 }
 0x44d   :  { %v4816_v42 = vadd.f32 %v4815_v41, %v4814_v39  ;;  %v4817_v43 = vpop.f32.mrb[6].mxu0 }
 0x44e   :  { %v4818_v44 = vpop.f32.mrb[7].mxu0 }
 0x44f   :  { %v6990_v45 = vadd.f32 %v4816_v42, %v901_v40  ;;  %v4819_v46 = vadd.f32 %v4818_v44, %v4817_v43  ;;  %5007 = vmatpush3.bf16.msra.mxu0 %v5338_v31 }
 0x451   :  { %1062 = vadd.xlane.f32.xlu0 %v6990_v45  ;;  %v6994_v48 = vadd.f32 %v4819_v46, %v902_v47 }
 0x455   :  { %1064 = vadd.xlane.f32.xlu0 %v6994_v48 }
 0x4d6   :  { %v1059_v53 = vpop.xlane.xlu0 %1058 }
 0x4d7   :  { %v1067_v54 = vmul.f32 0.0078125, %v1059_v53 }
 0x4d8   :  { %v1061_v55 = vpop.xlane.xlu1 %1060 }
 0x4d9   :  { %v1068_v56 = vmul.f32 0.0078125, %v1061_v55  ;;  %v7002_v57 = vsub.f32 %v6983_v36, %v1067_v54  ;;  %v4595_v55 = vld [vmem:[#allocation2] ss:$0 sm:$0xff] }
 0x4db   :  { %v1075_v58 = vmul.f32 %v7002_v57, %v7002_v57  ;;  %v7007_v59 = vsub.f32 %v6985_v38, %v1068_v56 }
 0x4dd   :  { %1079 = vadd.xlane.f32.xlu1 %v1075_v58  ;;  %v1076_v60 = vmul.f32 %v7007_v59, %v7007_v59 }
 0x4de   :  { %v1063_v61 = vpop.xlane.xlu0 %1062 }
 0x4df   :  { %v1069_v62 = vmul.f32 0.0078125, %v1063_v61  ;;  %1081 = vadd.xlane.f32.xlu0 %v1076_v60 }
 0x4e1   :  { %v7012_v63 = vsub.f32 %v6990_v45, %v1069_v62 }
 0x4e2   :  { %v1065_v1 = vpop.xlane.xlu0 %1064 }
 0x4e3   :  { %v1070_v2 = vmul.f32 0.0078125, %v1065_v1  ;;  %v1077_v3 = vmul.f32 %v7012_v63, %v7012_v63 }
 0x4e5   :  { %1083 = vadd.xlane.f32.xlu1 %v1077_v3  ;;  %v7017_v4 = vsub.f32 %v6994_v48, %v1070_v2 }
 0x4e7   :  { %v1078_v5 = vmul.f32 %v7017_v4, %v7017_v4 }
 0x4e9   :  { %1085 = vadd.xlane.f32.xlu0 %v1078_v5 }
 0x4f6   :  { %852 = vperm.xlu1 %5290, %v836_v12  }
 0x4ff   :  { %855 = vperm.xlu0 %5289, %v837_v24   ;;  %v7081_v24 = vsel %vm588_vm8, 1.0, %v6560_v16 }
 0x56a   :  { %v1080_v32 = vpop.xlane.xlu1 %1079 }
 0x56b   :  { %v1087_v33 = vmul.f32 0.0078125, %v1080_v32 }
 0x56c   :  { %v1082_v34 = vpop.xlane.xlu0 %1081 }
 0x56d   :  { %v1091_v35 = vadd.f32 1e-05, %v1087_v33  ;;  %v1088_v37 = vmul.f32 0.0078125, %v1082_v34  ;;  %v1171_v34 = vsub.s32 2, %v7056_v9 }
 0x56f   :  { %5507 = vrsqrt.f32 %v1091_v35  ;;  %v1092_v39 = vadd.f32 1e-05, %v1088_v37 }
 0x571   :  { %5509 = vrsqrt.f32 %v1092_v39 }
 0x572   :  { %v1084_v40 = vpop.xlane.xlu1 %1083 }
 0x573   :  { %v1089_v41 = vmul.f32 0.0078125, %v1084_v40 }
 0x575   :  { %v1093_v42 = vadd.f32 1e-05, %v1089_v41 }
 0x576   :  { %v1086_v43 = vpop.xlane.xlu0 %1085  ;;  %v853_v52 = vpop.permute.xlu1 %852 }
 0x577   :  { %5511 = vrsqrt.f32 %v1093_v42  ;;  %v1090_v44 = vmul.f32 0.0078125, %v1086_v43  ;;  %vm866_vm12 = vcmp.eq.s32.totalorder %v6967_v25, %v853_v52  ;;  %vm865_vm15 = vcmp.eq.s32.totalorder %v6964_v22, %v853_v52 }
 0x579   :  { %v5508_v46 = vpop.eup %5507  ;;  %v1094_v47 = vadd.f32 1e-05, %v1090_v44 }
 0x57a   :  { %v1099_v50 = vmul.f32 %v5508_v46, %v7002_v57 }
 0x57b   :  { %v5510_v51 = vpop.eup %5509  ;;  %5513 = vrsqrt.f32 %v1094_v47 }
 0x57c   :  { %v1100_v53 = vmul.f32 %v5510_v51, %v7007_v59  ;;  %v1110_v54 = vmul.f32 %v4594_v49, %v1099_v50 }
 0x57e   :  { %v856_v56 = vpop.permute.xlu0 %855  ;;  %v1111_v58 = vmul.f32 %v4594_v49, %v1100_v53  ;;  %v1121_v60 = vadd.f32 %v4595_v55, %v1110_v54 }
 0x57f   :  { %vm867_vm13 = vcmp.eq.s32.totalorder %v6964_v22, %v856_v56  ;;  %vm868_vm14 = vcmp.eq.s32.totalorder %v6967_v25, %v856_v56 }
 0x580   :  { %vm4590_vm0 = vmpackc.low %vm868_vm14, %vm866_vm12  ;;  %v1122_v57 = vadd.f32 %v4595_v55, %v1111_v58 }
 0x581   :  { %v5512_v61 = vpop.eup %5511  ;;  %4591 = vmatprep.mubr.msk.bf16.mxu0 %vm4590_vm0, %v6559_v28  ;;  %vm4592_vm1 = vmpackc.low %vm867_vm13, %vm865_vm15 }
 0x582   :  { %4593 = vmatmul.mubr.msk.bf16.gmra.mrb[8].mxu0 %vm4592_vm1, %v6559_v28  ;;  %v1125_v59 = vpack.c.bf16 %v1122_v57, %v1121_v60  ;;  %v1101_v62 = vmul.f32 %v5512_v61, %v7012_v63  ;;  %v7059_v28 = vsub.s32 0, %v7056_v9  ;;  %v1159_v63 = vld [vmem:[#allocation5] sm:$0x7] }
 0x583   :  { %v1172_v52 = vrot.slane %v1159_v63, %v1171_v34 }
 0x584   :  { %1337 = vmatmul.mubr.bf16.vlgmr.msra.gmra.mrb[0].mxu1 %v1125_v59  ;;  %5008 = vmatprep.mubr.bf16.mxu0 %v1125_v59  ;;  %v1112_v3 = vmul.f32 %v4594_v49, %v1101_v62  ;;  %v1164_v10 = vrot.slane %v1159_v63, %v7059_v28 }
 0x585   :  { %v5514_v1 = vpop.eup %5513  ;;  %1346 = vmatprep.mubr.bf16.mxu1 %v6558_v0 }
 0x586   :  { %v1102_v2 = vmul.f32 %v5514_v1, %v7017_v4  ;;  %v1123_v6 = vadd.f32 %v4595_v55, %v1112_v3  ;;  %v7064_v4 = vsub.s32 1, %v7056_v9 }
 0x588   :  { %v1113_v5 = vmul.f32 %v4594_v49, %v1102_v2  ;;  %v1168_v12 = vrot.slane %v1159_v63, %v7064_v4 }
 0x58a   :  { %v1124_v7 = vadd.f32 %v4595_v55, %v1113_v5 }
 0x58c   :  { %v1126_v8 = vpack.c.bf16 %v1124_v7, %v1123_v6 }
 0x58e   :  { %1347 = vmatmul.mubr.bf16.gmra.mrb[4].mxu1 %v1126_v8  ;;  %5009 = vmatmul.mubr.bf16.vlgmr.msra.gmra.mrb[12].mxu0 %v1126_v8 }
 0x655   :  { %v4820_v21 = vpop.f32.mrb[8].mxu0 }
 0x656   :  { %v4821_v11 = vpop.f32.mrb[9].mxu0 }
 0x657   :  { %v7072_v13 = vadd.f32 %v4821_v11, %v4820_v21  ;;  %v4823_v14 = vpop.f32.mrb[10].mxu0  ;;  %v1338_v15 = vpop.f32.mrb[0].mxu1 }
 0x658   :  { %v1339_v18 = vadd.f32 %v1338_v15, %v1164_v10  ;;  %v4824_v19 = vpop.f32.mrb[11].mxu0  ;;  %v1340_v20 = vpop.f32.mrb[1].mxu1 }
 0x659   :  { %v7086_v27 = vadd.f32 %v4824_v19, %v4823_v14  ;;  %v1342_v29 = vpop.f32.mrb[2].mxu1  ;;  %v1341_v30 = vadd.f32 %v1340_v20, %v1168_v12 }
 0x65a   :  { %v1343_v31 = vadd.f32 %v1342_v29, %v1164_v10  ;;  %v1344_v32 = vpop.f32.mrb[3].mxu1  ;;  %v1406_v33 = vmul.f32 %v7075_v17, %v1339_v18  ;;  %v1410_v37 = vmul.f32 %v7078_v23, %v1339_v18  ;;  %v1414_v39 = vmul.f32 %v7081_v24, %v1339_v18 }
 0x65b   :  { %v1345_v35 = vadd.f32 %v1344_v32, %v1168_v12  ;;  %v1418_v40 = vmul.f32 %v7084_v26, %v1339_v18 }
 0x65c   :  { %v1407_v41 = vmul.f32 %v7075_v17, %v1343_v31  ;;  %v1411_v42 = vmul.f32 %v7078_v23, %v1343_v31  ;;  %v1415_v43 = vmul.f32 %v7081_v24, %v1343_v31  ;;  %v1419_v44 = vmul.f32 %v7084_v26, %v1343_v31 }
 0x65d   :  { %v1430_v46 = vpack.c.bf16 %v1345_v35, %v1341_v30  ;;  %v7109_v35 = vadd.s32 16, %v7056_v9 }
 0x65e   :  { %v1422_v47 = vpack.c.bf16 %v1407_v41, %v1406_v33  ;;  %v1424_v49 = vpack.c.bf16 %v1411_v42, %v1410_v37  ;;  %v1426_v50 = vpack.c.bf16 %v1415_v43, %v1414_v39  ;;  %v1428_v51 = vpack.c.bf16 %v1419_v44, %v1418_v40  ;;  %v596_v33 = vld [vmem:[%s8148_s27] sm:$0x1] }
 0x65f   :  { %5012 = vmatprep.subr.bf16.mxu1 %v1430_v46  ;;  %vm597_vm10 = vcmp.gt.s32.totalorder %v596_v33, 0  ;;  %v7113_v39 = vadd.s32 8, %v7056_v9  ;;  %v619_v40 = vand.u32 31, %v7109_v35  ;;  %v617_v41 = vand.u32 31, %v7056_v9 }
 0x660   :  { %5013 = vmatpush3.bf16.xpose.msra.mxu1 %v1430_v46  ;;  %5016 = vmatprep.mubr.bf16.mxu1 %v1422_v47  ;;  %v666_v37 = vsel %vm597_vm10, 1, %v6558_v0  ;;  %v7118_v42 = vadd.s32 24, %v7056_v9  ;;  %v7122_v44 = vshra.s32 %v6964_v22, 4 }
 0x661   :  { %v1348_v53 = vpop.f32.mrb[4].mxu1  ;;  %v5010_v54 = vpop.f32.mrb[12].mxu0  ;;  %v670_v43 = vrot.slane %v666_v37, %v7059_v28  ;;  %v618_v46 = vand.u32 31, %v7113_v39  ;;  %v635_v47 = vshra.s32 %v619_v40, 4 }
 0x662   :  { %v1349_v55 = vadd.f32 %v1348_v53, %v1164_v10  ;;  %v1350_v56 = vpop.f32.mrb[5].mxu1  ;;  %v1391_v58 = vpop.f32.mrb[13].mxu0  ;;  %v1400_v60 = vadd.f32 %v5010_v54, %v1172_v52  ;;  %v7133_v53 = vadd.s32 40, %v7056_v9 }
 0x663   :  { %v1351_v57 = vadd.f32 %v1350_v56, %v1168_v12  ;;  %v1352_v61 = vpop.f32.mrb[6].mxu1  ;;  %v5011_v59 = vpop.f32.mrb[14].mxu0  ;;  %v1392_v1 = vadd.f32 %v1391_v58, %v1172_v52  ;;  %vm7135_vm11 = vcmp.eq.s32.totalorder %v670_v43, 1  ;;  %vm652_vm12 = vcmp.eq.s32.totalorder %v635_v47, %v7122_v44 }
 0x664   :  { %v1408_v62 = vmul.f32 %v7075_v17, %v1349_v55  ;;  %v1353_v2 = vadd.f32 %v1352_v61, %v1164_v10  ;;  %v1403_v3 = vadd.f32 %v5011_v59, %v1172_v52  ;;  %v1354_v5 = vpop.f32.mrb[7].mxu1  ;;  %v1394_v6 = vpop.f32.mrb[15].mxu0  ;;  %v1412_v63 = vmul.f32 %v7078_v23, %v1349_v55  ;;  %vm674_vm14 = vmand %vm652_vm12, %vm7135_vm11 }
 0x665   :  { %v1355_v7 = vadd.f32 %v1354_v5, %v1168_v12  ;;  %v1395_v8 = vadd.f32 %v1394_v6, %v1172_v52  ;;  %v1416_v21 = vmul.f32 %v7081_v24, %v1349_v55  ;;  %v1420_v10 = vmul.f32 %v7084_v26, %v1349_v55 }
 0x666   :  { %v1409_v11 = vmul.f32 %v7075_v17, %v1353_v2  ;;  %v1747_v14 = vpack.c.bf16 %v1403_v3, %v1400_v60  ;;  %v1413_v15 = vmul.f32 %v7078_v23, %v1353_v2  ;;  %v1417_v18 = vmul.f32 %v7081_v24, %v1353_v2 }
 0x667   :  { %v1431_v19 = vpack.c.bf16 %v1355_v7, %v1351_v57  ;;  %v1746_v20 = vpack.c.bf16 %v1395_v8, %v1392_v1  ;;  %v1421_v29 = vmul.f32 %v7084_v26, %v1353_v2  ;;  %v620_v52 = vand.u32 31, %v7118_v42 }
 0x668   :  { %v1423_v30 = vpack.c.bf16 %v1409_v11, %v1408_v62  ;;  %v1425_v12 = vpack.c.bf16 %v1413_v15, %v1412_v63  ;;  %v1427_v31 = vpack.c.bf16 %v1417_v18, %v1416_v21  ;;  %v634_v55 = vshra.s32 %v618_v46, 4 }
 0x669   :  { %5014 = vmatprep.subr.bf16.mxu1 %v1431_v19  ;;  %5032 = vmatprep.subr.bf16.mxu0 %v1746_v20  ;;  %v1429_v32 = vpack.c.bf16 %v1421_v29, %v1420_v10  ;;  %v636_v60 = vshra.s32 %v620_v52, 4  ;;  %v622_v57 = vand.u32 31, %v7133_v53  ;;  %v7145_v61 = vadd.s32 56, %v7056_v9 }
 0x66a   :  { %5015 = vmatpush3.bf16.xpose.msra.mxu1 %v1431_v19  ;;  %5033 = vmatpush3.bf16.msra.mxu0 %v1746_v20  ;;  %vm651_vm0 = vcmp.eq.s32.totalorder %v634_v55, %v7122_v44  ;;  %v611_v1 = vadd.s32 80, %v7056_v9  ;;  %v609_v5 = vadd.s32 64, %v7056_v9  ;;  %v6561_v7 = vmov -1e+09  }
 0x66b   :  { %5034 = vmatprep.subr.bf16.mxu0 %v1747_v14  ;;  %vm653_vm1 = vcmp.eq.s32.totalorder %v636_v60, %v7122_v44  ;;  %v638_v2 = vshra.s32 %v622_v57, 4  ;;  %v624_v3 = vand.u32 31, %v7145_v61  ;;  %vm673_vm2 = vmand %vm651_vm0, %vm7135_vm11  ;;  %v690_v63 = vsel %vm674_vm14, 0.0, %v6561_v7 }
 0x66c   :  { %v610_v11 = vadd.s32 72, %v7056_v9  ;;  %vm675_vm5 = vmand %vm653_vm1, %vm7135_vm11  ;;  %v627_v20 = vand.u32 31, %v611_v1  ;;  %v689_v29 = vsel %vm673_vm2, 0.0, %v6561_v7  ;;  %v615_v60 = vadd.s32 112, %v7056_v9 }
 0x66d   :  { %vm655_vm7 = vcmp.eq.s32.totalorder %v638_v2, %v7122_v44  ;;  %v691_v40 = vsel %vm675_vm5, 0.0, %v6561_v7 }
 0x66e   :  { %5035 = vmatpush3.bf16.msra.mxu0 %v1747_v14  ;;  %v612_v14 = vadd.s32 88, %v7056_v9  ;;  %v626_v43 = vand.u32 31, %v610_v11  ;;  %vm677_vm10 = vmand %vm655_vm7, %vm7135_vm11  ;;  %v643_v55 = vshra.s32 %v627_v20, 4  ;;  %v631_v20 = vand.u32 31, %v615_v60 }
 0x670   :  { %v628_v46 = vand.u32 31, %v612_v14  ;;  %vm660_vm14 = vcmp.eq.s32.totalorder %v643_v55, %v7122_v44  ;;  %v647_v55 = vshra.s32 %v631_v20, 4 }
 0x671   :  { %5017 = vmatmul.mubr.bf16.vlgmr.msra.gmra.mrb[8].mxu1 %v1423_v30  ;;  %v640_v30 = vshra.s32 %v624_v3, 4  ;;  %vm7227_vm1 = vmand %vm660_vm14, %vm7135_vm11 }
 0x672   :  { %5020 = vmatprep.mubr.bf16.mxu1 %v1424_v49  ;;  %v7126_v49 = vadd.s32 48, %v7056_v9 }
 0x673   :  { %vm657_vm12 = vcmp.eq.s32.totalorder %v640_v30, %v7122_v44 }
 0x674   :  { %v623_v56 = vand.u32 31, %v7126_v49 }
 0x676   :  { %v639_v59 = vshra.s32 %v623_v56, 4 }
 0x678   :  { %vm656_vm4 = vcmp.eq.s32.totalorder %v639_v59, %v7122_v44 }
 0x679   :  { %5021 = vmatmul.mubr.bf16.gmra.mrb[12].mxu1 %v1425_v12  ;;  %v625_v12 = vand.u32 31, %v609_v5  ;;  %vm7176_vm8 = vmand %vm656_vm4, %vm7135_vm11  ;;  %v693_v5 = vsel %vm677_vm10, 0.0, %v6561_v7 }
 0x67a   :  { %5024 = vmatprep.mubr.bf16.mxu1 %v1426_v50  ;;  %v633_v50 = vshra.s32 %v617_v41, 4  ;;  %v694_v2 = vsel %vm7176_vm8, 0.0, %v6561_v7  ;;  %vm664_vm8 = vcmp.eq.s32.totalorder %v647_v55, %v7122_v44 }
 0x67b   :  { %v641_v56 = vshra.s32 %v625_v12, 4 }
 0x67c   :  { %vm650_vm13 = vcmp.eq.s32.totalorder %v633_v50, %v7122_v44 }
 0x67d   :  { %vm672_vm15 = vmand %vm650_vm13, %vm7135_vm11 }
 0x67e   :  { %v688_v8 = vsel %vm672_vm15, 0.0, %v6561_v7  ;;  %vm679_vm13 = vmand %vm657_vm12, %vm7135_vm11  ;;  %vm658_vm15 = vcmp.eq.s32.totalorder %v641_v56, %v7122_v44 }
 0x67f   :  { %v695_v30 = vsel %vm679_vm13, 0.0, %v6561_v7  ;;  %vm680_vm2 = vmand %vm658_vm15, %vm7135_vm11 }
 0x680   :  { %v696_v56 = vsel %vm680_vm2, 0.0, %v6561_v7  ;;  %vm7279_vm12 = vmand %vm664_vm8, %vm7135_vm11 }
 0x681   :  { %5025 = vmatmul.mubr.bf16.gmra.mrb[16].mxu1 %v1427_v31 }
 0x682   :  { %5028 = vmatprep.mubr.bf16.mxu1 %v1428_v51  ;;  %v7129_v51 = vadd.s32 32, %v7056_v9 }
 0x684   :  { %v621_v58 = vand.u32 31, %v7129_v51 }
 0x686   :  { %v637_v62 = vshra.s32 %v621_v58, 4  ;;  %v613_v58 = vadd.s32 96, %v7056_v9 }
 0x688   :  { %vm654_vm6 = vcmp.eq.s32.totalorder %v637_v62, %v7122_v44 }
 0x689   :  { %5029 = vmatmul.mubr.bf16.gmra.mrb[20].mxu1 %v1429_v32  ;;  %vm7183_vm9 = vmand %vm654_vm6, %vm7135_vm11 }
 0x68a   :  { %v692_v1 = vsel %vm7183_vm9, 0.0, %v6561_v7 }
 0x744   :  { %v5018_v6 = vpop.f32.mrb[8].mxu1 }
 0x745   :  { %v1466_v21 = vpop.f32.mrb[9].mxu1  ;;  %v1531_v15 = vmul.f32 0.17677669, %v5018_v6  ;;  %v642_v6 = vshra.s32 %v626_v43, 4 }
 0x746   :  { %v1529_v18 = vmul.f32 0.17677669, %v1466_v21  ;;  %v5019_v19 = vpop.f32.mrb[10].mxu1 }
 0x747   :  { %v1469_v10 = vpop.f32.mrb[11].mxu1  ;;  %v1532_v31 = vmul.f32 0.17677669, %v5019_v19  ;;  %v7191_v52 = vadd.f32 %v1531_v15, %v690_v63  ;;  %v614_v63 = vadd.s32 104, %v7056_v9  ;;  %v629_v19 = vand.u32 31, %v613_v58 }
 0x748   :  { %v1530_v32 = vmul.f32 0.17677669, %v1469_v10  ;;  %v7170_v33 = vadd.f32 %v1529_v18, %v688_v8  ;;  %v644_v8 = vshra.s32 %v628_v46, 4  ;;  %v616_v10 = vadd.s32 120, %v7056_v9 }
 0x749   :  { %v7200_v62 = vadd.f32 %v1532_v31, %v691_v40  ;;  %v1568_v15 = vsel %vm8099_vm3, %v7191_v52, -inf  ;;  %vm659_vm0 = vcmp.eq.s32.totalorder %v642_v6, %v7122_v44  ;;  %v630_v40 = vand.u32 31, %v614_v63 }
 0x74a   :  { %v1562_v47 = vsel %vm8099_vm3, %v7170_v33, -inf  ;;  %v7189_v50 = vadd.f32 %v1530_v32, %v689_v29  ;;  %vm661_vm4 = vcmp.eq.s32.totalorder %v644_v8, %v7122_v44  ;;  %v632_v58 = vand.u32 31, %v616_v10  ;;  %vm681_vm5 = vmand %vm659_vm0, %vm7135_vm11 }
 0x74b   :  { %1563 = vmax.xlane.f32.xlu1 %v1562_v47  ;;  %v1571_v31 = vsel %vm8099_vm3, %v7200_v62, -inf  ;;  %v645_v47 = vshra.s32 %v629_v19, 4  ;;  %vm683_vm6 = vmand %vm661_vm4, %vm7135_vm11  ;;  %vm8100_vm0 = vmmov 0  }
 0x74c   :  { %v5022_v57 = vpop.f32.mrb[12].mxu1  ;;  %v1565_v59 = vsel %vm8099_vm3, %v7189_v50, -inf  ;;  %v699_v8 = vsel %vm683_vm6, 0.0, %v6561_v7 }
 0x74d   :  { %v1482_v3 = vpop.f32.mrb[13].mxu1  ;;  %1566 = vmax.xlane.f32.xlu0 %v1565_v59  ;;  %v1535_v21 = vmul.f32 0.17677669, %v5022_v57  ;;  %vm662_vm7 = vcmp.eq.s32.totalorder %v645_v47, %v7122_v44 }
 0x74e   :  { %v1533_v11 = vmul.f32 0.17677669, %v1482_v3  ;;  %v5023_v14 = vpop.f32.mrb[14].mxu1  ;;  %v646_v3 = vshra.s32 %v630_v40, 4  ;;  %vm684_vm10 = vmand %vm662_vm7, %vm7135_vm11 }
 0x74f   :  { %v1485_v18 = vpop.f32.mrb[15].mxu1  ;;  %1569 = vmax.xlane.f32.xlu1 %v1568_v15  ;;  %v1536_v29 = vmul.f32 0.17677669, %v5023_v14  ;;  %v7235_v46 = vadd.f32 %v1535_v21, %v694_v2  ;;  %v698_v2 = vsel %vm7227_vm1, 0.0, %v6561_v7  ;;  %v697_v14 = vsel %vm681_vm5, 0.0, %v6561_v7 }
 0x750   :  { %v1534_v12 = vmul.f32 0.17677669, %v1485_v18  ;;  %v7221_v32 = vadd.f32 %v1533_v11, %v692_v1  ;;  %v648_v15 = vshra.s32 %v632_v58, 4  ;;  %vm663_vm9 = vcmp.eq.s32.totalorder %v646_v3, %v7122_v44 }
 0x751   :  { %1572 = vmax.xlane.f32.xlu0 %v1571_v31  ;;  %v7244_v59 = vadd.f32 %v1536_v29, %v695_v30  ;;  %v1580_v11 = vsel %vm8099_vm3, %v7235_v46, -inf  ;;  %vm685_vm14 = vmand %vm663_vm9, %vm7135_vm11  ;;  %v700_v55 = vsel %vm684_vm10, 0.0, %v6561_v7  ;;  %v702_v3 = vsel %vm7279_vm12, 0.0, %v6561_v7 }
 0x752   :  { %v1574_v41 = vsel %vm8099_vm3, %v7221_v32, -inf  ;;  %v7233_v43 = vadd.f32 %v1534_v12, %v693_v5  ;;  %vm665_vm13 = vcmp.eq.s32.totalorder %v648_v15, %v7122_v44 }
 0x753   :  { %1575 = vmax.xlane.f32.xlu1 %v1574_v41  ;;  %v1583_v20 = vsel %vm8099_vm3, %v7244_v59, -inf  ;;  %vm687_vm15 = vmand %vm665_vm13, %vm7135_vm11 }
 0x754   :  { %v5026_v60 = vpop.f32.mrb[16].mxu1  ;;  %v1577_v57 = vsel %vm8099_vm3, %v7233_v43, -inf }
 0x755   :  { %v1498_v1 = vpop.f32.mrb[17].mxu1  ;;  %1578 = vmax.xlane.f32.xlu0 %v1577_v57  ;;  %v1539_v5 = vmul.f32 0.17677669, %v5026_v60 }
 0x756   :  { %v1537_v63 = vmul.f32 0.17677669, %v1498_v1  ;;  %v5027_v21 = vpop.f32.mrb[18].mxu1 }
 0x757   :  { %v1501_v6 = vpop.f32.mrb[19].mxu1  ;;  %1581 = vmax.xlane.f32.xlu1 %v1580_v11  ;;  %v1540_v18 = vmul.f32 0.17677669, %v5027_v21  ;;  %v7273_v31 = vadd.f32 %v1539_v5, %v698_v2  ;;  %v701_v2 = vsel %vm685_vm14, 0.0, %v6561_v7 }
 0x758   :  { %v1538_v19 = vmul.f32 0.17677669, %v1501_v6  ;;  %v7265_v10 = vadd.f32 %v1537_v63, %v696_v56  ;;  %v703_v6 = vsel %vm687_vm15, 0.0, %v6561_v7 }
 0x759   :  { %1584 = vmax.xlane.f32.xlu0 %v1583_v20  ;;  %v7286_v41 = vadd.f32 %v1540_v18, %v699_v8  ;;  %v1592_v1 = vsel %vm8099_vm3, %v7273_v31, -inf }
 0x75a   :  { %v1586_v29 = vsel %vm8099_vm3, %v7265_v10, -inf  ;;  %v7271_v12 = vadd.f32 %v1538_v19, %v697_v14 }
 0x75b   :  { %1587 = vmax.xlane.f32.xlu1 %v1586_v29  ;;  %v1595_v21 = vsel %vm8099_vm3, %v7286_v41, -inf }
 0x75c   :  { %v5030_v37 = vpop.f32.mrb[20].mxu1  ;;  %v1589_v40 = vsel %vm8099_vm3, %v7271_v12, -inf }
 0x75d   :  { %v1514_v47 = vpop.f32.mrb[21].mxu1  ;;  %1590 = vmax.xlane.f32.xlu0 %v1589_v40  ;;  %v1543_v58 = vmul.f32 0.17677669, %v5030_v37 }
 0x75e   :  { %v1541_v60 = vmul.f32 0.17677669, %v1514_v47  ;;  %v5031_v57 = vpop.f32.mrb[22].mxu1 }
 0x75f   :  { %v1517_v56 = vpop.f32.mrb[23].mxu1  ;;  %1593 = vmax.xlane.f32.xlu1 %v1592_v1  ;;  %v1544_v5 = vmul.f32 0.17677669, %v5031_v57  ;;  %v7308_v18 = vadd.f32 %v1543_v58, %v702_v3 }
 0x760   :  { %v1542_v63 = vmul.f32 0.17677669, %v1517_v56  ;;  %v7301_v11 = vadd.f32 %v1541_v60, %v700_v55 }
 0x761   :  { %1596 = vmax.xlane.f32.xlu0 %v1595_v21  ;;  %v7312_v20 = vadd.f32 %v1544_v5, %v703_v6  ;;  %v1604_v8 = vsel %vm8099_vm3, %v7308_v18, -inf }
 0x762   :  { %v1598_v14 = vsel %vm8099_vm3, %v7301_v11, -inf  ;;  %v7306_v15 = vadd.f32 %v1542_v63, %v701_v2 }
 0x763   :  { %1599 = vmax.xlane.f32.xlu1 %v1598_v14  ;;  %v1607_v29 = vsel %vm8099_vm3, %v7312_v20, -inf }
 0x764   :  { %v1601_v19 = vsel %vm8099_vm3, %v7306_v15, -inf }
 0x765   :  { %1602 = vmax.xlane.f32.xlu0 %v1601_v19 }
 0x767   :  { %1605 = vmax.xlane.f32.xlu1 %v1604_v8 }
 0x769   :  { %1608 = vmax.xlane.f32.xlu0 %v1607_v29 }
 0x7d8   :  { %v1564_v30 = vpop.xlane.xlu1 %1563 }
 0x7d9   :  { %v1610_v37 = vsub.f32 %v7170_v33, %v1564_v30 }
 0x7da   :  { %v1567_v40 = vpop.xlane.xlu0 %1566 }
 0x7db   :  { %v1626_v47 = vmul.f32 1.442695, %v1610_v37  ;;  %v1611_v55 = vsub.f32 %v7189_v50, %v1567_v40 }
 0x7dc   :  { %v1570_v58 = vpop.xlane.xlu1 %1569 }
 0x7dd   :  { %5515 = vpow2.f32 %v1626_v47  ;;  %v1628_v60 = vmul.f32 1.442695, %v1611_v55  ;;  %v1612_v57 = vsub.f32 %v7191_v52, %v1570_v58 }
 0x7de   :  { %v1573_v1 = vpop.xlane.xlu0 %1572 }
 0x7df   :  { %5517 = vpow2.f32 %v1628_v60  ;;  %v1630_v56 = vmul.f32 1.442695, %v1612_v57  ;;  %v1613_v2 = vsub.f32 %v7200_v62, %v1573_v1 }
 0x7e0   :  { %v1576_v3 = vpop.xlane.xlu1 %1575 }
 0x7e1   :  { %5519 = vpow2.f32 %v1630_v56  ;;  %v1632_v5 = vmul.f32 1.442695, %v1613_v2  ;;  %v1614_v63 = vsub.f32 %v7221_v32, %v1576_v3 }
 0x7e2   :  { %v1579_v33 = vpop.xlane.xlu0 %1578 }
 0x7e3   :  { %5521 = vpow2.f32 %v1632_v5  ;;  %v1634_v21 = vmul.f32 1.442695, %v1614_v63  ;;  %v1615_v50 = vsub.f32 %v7233_v43, %v1579_v33 }
 0x7e4   :  { %v1582_v6 = vpop.xlane.xlu1 %1581 }
 0x7e5   :  { %5523 = vpow2.f32 %v1634_v21  ;;  %v1636_v14 = vmul.f32 1.442695, %v1615_v50  ;;  %v1616_v52 = vsub.f32 %v7235_v46, %v1582_v6 }
 0x7e6   :  { %v1585_v19 = vpop.xlane.xlu0 %1584 }
 0x7e7   :  { %v7325_v8 = vpop.eup %5515  ;;  %5525 = vpow2.f32 %v1636_v14  ;;  %v1638_v62 = vmul.f32 1.442695, %v1616_v52  ;;  %v1617_v29 = vsub.f32 %v7244_v59, %v1585_v19 }
 0x7e8   :  { %v1588_v30 = vpop.xlane.xlu1 %1587  ;;  %v1658_v32 = vsel %vm8099_vm3, %v7325_v8, 0.0 }
 0x7e9   :  { %v7330_v37 = vpop.eup %5517  ;;  %5527 = vpow2.f32 %v1638_v62  ;;  %v1640_v43 = vmul.f32 1.442695, %v1617_v29  ;;  %v1618_v40 = vsub.f32 %v7265_v10, %v1588_v30  ;;  %1659 = vadd.xlane.f32.xlu1 %v1658_v32 }
 0x7ea   :  { %v1591_v47 = vpop.xlane.xlu0 %1590  ;;  %v1661_v46 = vsel %vm8099_vm3, %v7330_v37, 0.0 }
 0x7eb   :  { %v7335_v55 = vpop.eup %5519  ;;  %5529 = vpow2.f32 %v1640_v43  ;;  %v1642_v58 = vmul.f32 1.442695, %v1618_v40  ;;  %v1619_v59 = vsub.f32 %v7271_v12, %v1591_v47  ;;  %1662 = vadd.xlane.f32.xlu0 %v1661_v46 }
 0x7ec   :  { %v1594_v60 = vpop.xlane.xlu1 %1593  ;;  %v1664_v57 = vsel %vm8099_vm3, %v7335_v55, 0.0 }
 0x7ed   :  { %v7340_v1 = vpop.eup %5521  ;;  %5531 = vpow2.f32 %v1642_v58  ;;  %v1644_v10 = vmul.f32 1.442695, %v1619_v59  ;;  %v1620_v56 = vsub.f32 %v7273_v31, %v1594_v60  ;;  %1665 = vadd.xlane.f32.xlu1 %v1664_v57 }
 0x7ee   :  { %v1597_v2 = vpop.xlane.xlu0 %1596  ;;  %v1667_v3 = vsel %vm8099_vm3, %v7340_v1, 0.0 }
 0x7ef   :  { %v7345_v5 = vpop.eup %5523  ;;  %5533 = vpow2.f32 %v1644_v10  ;;  %v1646_v12 = vmul.f32 1.442695, %v1620_v56  ;;  %v1621_v63 = vsub.f32 %v7286_v41, %v1597_v2  ;;  %1668 = vadd.xlane.f32.xlu0 %v1667_v3 }
 0x7f0   :  { %v1600_v33 = vpop.xlane.xlu1 %1599  ;;  %v1670_v21 = vsel %vm8099_vm3, %v7345_v5, 0.0 }
 0x7f1   :  { %v7350_v50 = vpop.eup %5525  ;;  %5535 = vpow2.f32 %v1646_v12  ;;  %v1648_v31 = vmul.f32 1.442695, %v1621_v63  ;;  %v1622_v6 = vsub.f32 %v7301_v11, %v1600_v33  ;;  %1671 = vadd.xlane.f32.xlu1 %v1670_v21 }
 0x7f2   :  { %v1603_v14 = vpop.xlane.xlu0 %1602  ;;  %v1673_v52 = vsel %vm8099_vm3, %v7350_v50, 0.0 }
 0x7f3   :  { %v7355_v19 = vpop.eup %5527  ;;  %5537 = vpow2.f32 %v1648_v31  ;;  %v1650_v41 = vmul.f32 1.442695, %v1622_v6  ;;  %v1623_v62 = vsub.f32 %v7306_v15, %v1603_v14  ;;  %1674 = vadd.xlane.f32.xlu0 %v1673_v52 }
 0x7f4   :  { %v1606_v29 = vpop.xlane.xlu1 %1605  ;;  %v1676_v30 = vsel %vm8099_vm3, %v7355_v19, 0.0 }
 0x7f5   :  { %v7360_v32 = vpop.eup %5529  ;;  %5539 = vpow2.f32 %v1650_v41  ;;  %v1652_v11 = vmul.f32 1.442695, %v1623_v62  ;;  %v1624_v43 = vsub.f32 %v7308_v18, %v1606_v29  ;;  %1677 = vadd.xlane.f32.xlu1 %v1676_v30 }
 0x7f6   :  { %v1609_v40 = vpop.xlane.xlu0 %1608  ;;  %v1679_v47 = vsel %vm8099_vm3, %v7360_v32, 0.0 }
 0x7f7   :  { %v7365_v46 = vpop.eup %5531  ;;  %5541 = vpow2.f32 %v1652_v11  ;;  %v1654_v15 = vmul.f32 1.442695, %v1624_v43  ;;  %v1625_v58 = vsub.f32 %v7312_v20, %v1609_v40  ;;  %1680 = vadd.xlane.f32.xlu0 %v1679_v47 }
 0x7f8   :  { %v1682_v59 = vsel %vm8099_vm3, %v7365_v46, 0.0 }
 0x7f9   :  { %v7370_v60 = vpop.eup %5533  ;;  %5543 = vpow2.f32 %v1654_v15  ;;  %v1656_v57 = vmul.f32 1.442695, %v1625_v58  ;;  %1683 = vadd.xlane.f32.xlu1 %v1682_v59 }
 0x7fa   :  { %v1685_v18 = vsel %vm8099_vm3, %v7370_v60, 0.0 }
 0x7fb   :  { %v7374_v10 = vpop.eup %5535  ;;  %5545 = vpow2.f32 %v1656_v57  ;;  %1686 = vadd.xlane.f32.xlu0 %v1685_v18 }
 0x7fc   :  { %v1688_v56 = vsel %vm8099_vm3, %v7374_v10, 0.0 }
 0x7fd   :  { %v7378_v20 = vpop.eup %5537  ;;  %1689 = vadd.xlane.f32.xlu1 %v1688_v56 }
 0x7fe   :  { %v1691_v2 = vsel %vm8099_vm3, %v7378_v20, 0.0 }
 0x7ff   :  { %v7382_v3 = vpop.eup %5539  ;;  %1692 = vadd.xlane.f32.xlu0 %v1691_v2 }
 0x800   :  { %v1694_v12 = vsel %vm8099_vm3, %v7382_v3, 0.0 }
 0x801   :  { %v7386_v63 = vpop.eup %5541  ;;  %1695 = vadd.xlane.f32.xlu1 %v1694_v12 }
 0x802   :  { %v1697_v33 = vsel %vm8099_vm3, %v7386_v63, 0.0 }
 0x803   :  { %v7390_v21 = vpop.eup %5543  ;;  %1698 = vadd.xlane.f32.xlu0 %v1697_v33 }
 0x804   :  { %v1700_v31 = vsel %vm8099_vm3, %v7390_v21, 0.0 }
 0x805   :  { %v7394_v6 = vpop.eup %5545  ;;  %1701 = vadd.xlane.f32.xlu1 %v1700_v31 }
 0x806   :  { %v1703_v14 = vsel %vm8099_vm3, %v7394_v6, 0.0 }
 0x807   :  { %1704 = vadd.xlane.f32.xlu0 %v1703_v14 }
 0x876   :  { %v1660_v52 = vpop.xlane.xlu1 %1659 }
 0x877   :  { %5547 = vrcp.f32 %v1660_v52 }
 0x878   :  { %v1663_v41 = vpop.xlane.xlu0 %1662 }
 0x879   :  { %5549 = vrcp.f32 %v1663_v41 }
 0x87a   :  { %v1666_v62 = vpop.xlane.xlu1 %1665 }
 0x87b   :  { %5551 = vrcp.f32 %v1666_v62 }
 0x87c   :  { %v1669_v29 = vpop.xlane.xlu0 %1668 }
 0x87d   :  { %5553 = vrcp.f32 %v1669_v29 }
 0x87e   :  { %v1672_v30 = vpop.xlane.xlu1 %1671 }
 0x87f   :  { %5555 = vrcp.f32 %v1672_v30 }
 0x880   :  { %v1675_v11 = vpop.xlane.xlu0 %1674 }
 0x881   :  { %v5548_v43 = vpop.eup %5547  ;;  %5557 = vrcp.f32 %v1675_v11 }
 0x882   :  { %v1678_v40 = vpop.xlane.xlu1 %1677  ;;  %v1707_v58 = vmul.f32 %v5548_v43, %v7325_v8 }
 0x883   :  { %v5550_v47 = vpop.eup %5549  ;;  %5559 = vrcp.f32 %v1678_v40 }
 0x884   :  { %v1681_v15 = vpop.xlane.xlu0 %1680  ;;  %v1709_v59 = vmul.f32 %v5550_v47, %v7330_v37 }
 0x885   :  { %v5552_v57 = vpop.eup %5551  ;;  %5561 = vrcp.f32 %v1681_v15 }
 0x886   :  { %v1684_v18 = vpop.xlane.xlu1 %1683  ;;  %v1738_v56 = vpack.c.bf16 %v1709_v59, %v1707_v58  ;;  %v1711_v12 = vmul.f32 %v5552_v57, %v7335_v55 }
 0x887   :  { %v5554_v2 = vpop.eup %5553  ;;  %5563 = vrcp.f32 %v1684_v18 }
 0x888   :  { %v1713_v33 = vmul.f32 %v5554_v2, %v7340_v1  ;;  %v1687_v31 = vpop.xlane.xlu0 %1686  ;;  %5036 = vmatprep.mubr.msk.bf16.mxu0 %vm8099_vm3, %v1738_v56 }
 0x889   :  { %v5556_v14 = vpop.eup %5555  ;;  %5565 = vrcp.f32 %v1687_v31 }
 0x88a   :  { %v1690_v52 = vpop.xlane.xlu1 %1689  ;;  %v1739_v41 = vpack.c.bf16 %v1713_v33, %v1711_v12  ;;  %v1715_v62 = vmul.f32 %v5556_v14, %v7345_v5 }
 0x88b   :  { %v5558_v8 = vpop.eup %5557  ;;  %5567 = vrcp.f32 %v1690_v52 }
 0x88c   :  { %v1693_v37 = vpop.xlane.xlu0 %1692  ;;  %5037 = vmatmul.mubr.msk.bf16.vlgmr.msra.gmra.mrb[16].mxu0 %vm8099_vm3, %v1739_v41  ;;  %v1717_v29 = vmul.f32 %v5558_v8, %v7350_v50 }
 0x88d   :  { %v5560_v30 = vpop.eup %5559  ;;  %5569 = vrcp.f32 %v1693_v37 }
 0x88e   :  { %v1696_v55 = vpop.xlane.xlu1 %1695  ;;  %v1740_v1 = vpack.c.bf16 %v1717_v29, %v1715_v62  ;;  %v1719_v40 = vmul.f32 %v5560_v30, %v7355_v19  ;;  %v5341_v62 = vld [vmem:[%s8159_s11 + $0x10] sm:$0xff]   ;;  %v5344_v29 = vld [vmem:[%s8159_s11 + $0x28] sm:$0xff]  }
 0x88f   :  { %v5562_v11 = vpop.eup %5561  ;;  %5571 = vrcp.f32 %v1696_v55  ;;  %v5345_v30 = vld [vmem:[%s8159_s11 + $0x30] sm:$0xff]   ;;  %v5346_v55 = vld [vmem:[%s8159_s11 + $0x38] sm:$0xff]  }
 0x890   :  { %v1699_v43 = vpop.xlane.xlu0 %1698  ;;  %5040 = vmatprep.mubr.msk.bf16.mxu0 %vm8099_vm3, %v1740_v1  ;;  %v1721_v47 = vmul.f32 %v5562_v11, %v7360_v32 }
 0x891   :  { %v5564_v15 = vpop.eup %5563  ;;  %5573 = vrcp.f32 %v1699_v43 }
 0x892   :  { %v1702_v58 = vpop.xlane.xlu1 %1701  ;;  %v1741_v59 = vpack.c.bf16 %v1721_v47, %v1719_v40  ;;  %v1723_v57 = vmul.f32 %v5564_v15, %v7365_v46 }
 0x893   :  { %v5566_v5 = vpop.eup %5565  ;;  %5575 = vrcp.f32 %v1702_v58 }
 0x894   :  { %v1705_v50 = vpop.xlane.xlu0 %1704  ;;  %5041 = vmatmul.mubr.msk.bf16.gmra.mrb[20].mxu0 %vm8099_vm3, %v1741_v59  ;;  %v1725_v18 = vmul.f32 %v5566_v5, %v7370_v60 }
 0x895   :  { %v5568_v56 = vpop.eup %5567  ;;  %5577 = vrcp.f32 %v1705_v50 }
 0x896   :  { %v1742_v2 = vpack.c.bf16 %v1725_v18, %v1723_v57  ;;  %v1727_v19 = vmul.f32 %v5568_v56, %v7374_v10 }
 0x897   :  { %v5570_v12 = vpop.eup %5569 }
 0x898   :  { %5044 = vmatprep.mubr.msk.bf16.mxu0 %vm8099_vm3, %v1742_v2  ;;  %v1729_v32 = vmul.f32 %v5570_v12, %v7378_v20 }
 0x899   :  { %v5572_v33 = vpop.eup %5571 }
 0x89a   :  { %v1743_v31 = vpack.c.bf16 %v1729_v32, %v1727_v19  ;;  %v1731_v46 = vmul.f32 %v5572_v33, %v7382_v3  ;;  %v5339_v3 = vld [vmem:[%s8159_s11] sm:$0xff]  }
 0x89b   :  { %v5574_v14 = vpop.eup %5573  ;;  %5052 = vmatprep.subr.bf16.mxu1 %v5339_v3 }
 0x89c   :  { %5045 = vmatmul.mubr.msk.bf16.gmra.mrb[24].mxu0 %vm8099_vm3, %v1743_v31  ;;  %v1733_v60 = vmul.f32 %v5574_v14, %v7386_v63  ;;  %v5340_v63 = vld [vmem:[%s8159_s11 + $0x8] sm:$0xff]   ;;  %5053 = vmatpush3.bf16.msra.mxu1 %v5339_v3 }
 0x89d   :  { %v5576_v52 = vpop.eup %5575  ;;  %5054 = vmatprep.subr.bf16.mxu1 %v5340_v63 }
 0x89e   :  { %v1744_v41 = vpack.c.bf16 %v1733_v60, %v1731_v46  ;;  %v1735_v10 = vmul.f32 %v5576_v52, %v7390_v21  ;;  %v5342_v21 = vld [vmem:[%s8159_s11 + $0x18] sm:$0xff]  }
 0x89f   :  { %v5578_v8 = vpop.eup %5577 }
 0x8a0   :  { %5048 = vmatprep.mubr.msk.bf16.mxu0 %vm8099_vm3, %v1744_v41  ;;  %v1737_v20 = vmul.f32 %v5578_v8, %v7394_v6  ;;  %5055 = vmatpush3.bf16.msra.mxu1 %v5340_v63  ;;  %v5343_v6 = vld [vmem:[%s8159_s11 + $0x20] sm:$0xff]  }
 0x8a1   :  { %5056 = vmatprep.subr.bf16.mxu1 %v5341_v62 }
 0x8a2   :  { %v1745_v37 = vpack.c.bf16 %v1737_v20, %v1735_v10 }
 0x8a4   :  { %5049 = vmatmul.mubr.msk.bf16.gmra.mrb[28].mxu0 %vm8099_vm3, %v1745_v37  ;;  %5057 = vmatpush3.bf16.msra.mxu1 %v5341_v62 }
 0x8a5   :  { %2231 = vmatprep.mubr.bf16.mxu0 %v6558_v0  ;;  %5058 = vmatprep.subr.bf16.mxu1 %v5342_v21 }
 0x8a8   :  { %5059 = vmatpush3.bf16.msra.mxu1 %v5342_v21 }
 0x8a9   :  { %5060 = vmatprep.subr.bf16.mxu1 %v5343_v6 }
 0x8ac   :  { %5061 = vmatpush3.bf16.msra.mxu1 %v5343_v6 }
 0x8ad   :  { %5062 = vmatprep.subr.bf16.mxu1 %v5344_v29 }
 0x8b0   :  { %5063 = vmatpush3.bf16.msra.mxu1 %v5344_v29 }
 0x8b1   :  { %5064 = vmatprep.subr.bf16.mxu1 %v5345_v30 }
 0x8b4   :  { %5065 = vmatpush3.bf16.msra.mxu1 %v5345_v30 }
 0x8b5   :  { %5066 = vmatprep.subr.bf16.mxu1 %v5346_v55 }
 0x8b8   :  { %5067 = vmatpush3.bf16.msra.mxu1 %v5346_v55 }
 0x95f   :  { %v5038_v1 = vpop.f32.mrb[16].mxu0 }
 0x960   :  { %v1806_v11 = vpop.f32.mrb[17].mxu0  ;;  %v1871_v15 = vmul.f32 %v5038_v1, %v7075_v17 }
 0x961   :  { %v5039_v43 = vpop.f32.mrb[18].mxu0  ;;  %v1869_v5 = vmul.f32 %v7075_v17, %v1806_v11 }
 0x962   :  { %v1809_v40 = vpop.f32.mrb[19].mxu0  ;;  %v1872_v18 = vmul.f32 %v5039_v43, %v7075_v17 }
 0x963   :  { %v1870_v19 = vmul.f32 %v7075_v17, %v1809_v40 }
 0x967   :  { %v5042_v47 = vpop.f32.mrb[20].mxu0 }
 0x968   :  { %v1875_v58 = vmul.f32 %v5042_v47, %v7078_v23  ;;  %v1822_v59 = vpop.f32.mrb[21].mxu0 }
 0x969   :  { %v1873_v50 = vmul.f32 %v7078_v23, %v1822_v59  ;;  %v5043_v57 = vpop.f32.mrb[22].mxu0 }
 0x96a   :  { %v1879_v56 = vadd.f32 %v1875_v58, %v1871_v15  ;;  %v1876_v2 = vmul.f32 %v5043_v57, %v7078_v23  ;;  %v1825_v12 = vpop.f32.mrb[23].mxu0  ;;  %v4628_v57 = vld [vmem:[#allocation7] ss:$0 sm:$0xff] }
 0x96b   :  { %v1877_v32 = vadd.f32 %v1873_v50, %v1869_v5  ;;  %v1874_v33 = vmul.f32 %v7078_v23, %v1825_v12 }
 0x96c   :  { %v1880_v31 = vadd.f32 %v1876_v2, %v1872_v18 }
 0x96d   :  { %v1878_v14 = vadd.f32 %v1874_v33, %v1870_v19 }
 0x96f   :  { %v5046_v46 = vpop.f32.mrb[24].mxu0 }
 0x970   :  { %v1883_v60 = vmul.f32 %v5046_v46, %v7081_v24  ;;  %v1838_v52 = vpop.f32.mrb[25].mxu0 }
 0x971   :  { %v1881_v41 = vmul.f32 %v7081_v24, %v1838_v52  ;;  %v5047_v8 = vpop.f32.mrb[26].mxu0  ;;  %v903_v52 = vld [vmem:[%s8145_s10 + $0x20] sm:$0xff] }
 0x972   :  { %v1887_v10 = vadd.f32 %v1883_v60, %v1879_v56  ;;  %v1884_v20 = vmul.f32 %v5047_v8, %v7081_v24  ;;  %v1841_v37 = vpop.f32.mrb[27].mxu0  ;;  %v7465_v8 = vadd.f32 %v7072_v13, %v903_v52  ;;  %v5364_v52 = vld [vmem:[#allocation11 + $0x54] ss:$8 sps:$4 sm:$0xff]  }
 0x973   :  { %v1885_v3 = vadd.f32 %v1881_v41, %v1877_v32  ;;  %v1882_v63 = vmul.f32 %v7081_v24, %v1841_v37 }
 0x974   :  { %v1888_v62 = vadd.f32 %v1884_v20, %v1880_v31  ;;  %v5352_v20 = vld [vmem:[#allocation11 + $0x14] ss:$8 sps:$4 sm:$0xff]  }
 0x975   :  { %v1886_v21 = vadd.f32 %v1882_v63, %v1878_v14 }
 0x977   :  { %v5050_v6 = vpop.f32.mrb[28].mxu0 }
 0x978   :  { %v1891_v29 = vmul.f32 %v5050_v6, %v7084_v26  ;;  %v1854_v30 = vpop.f32.mrb[29].mxu0 }
 0x979   :  { %v1889_v55 = vmul.f32 %v7084_v26, %v1854_v30  ;;  %v5051_v1 = vpop.f32.mrb[30].mxu0 }
 0x97a   :  { %v1895_v11 = vadd.f32 %v1891_v29, %v1887_v10  ;;  %v1892_v43 = vmul.f32 %v5051_v1, %v7084_v26  ;;  %v1857_v40 = vpop.f32.mrb[31].mxu0  ;;  %v5349_v10 = vld [vmem:[#allocation11 + $0x4] ss:$8 sps:$4 sm:$0xff]  }
 0x97b   :  { %v1893_v47 = vadd.f32 %v1889_v55, %v1885_v3  ;;  %v1890_v15 = vmul.f32 %v7084_v26, %v1857_v40  ;;  %2199 = vmatprep.subr.bf16.mxu0 %v5349_v10  ;;  %v5365_v10 = vld [vmem:[#allocation11 + $0x60] ss:$8 sps:$4 sm:$0xff]  }
 0x97c   :  { %v1896_v58 = vadd.f32 %v1892_v43, %v1888_v62 }
 0x97d   :  { %v1894_v59 = vadd.f32 %v1890_v15, %v1886_v21 }
 0x97e   :  { %v1898_v5 = vpack.c.bf16 %v1896_v58, %v1895_v11 }
 0x97f   :  { %v1897_v50 = vpack.c.bf16 %v1894_v59, %v1893_v47 }
 0x981   :  { %5068 = vmatprep.mubr.bf16.mxu1 %v1897_v50 }
 0x982   :  { %5069 = vmatmul.mubr.bf16.vlgmr.msra.gmra.mrb[24].mxu1 %v1898_v5 }
 0xa55   :  { %v5070_v18 = vpop.f32.mrb[24].mxu1 }
 0xa56   :  { %v2004_v56 = vpop.f32.mrb[25].mxu1  ;;  %v2013_v32 = vadd.f32 %v5070_v18, %v4628_v57 }
 0xa57   :  { %v2005_v2 = vadd.f32 %v4628_v57, %v2004_v56  ;;  %v5071_v12 = vpop.f32.mrb[26].mxu1 }
 0xa58   :  { %v2007_v19 = vpop.f32.mrb[27].mxu1  ;;  %v2016_v14 = vadd.f32 %v5071_v12, %v4628_v57  ;;  %v7455_v60 = vadd.f32 %v2013_v32, %v6990_v45  ;;  %v5347_v45 = vld [vmem:[#allocation11] ss:$8 sps:$4 sm:$0xff]   ;;  %v5356_v32 = vld [vmem:[#allocation11 + $0x30] ss:$8 sps:$4 sm:$0xff]  }
 0xa59   :  { %v7448_v33 = vadd.f32 %v2005_v2, %v6983_v36  ;;  %v2008_v31 = vadd.f32 %v4628_v57, %v2007_v19  ;;  %v904_v36 = vld [vmem:[%s8145_s10 + $0x28] sm:$0xff]  ;;  %2200 = vmatpush1.bf16.msra.mxu0 %v5347_v45  ;;  %v5355_v2 = vld [vmem:[#allocation11 + $0x24] ss:$8 sps:$4 sm:$0xff]  }
 0xa5a   :  { %v7460_v41 = vadd.f32 %v2016_v14, %v6994_v48  ;;  %v5350_v48 = vld [vmem:[#allocation11 + $0x10] ss:$8 sps:$4 sm:$0xff]   ;;  %2201 = vmatprep.subr.bf16.mxu0 %v5352_v20  ;;  %v5353_v12 = vld [vmem:[#allocation11 + $0x20] ss:$8 sps:$4 sm:$0xff]   ;;  %v5358_v19 = vld [vmem:[#allocation11 + $0x34] ss:$8 sps:$4 sm:$0xff]  }
 0xa5b   :  { %v7451_v46 = vadd.f32 %v2008_v31, %v6985_v38  ;;  %2023 = vadd.xlane.f32.xlu1 %v7448_v33  ;;  %v7469_v38 = vadd.f32 %v7086_v27, %v904_v36  ;;  %v5361_v31 = vld [vmem:[#allocation11 + $0x44] ss:$8 sps:$4 sm:$0xff]   ;;  %v5359_v14 = vld [vmem:[#allocation11 + $0x40] ss:$8 sps:$4 sm:$0xff]   ;;  %v5362_v36 = vld [vmem:[#allocation11 + $0x50] ss:$8 sps:$4 sm:$0xff]  }
 0xa5c   :  { %v5367_v45 = vld [vmem:[#allocation11 + $0x64] ss:$8 sps:$4 sm:$0xff]   ;;  %v5370_v20 = vld [vmem:[#allocation11 + $0x74] ss:$8 sps:$4 sm:$0xff]  }
 0xa5d   :  { %2025 = vadd.xlane.f32.xlu0 %v7451_v46  ;;  %2202 = vmatpush1.bf16.msra.mxu0 %v5350_v48  ;;  %v5368_v48 = vld [vmem:[#allocation11 + $0x70] ss:$8 sps:$4 sm:$0xff]  }
 0xa5e   :  { %2203 = vmatprep.subr.bf16.mxu0 %v5355_v2 }
 0xa5f   :  { %2027 = vadd.xlane.f32.xlu1 %v7455_v60 }
 0xa61   :  { %2029 = vadd.xlane.f32.xlu0 %v7460_v41  ;;  %2204 = vmatpush1.bf16.msra.mxu0 %v5353_v12 }
 0xa62   :  { %2205 = vmatprep.subr.bf16.mxu0 %v5358_v19 }
 0xa63   :  { %2518 = vadd.xlane.f32.xlu1 %v7465_v8 }
 0xa65   :  { %2520 = vadd.xlane.f32.xlu0 %v7469_v38  ;;  %2206 = vmatpush1.bf16.msra.mxu0 %v5356_v32 }
 0xa66   :  { %2207 = vmatprep.subr.bf16.mxu0 %v5361_v31 }
 0xa69   :  { %2208 = vmatpush1.bf16.msra.mxu0 %v5359_v14 }
 0xa6a   :  { %2209 = vmatprep.subr.bf16.mxu0 %v5364_v52 }
 0xa6d   :  { %2210 = vmatpush1.bf16.msra.mxu0 %v5362_v36 }
 0xa6e   :  { %2211 = vmatprep.subr.bf16.mxu0 %v5367_v45  ;;  %v4637_v45 = vld [vmem:[#allocation8] ss:$0 sm:$0xff] }
 0xa71   :  { %2212 = vmatpush1.bf16.msra.mxu0 %v5365_v10 }
 0xa72   :  { %2213 = vmatprep.subr.bf16.mxu0 %v5370_v20 }
 0xa75   :  { %2214 = vmatpush1.bf16.msra.mxu0 %v5368_v48 }
 0xae8   :  { %v2024_v37 = vpop.xlane.xlu1 %2023 }
 0xae9   :  { %v2031_v13 = vmul.f32 0.0078125, %v2024_v37  ;;  %v5373_v37 = vld [vmem:[#allocation23 + $0x4] ss:$12 sps:$4 sm:$0xff]  }
 0xaea   :  { %v2026_v3 = vpop.xlane.xlu0 %2025  ;;  %2736 = vmatprep.subr.bf16.mxu0 %v5373_v37 }
 0xaeb   :  { %v7474_v63 = vsub.f32 %v7448_v33, %v2031_v13  ;;  %v2032_v27 = vmul.f32 0.0078125, %v2026_v3  ;;  %v5395_v13 = vld [vmem:[#allocation14 + $0x40] sm:$0xff]  }
 0xaec   :  { %v2028_v62 = vpop.xlane.xlu1 %2027  ;;  %v5396_v3 = vld [vmem:[#allocation14] sm:$0xff]   ;;  %4866 = vmatprep.subr.bf16.mxu1 %v5395_v13 }
 0xaed   :  { %v7477_v21 = vsub.f32 %v7451_v46, %v2032_v27  ;;  %v2033_v6 = vmul.f32 0.0078125, %v2028_v62  ;;  %v2039_v29 = vmul.f32 %v7474_v63, %v7474_v63  ;;  %v5397_v27 = vld [vmem:[#allocation14 + $0x48] sm:$0xff]   ;;  %4867 = vmatpush3.bf16.msra.mxu1 %v5396_v3  ;;  %v4638_v3 = vld [vmem:[#allocation10] ss:$0 sm:$0xff] }
 0xaee   :  { %v2030_v30 = vpop.xlane.xlu0 %2029  ;;  %v5398_v62 = vld [vmem:[#allocation14 + $0x8] sm:$0xff]   ;;  %4868 = vmatprep.subr.bf16.mxu1 %v5397_v27 }
 0xaef   :  { %v7482_v55 = vsub.f32 %v7455_v60, %v2033_v6  ;;  %v2034_v1 = vmul.f32 0.0078125, %v2030_v30  ;;  %2043 = vadd.xlane.f32.xlu1 %v2039_v29  ;;  %v2040_v11 = vmul.f32 %v7477_v21, %v7477_v21  ;;  %v5399_v6 = vld [vmem:[#allocation14 + $0x50] sm:$0xff]   ;;  %v5401_v30 = vld [vmem:[#allocation14 + $0x58] sm:$0xff]  }
 0xaf0   :  { %v2519_v43 = vpop.xlane.xlu1 %2518  ;;  %v5400_v29 = vld [vmem:[#allocation14 + $0x10] sm:$0xff]  }
 0xaf1   :  { %v7487_v40 = vsub.f32 %v7460_v41, %v2034_v1  ;;  %v2522_v47 = vmul.f32 0.0078125, %v2519_v43  ;;  %2045 = vadd.xlane.f32.xlu0 %v2040_v11  ;;  %v2041_v15 = vmul.f32 %v7482_v55, %v7482_v55  ;;  %4869 = vmatpush3.bf16.msra.mxu1 %v5398_v62  ;;  %v5402_v1 = vld [vmem:[#allocation14 + $0x18] sm:$0xff]   ;;  %v5403_v11 = vld [vmem:[#allocation14 + $0x60] sm:$0xff]  }
 0xaf2   :  { %v2521_v58 = vpop.xlane.xlu0 %2520  ;;  %4870 = vmatprep.subr.bf16.mxu1 %v5399_v6  ;;  %v5404_v43 = vld [vmem:[#allocation14 + $0x20] sm:$0xff]  }
 0xaf3   :  { %v7492_v59 = vsub.f32 %v7465_v8, %v2522_v47  ;;  %v2523_v5 = vmul.f32 0.0078125, %v2521_v58  ;;  %2047 = vadd.xlane.f32.xlu1 %v2041_v15  ;;  %v2042_v50 = vmul.f32 %v7487_v40, %v7487_v40  ;;  %v5405_v47 = vld [vmem:[#allocation14 + $0x68] sm:$0xff]  }
 0xaf4   :  { %v5406_v15 = vld [vmem:[#allocation14 + $0x28] sm:$0xff]  }
 0xaf5   :  { %v7497_v57 = vsub.f32 %v7469_v38, %v2523_v5  ;;  %2049 = vadd.xlane.f32.xlu0 %v2042_v50  ;;  %v2526_v18 = vmul.f32 %v7492_v59, %v7492_v59  ;;  %4871 = vmatpush3.bf16.msra.mxu1 %v5400_v29 }
 0xaf6   :  { %4872 = vmatprep.subr.bf16.mxu1 %v5401_v30 }
 0xaf7   :  { %2528 = vadd.xlane.f32.xlu1 %v2526_v18  ;;  %v2527_v56 = vmul.f32 %v7497_v57, %v7497_v57 }
 0xaf9   :  { %2530 = vadd.xlane.f32.xlu0 %v2527_v56  ;;  %4873 = vmatpush3.bf16.msra.mxu1 %v5402_v1 }
 0xafa   :  { %4874 = vmatprep.subr.bf16.mxu1 %v5403_v11 }
 0xafd   :  { %4875 = vmatpush3.bf16.msra.mxu1 %v5404_v43 }
 0xafe   :  { %4876 = vmatprep.subr.bf16.mxu1 %v5405_v47 }
 0xb01   :  { %4877 = vmatpush3.bf16.msra.mxu1 %v5406_v15  ;;  %v5371_v15 = vld [vmem:[#allocation23] ss:$12 sps:$4 sm:$0xff]  }
 0xb7c   :  { %v2044_v58 = vpop.xlane.xlu1 %2043 }
 0xb7d   :  { %v2051_v5 = vmul.f32 0.0078125, %v2044_v58 }
 0xb7e   :  { %v2046_v50 = vpop.xlane.xlu0 %2045 }
 0xb7f   :  { %v2055_v18 = vadd.f32 1e-05, %v2051_v5  ;;  %v2052_v56 = vmul.f32 0.0078125, %v2046_v50 }
 0xb80   :  { %v2048_v2 = vpop.xlane.xlu1 %2047 }
 0xb81   :  { %5579 = vrsqrt.f32 %v2055_v18  ;;  %v2056_v12 = vadd.f32 1e-05, %v2052_v56  ;;  %v2053_v19 = vmul.f32 0.0078125, %v2048_v2  ;;  %v5374_v56 = vld [vmem:[#allocation23 + $0x18] ss:$12 sps:$4 sm:$0xff]  }
 0xb82   :  { %v2050_v32 = vpop.xlane.xlu0 %2049  ;;  %v5379_v2 = vld [vmem:[#allocation23 + $0x34] ss:$12 sps:$4 sm:$0xff]  }
 0xb83   :  { %5581 = vrsqrt.f32 %v2056_v12  ;;  %v2057_v31 = vadd.f32 1e-05, %v2053_v19  ;;  %v2054_v14 = vmul.f32 0.0078125, %v2050_v32 }
 0xb84   :  { %v2529_v29 = vpop.xlane.xlu1 %2528 }
 0xb85   :  { %5583 = vrsqrt.f32 %v2057_v31  ;;  %v2058_v52 = vadd.f32 1e-05, %v2054_v14  ;;  %v2532_v50 = vmul.f32 0.0078125, %v2529_v29  ;;  %v5382_v31 = vld [vmem:[#allocation23 + $0x4c] ss:$12 sps:$4 sm:$0xff]  }
 0xb86   :  { %v2531_v62 = vpop.xlane.xlu0 %2530  ;;  %v5380_v14 = vld [vmem:[#allocation23 + $0x48] ss:$12 sps:$4 sm:$0xff]   ;;  %v5394_v29 = vld [vmem:[#allocation23 + $0xac] ss:$12 sps:$4 sm:$0xff]  }
 0xb87   :  { %5585 = vrsqrt.f32 %v2058_v52  ;;  %v2533_v47 = vmul.f32 0.0078125, %v2531_v62  ;;  %v2534_v19 = vadd.f32 1e-05, %v2532_v50  ;;  %v5385_v52 = vld [vmem:[#allocation23 + $0x64] ss:$12 sps:$4 sm:$0xff]  }
 0xb88   :  { %v5389_v62 = vld [vmem:[#allocation23 + $0x90] ss:$12 sps:$4 sm:$0xff]  }
 0xb89   :  { %v2535_v18 = vadd.f32 1e-05, %v2533_v47 }
 0xb8b   :  { %v5580_v36 = vpop.eup %5579  ;;  %5587 = vrsqrt.f32 %v2535_v18 }
 0xb8c   :  { %v2063_v10 = vmul.f32 %v5580_v36, %v7474_v63  ;;  %v5376_v63 = vld [vmem:[#allocation23 + $0x1c] ss:$12 sps:$4 sm:$0xff]   ;;  %5589 = vrsqrt.f32 %v2534_v19  ;;  %v5383_v36 = vld [vmem:[#allocation23 + $0x60] ss:$12 sps:$4 sm:$0xff]  }
 0xb8d   :  { %v5582_v20 = vpop.eup %5581 }
 0xb8e   :  { %v2074_v48 = vmul.f32 %v4637_v45, %v2063_v10  ;;  %v2064_v37 = vmul.f32 %v5582_v20, %v7477_v21 }
 0xb8f   :  { %v5584_v13 = vpop.eup %5583 }
 0xb90   :  { %v2075_v27 = vmul.f32 %v4637_v45, %v2064_v37  ;;  %v2085_v30 = vadd.f32 %v4638_v3, %v2074_v48  ;;  %v2065_v11 = vmul.f32 %v5584_v13, %v7482_v55  ;;  %v5386_v48 = vld [vmem:[#allocation23 + $0x78] ss:$12 sps:$4 sm:$0xff]   ;;  %v5391_v13 = vld [vmem:[#allocation23 + $0x94] ss:$12 sps:$4 sm:$0xff]  }
 0xb91   :  { %v5586_v6 = vpop.eup %5585 }
 0xb92   :  { %v2086_v1 = vadd.f32 %v4638_v3, %v2075_v27  ;;  %v2066_v43 = vmul.f32 %v5586_v6, %v7487_v40  ;;  %v2076_v21 = vmul.f32 %v4637_v45, %v2065_v11  ;;  %v5377_v40 = vld [vmem:[#allocation23 + $0x30] ss:$12 sps:$4 sm:$0xff]  }
 0xb93   :  { %v4674_v27 = vld [vmem:[#allocation20] ss:$0 sm:$0xff]  ;;  %v4675_v11 = vld [vmem:[#allocation22] ss:$0 sm:$0xff] }
 0xb94   :  { %v2089_v58 = vpack.c.bf16 %v2086_v1, %v2085_v30  ;;  %v2077_v5 = vmul.f32 %v4637_v45, %v2066_v43  ;;  %v2087_v55 = vadd.f32 %v4638_v3, %v2076_v21  ;;  %v5388_v45 = vld [vmem:[#allocation23 + $0x7c] ss:$12 sps:$4 sm:$0xff]  }
 0xb95   :  { %v5588_v10 = vpop.eup %5587  ;;  %v5392_v1 = vld [vmem:[#allocation23 + $0xa8] ss:$12 sps:$4 sm:$0xff]  }
 0xb96   :  { %2232 = vmatmul.mubr.bf16.vlgmr.msra.gmra.mrb[32].mxu0 %v2089_v58  ;;  %v2088_v12 = vadd.f32 %v4638_v3, %v2077_v5  ;;  %v5590_v20 = vpop.eup %5589  ;;  %v2539_v37 = vmul.f32 %v5588_v10, %v7497_v57  ;;  %v5407_v57 = vld [vmem:[#allocation14 + $0x70] sm:$0xff]   ;;  %v5409_v58 = vld [vmem:[#allocation14 + $0x78] sm:$0xff]  }
 0xb97   :  { %2737 = vmatpush1.bf16.msra.mxu0 %v5371_v15  ;;  %2241 = vmatprep.mubr.bf16.mxu0 %v6558_v0  ;;  %v2538_v3 = vmul.f32 %v5590_v20, %v7492_v59  ;;  %v5408_v59 = vld [vmem:[#allocation14 + $0x30] sm:$0xff]   ;;  %v2107_v5 = vld [vmem:[#allocation13] sm:$0x3] }
 0xb98   :  { %2738 = vmatprep.subr.bf16.mxu0 %v5376_v63  ;;  %v2090_v32 = vpack.c.bf16 %v2088_v12, %v2087_v55  ;;  %v2548_v6 = vmul.f32 %v4674_v27, %v2539_v37  ;;  %4878 = vmatprep.subr.bf16.mxu1 %v5407_v57  ;;  %v5410_v63 = vld [vmem:[#allocation14 + $0x38] sm:$0xff]   ;;  %v2112_v50 = vrot.slane %v2107_v5, %v7059_v28 }
 0xb99   :  { %v2547_v30 = vmul.f32 %v4674_v27, %v2538_v3  ;;  %4879 = vmatpush3.bf16.msra.mxu1 %v5408_v59  ;;  %v2116_v21 = vrot.slane %v2107_v5, %v7064_v4  ;;  %v5415_v5 = vld [vmem:[#allocation23 + $0x68] ss:$12 sps:$4 sm:$0xff]  }
 0xb9a   :  { %v2557_v43 = vadd.f32 %v4675_v11, %v2548_v6  ;;  %4880 = vmatprep.subr.bf16.mxu1 %v5409_v58  ;;  %v5413_v58 = vld [vmem:[#allocation23 + $0x38] ss:$12 sps:$4 sm:$0xff]  }
 0xb9b   :  { %2739 = vmatpush1.bf16.msra.mxu0 %v5374_v56  ;;  %v2556_v47 = vadd.f32 %v4675_v11, %v2547_v30  ;;  %v5412_v30 = vld [vmem:[#allocation23 + $0x20] ss:$12 sps:$4 sm:$0xff]  }
 0xb9c   :  { %2740 = vmatprep.subr.bf16.mxu0 %v5379_v2 }
 0xb9d   :  { %v7511_v15 = vpack.c.bf16 %v2557_v43, %v2556_v47  ;;  %4881 = vmatpush3.bf16.msra.mxu1 %v5410_v63  ;;  %v5414_v63 = vld [vmem:[#allocation23 + $0x50] ss:$12 sps:$4 sm:$0xff]  }
 0xb9e   :  { %2242 = vmatmul.mubr.bf16.gmra.mrb[36].mxu0 %v2090_v32  ;;  %5072 = vmatprep.subr.bf16.mxu1 %v6560_v16 }
 0xb9f   :  { %2741 = vmatpush1.bf16.msra.mxu0 %v5377_v40  ;;  %2768 = vmatprep.mubr.bf16.mxu0 %v6558_v0 }
 0xba0   :  { %2742 = vmatprep.subr.bf16.mxu0 %v5382_v31 }
 0xba3   :  { %2743 = vmatpush1.bf16.msra.mxu0 %v5380_v14 }
 0xba4   :  { %2744 = vmatprep.subr.bf16.mxu0 %v5385_v52 }
 0xba7   :  { %2745 = vmatpush1.bf16.msra.mxu0 %v5383_v36 }
 0xba8   :  { %2746 = vmatprep.subr.bf16.mxu0 %v5388_v45 }
 0xbab   :  { %2747 = vmatpush1.bf16.msra.mxu0 %v5386_v48  ;;  %v5411_v48 = vld [vmem:[#allocation23 + $0x8] ss:$12 sps:$4 sm:$0xff]  }
 0xbac   :  { %2748 = vmatprep.subr.bf16.mxu0 %v5391_v13 }
 0xbaf   :  { %2749 = vmatpush1.bf16.msra.mxu0 %v5389_v62 }
 0xbb0   :  { %2750 = vmatprep.subr.bf16.mxu0 %v5394_v29 }
 0xbb3   :  { %2751 = vmatpush1.bf16.msra.mxu0 %v5392_v1 }
 0xbb6   :  { %2769 = vmatmul.mubr.bf16.vlgmr.msra.gmra.mrb[40].mxu0 %v7511_v15 }
 0xc69   :  { %v2233_v18 = vpop.f32.mrb[32].mxu0 }
 0xc6a   :  { %v2234_v56 = vadd.f32 %v2233_v18, %v2112_v50  ;;  %v2235_v2 = vpop.f32.mrb[33].mxu0 }
 0xc6b   :  { %v2236_v12 = vadd.f32 %v2235_v2, %v2116_v21  ;;  %v2237_v19 = vpop.f32.mrb[34].mxu0 }
 0xc6c   :  { %v2238_v55 = vadd.f32 %v2237_v19, %v2112_v50  ;;  %v2239_v40 = vpop.f32.mrb[35].mxu0  ;;  %v2252_v31 = vmax.f32 %v2234_v56, 0.0 }
 0xc6d   :  { %v2240_v32 = vadd.f32 %v2239_v40, %v2116_v21  ;;  %v2253_v52 = vmax.f32 %v2236_v12, 0.0  ;;  %v5417_v12 = vld [vmem:[#allocation23 + $0x98] ss:$12 sps:$4 sm:$0xff]  }
 0xc6e   :  { %v2254_v14 = vmax.f32 %v2238_v55, 0.0 }
 0xc6f   :  { %v2255_v36 = vmax.f32 %v2240_v32, 0.0 }
 0xc70   :  { %v2260_v45 = vpack.c.bf16 %v2254_v14, %v2252_v31 }
 0xc71   :  { %v2261_v10 = vpack.c.bf16 %v2255_v36, %v2253_v52  ;;  %v2243_v20 = vpop.f32.mrb[36].mxu0 }
 0xc72   :  { %v2244_v37 = vadd.f32 %v2243_v20, %v2112_v50  ;;  %v2245_v13 = vpop.f32.mrb[37].mxu0 }
 0xc73   :  { %v2246_v3 = vadd.f32 %v2245_v13, %v2116_v21  ;;  %v2247_v27 = vpop.f32.mrb[38].mxu0  ;;  %2431 = vmatprep.mubr.bf16.mxu1 %v2261_v10 }
 0xc74   :  { %v2248_v62 = vadd.f32 %v2247_v27, %v2112_v50  ;;  %v2249_v6 = vpop.f32.mrb[39].mxu0  ;;  %2432 = vmatmul.mubr.bf16.vlgmr.msra.gmra.mrb[28].mxu1 %v2260_v45  ;;  %v2256_v1 = vmax.f32 %v2244_v37, 0.0  ;;  %v7523_v50 = vld [vmem:[#allocation25] sm:$0x7]  ;;  %v5418_v45 = vld [vmem:[#allocation23 + $0xb0] ss:$12 sps:$4 sm:$0xff]  }
 0xc75   :  { %v2250_v29 = vadd.f32 %v2249_v6, %v2116_v21  ;;  %5073 = vmatpush3.bf16.msra.mxu1 %v5411_v48  ;;  %v2257_v43 = vmax.f32 %v2246_v3, 0.0  ;;  %v5416_v21 = vld [vmem:[#allocation23 + $0x80] ss:$12 sps:$4 sm:$0xff]   ;;  %v2596_v18 = vrot.slane %v7523_v50, %v7059_v28  ;;  %v2600_v56 = vrot.slane %v7523_v50, %v7064_v4 }
 0xc76   :  { %v2258_v11 = vmax.f32 %v2248_v62, 0.0  ;;  %5074 = vmatprep.subr.bf16.mxu1 %v6560_v16 }
 0xc77   :  { %v2259_v47 = vmax.f32 %v2250_v29, 0.0 }
 0xc78   :  { %v2262_v57 = vpack.c.bf16 %v2258_v11, %v2256_v1 }
 0xc79   :  { %v2263_v59 = vpack.c.bf16 %v2259_v47, %v2257_v43  ;;  %5075 = vmatpush3.bf16.msra.mxu1 %v5412_v30 }
 0xc7a   :  { %5076 = vmatprep.subr.bf16.mxu1 %v6560_v16 }
 0xc7b   :  { %2439 = vmatprep.mubr.bf16.mxu1 %v2263_v59 }
 0xc7c   :  { %2440 = vmatmul.mubr.bf16.gmra.mrb[32].mxu1 %v2262_v57 }
 0xc7d   :  { %5077 = vmatpush3.bf16.msra.mxu1 %v5413_v58  ;;  %5088 = vmatprep.mubr.msk.bf16.mxu1 %vm8100_vm0, %v6560_v16 }
 0xc7e   :  { %5078 = vmatprep.subr.bf16.mxu1 %v6560_v16 }
 0xc81   :  { %5079 = vmatpush3.bf16.msra.mxu1 %v5414_v63 }
 0xc82   :  { %5080 = vmatprep.subr.bf16.mxu1 %v6560_v16 }
 0xc85   :  { %5081 = vmatpush3.bf16.msra.mxu1 %v5415_v5 }
 0xc86   :  { %5082 = vmatprep.subr.bf16.mxu1 %v6560_v16 }
 0xc89   :  { %v2770_v2 = vpop.f32.mrb[40].mxu0  ;;  %5083 = vmatpush3.bf16.msra.mxu1 %v5416_v21 }
 0xc8a   :  { %v2771_v19 = vadd.f32 %v2770_v2, %v2596_v18  ;;  %v2772_v55 = vpop.f32.mrb[41].mxu0  ;;  %5084 = vmatprep.subr.bf16.mxu1 %v6560_v16  ;;  %v598_v2 = vld [vmem:[%s8160_s21] sm:$0x1] }
 0xc8b   :  { %v2774_v40 = vpop.f32.mrb[42].mxu0  ;;  %v2773_v31 = vadd.f32 %v2772_v55, %v2600_v56  ;;  %vm599_vm1 = vcmp.gt.s32.totalorder %v598_v2, 0  ;;  %v706_v55 = vand.u32 15, %v7109_v35 }
 0xc8c   :  { %v2822_v32 = vmul.f32 %v7078_v23, %v2771_v19  ;;  %v2775_v14 = vadd.f32 %v2774_v40, %v2596_v18  ;;  %v2776_v52 = vpop.f32.mrb[43].mxu0  ;;  %v2820_v10 = vmul.f32 %v7075_v17, %v2771_v19  ;;  %v2824_v20 = vmul.f32 %v7081_v24, %v2771_v19 }
 0xc8d   :  { %v2777_v36 = vadd.f32 %v2776_v52, %v2600_v56  ;;  %5085 = vmatpush3.bf16.msra.mxu1 %v5417_v12  ;;  %v2826_v48 = vmul.f32 %v7084_v26, %v2771_v19  ;;  %v704_v12 = vand.u32 15, %v7056_v9  ;;  %v729_v19 = vsel %vm599_vm1, 1, %v6558_v0 }
 0xc8e   :  { %v2823_v37 = vmul.f32 %v7078_v23, %v2775_v14  ;;  %5086 = vmatprep.subr.bf16.mxu1 %v6560_v16  ;;  %v2821_v13 = vmul.f32 %v7075_v17, %v2775_v14  ;;  %v2825_v3 = vmul.f32 %v7081_v24, %v2775_v14  ;;  %v2827_v27 = vmul.f32 %v7084_v26, %v2775_v14 }
 0xc8f   :  { %v2832_v62 = vpack.c.bf16 %v2777_v36, %v2773_v31  ;;  %v705_v40 = vand.u32 15, %v7113_v39  ;;  %v7560_v31 = vshra.s32 %v6964_v22, 3  ;;  %v733_v14 = vrot.slane %v729_v19, %v7059_v28 }
 0xc90   :  { %v2828_v6 = vpack.c.bf16 %v2821_v13, %v2820_v10  ;;  %v2829_v29 = vpack.c.bf16 %v2823_v37, %v2822_v32  ;;  %v2830_v30 = vpack.c.bf16 %v2825_v3, %v2824_v20  ;;  %v2831_v1 = vpack.c.bf16 %v2827_v27, %v2826_v48 }
 0xc91   :  { %5087 = vmatpush3.bf16.msra.mxu1 %v5418_v45  ;;  %5092 = vmatprep.subr.bf16.mxu0 %v2832_v62  ;;  %v7557_v32 = vshra.s32 %v704_v12, 3  ;;  %v707_v52 = vand.u32 15, %v7118_v42  ;;  %v7564_v36 = vshra.s32 %v706_v55, 3  ;;  %v7566_v45 = vshra.s32 %v705_v40, 3 }
 0xc92   :  { %5093 = vmatpush3.bf16.xpose.msra.mxu0 %v2832_v62  ;;  %5094 = vmatprep.mubr.bf16.mxu0 %v2828_v6  ;;  %v743_v10 = vand.u32 7, %v7056_v9  ;;  %v7570_v20 = vand.u32 7, %v6964_v22  ;;  %vm7574_vm4 = vcmp.eq.s32.totalorder %v733_v14, 1  ;;  %v708_v13 = vand.u32 15, %v7129_v51 }
 0xc93   :  { %5112 = vmatprep.subr.bf16.mxu0 %v6560_v16  ;;  %vm721_vm2 = vcmp.eq.s32.totalorder %v7557_v32, %v7560_v31  ;;  %v7578_v37 = vshra.s32 %v707_v52, 3  ;;  %v744_v3 = vand.u32 7, %v7113_v39  ;;  %vm723_vm5 = vcmp.eq.s32.totalorder %v7564_v36, %v7560_v31 }
 0xc94   :  { %5089 = vmatmul.mubr.bf16.vlgmr.msra.gmra.mrb[36].mxu1 %v7511_v15  ;;  %v709_v27 = vand.u32 15, %v7133_v53  ;;  %vm722_vm6 = vcmp.eq.s32.totalorder %v7566_v45, %v7560_v31  ;;  %v745_v62 = vand.u32 7, %v7109_v35  ;;  %v710_v6 = vand.u32 15, %v7126_v49  ;;  %vm7594_vm7 = vmand %vm721_vm2, %vm7574_vm4 }
 0xc95   :  { %vm7599_vm8 = vcmp.ge.s32.totalorder %v743_v10, %v7570_v20  ;;  %vm7606_vm9 = vmand %vm723_vm5, %vm7574_vm4  ;;  %vm724_vm10 = vcmp.eq.s32.totalorder %v7578_v37, %v7560_v31  ;;  %vm7621_vm13 = vcmp.ge.s32.totalorder %v744_v3, %v7570_v20  ;;  %v747_v55 = vand.u32 7, %v7129_v51 }
 0xc96   :  { %vm7616_vm12 = vmand %vm722_vm6, %vm7574_vm4  ;;  %vm7633_vm15 = vcmp.ge.s32.totalorder %v745_v62, %v7570_v20  ;;  %v748_v40 = vand.u32 7, %v7133_v53  ;;  %v750_v9 = vand.u32 7, %v7145_v61 }
 0xc97   :  { %vm760_vm14 = vmand %vm7594_vm7, %vm7599_vm8  ;;  %vm7689_vm8 = vcmp.ge.s32.totalorder %v747_v55, %v7570_v20 }
 0xc98   :  { %vm7641_vm1 = vmand %vm724_vm10, %vm7574_vm4  ;;  %v768_v53 = vsel %vm760_vm14, 0.0, %v6561_v7 }
 0xc99   :  { %5095 = vmatmul.mubr.bf16.vlgmr.msra.gmra.mrb[44].mxu0 %v2829_v29  ;;  %v2604_v29 = vrot.slane %v7523_v50, %v1171_v34  ;;  %v7612_v34 = vshra.s32 %v708_v13, 3  ;;  %vm761_vm5 = vmand %vm7616_vm12, %vm7621_vm13  ;;  %v749_v13 = vand.u32 7, %v7126_v49 }
 0xc9a   :  { %5098 = vmatprep.mubr.bf16.mxu0 %v2830_v30  ;;  %v769_v39 = vsel %vm761_vm5, 0.0, %v6561_v7  ;;  %vm8183_vm14 = vmand %vm7606_vm9, %vm7633_vm15 }
 0xc9b   :  { %vm725_vm6 = vcmp.eq.s32.totalorder %v7612_v34, %v7560_v31  ;;  %v770_v30 = vsel %vm8183_vm14, 0.0, %v6561_v7  ;;  %vm7743_vm5 = vcmp.ge.s32.totalorder %v749_v13, %v7570_v20 }
 0xc9c   :  { %vm7684_vm7 = vmand %vm725_vm6, %vm7574_vm4 }
 0xc9d   :  { %vm764_vm15 = vmand %vm7684_vm7, %vm7689_vm8  ;;  %vm7759_vm7 = vcmp.ge.s32.totalorder %v750_v9, %v7570_v20 }
 0xca1   :  { %5099 = vmatmul.mubr.bf16.gmra.mrb[48].mxu0 %v2831_v1  ;;  %v746_v1 = vand.u32 7, %v7118_v42 }
 0xca2   :  { %5128 = vmatprep.mubr.msk.bf16.mxu0 %vm8100_vm0, %v6560_v16  ;;  %vm7715_vm0 = vcmp.ge.s32.totalorder %v748_v40, %v7570_v20  ;;  %v772_v40 = vsel %vm764_vm15, 0.0, %v6561_v7 }
 0xca3   :  { %vm7646_vm2 = vcmp.ge.s32.totalorder %v746_v1, %v7570_v20 }
 0xca4   :  { %vm8191_vm13 = vmand %vm7641_vm1, %vm7646_vm2 }
 0xd47   :  { %v4882_v11 = vpop.f32.mrb[28].mxu1 }
 0xd48   :  { %v4883_v43 = vpop.f32.mrb[29].mxu1 }
 0xd49   :  { %v7544_v47 = vadd.f32 %v4883_v43, %v4882_v11  ;;  %v4885_v57 = vpop.f32.mrb[30].mxu1  ;;  %v7625_v43 = vshra.s32 %v709_v27, 3 }
 0xd4a   :  { %v4886_v59 = vpop.f32.mrb[31].mxu1 }
 0xd4b   :  { %v7546_v58 = vadd.f32 %v4886_v59, %v4885_v57  ;;  %v711_v57 = vand.u32 15, %v7145_v61  ;;  %vm8184_vm6 = vcmp.eq.s32.totalorder %v7625_v43, %v7560_v31  ;;  %v771_v61 = vsel %vm8191_vm13, 0.0, %v6561_v7 }
 0xd4c   :  { %vm7710_vm3 = vmand %vm8184_vm6, %vm7574_vm4 }
 0xd4d   :  { %v7664_v51 = vshra.s32 %v711_v57, 3  ;;  %vm765_vm1 = vmand %vm7710_vm3, %vm7715_vm0 }
 0xd4e   :  { %v773_v13 = vsel %vm765_vm1, 0.0, %v6561_v7 }
 0xd4f   :  { %v4888_v63 = vpop.f32.mrb[32].mxu1  ;;  %vm728_vm12 = vcmp.eq.s32.totalorder %v7664_v51, %v7560_v31 }
 0xd50   :  { %v4889_v5 = vpop.f32.mrb[33].mxu1  ;;  %vm7754_vm2 = vmand %vm728_vm12, %vm7574_vm4 }
 0xd51   :  { %v7548_v21 = vadd.f32 %v4889_v5, %v4888_v63  ;;  %v4891_v15 = vpop.f32.mrb[34].mxu1  ;;  %v7637_v5 = vshra.s32 %v710_v6, 3  ;;  %vm767_vm6 = vmand %vm7754_vm2, %vm7759_vm7 }
 0xd52   :  { %v4892_v18 = vpop.f32.mrb[35].mxu1 }
 0xd53   :  { %v7550_v56 = vadd.f32 %v4892_v18, %v4891_v15  ;;  %vm727_vm10 = vcmp.eq.s32.totalorder %v7637_v5, %v7560_v31 }
 0xd54   :  { %vm7725_vm9 = vmand %vm727_vm10, %vm7574_vm4  ;;  %vm8194_vm10 = vcmask 130048  }
 0xd55   :  { %vm8199_vm8 = vmmov %vm8194_vm10 }
 0xd56   :  { %vm766_vm14 = vmand %vm7725_vm9, %vm7743_vm5 }
 0xd57   :  { %vm8200_vm4 = vmmov %vm8199_vm8 }
 0xd58   :  { %vm8201_vm9 = vmmov %vm8200_vm4 }
 0xd59   :  { %vm8202_vm12 = vmmov %vm8200_vm4 }
 0xd5a   :  { %vm8203_vm13 = vmmov %vm8200_vm4 }
 0xd5b   :  { %vm8204_vm3 = vmmov %vm8200_vm4 }
 0xd5c   :  { %vm8205_vm0 = vmmov %vm8204_vm3 }
 0xd5d   :  { %vm8206_vm15 = vmmov %vm8205_vm0 }
 0xd5e   :  { %vm8207_vm5 = vmmov %vm8205_vm0 }
 0xd5f   :  { %vm8209_vm1 = vmmov %vm8205_vm0 }
 0xd60   :  { %vm8210_vm2 = vmmov %vm8205_vm0 }
 0xd61   :  { %vm8211_vm7 = vmmov %vm8205_vm0 }
 0xd67   :  { %v2813_v35 = vpop.f32.mrb[36].mxu1 }
 0xd68   :  { %v5090_v50 = vpop.f32.mrb[37].mxu1  ;;  %v2814_v15 = vadd.f32 %v2813_v35, %v2604_v29 }
 0xd69   :  { %v2816_v59 = vpop.f32.mrb[38].mxu1 }
 0xd6a   :  { %v2817_v18 = vadd.f32 %v2816_v59, %v2604_v29  ;;  %v5091_v2 = vpop.f32.mrb[39].mxu1 }
 0xd6c   :  { %v3007_v14 = vpack.c.bf16 %v2817_v18, %v2814_v15  ;;  %v5096_v52 = vpop.f32.mrb[44].mxu0 }
 0xd6d   :  { %v2867_v10 = vpop.f32.mrb[45].mxu0  ;;  %v2900_v3 = vmul.f32 0.17677669, %v5096_v52 }
 0xd6e   :  { %v2898_v27 = vmul.f32 0.17677669, %v2867_v10  ;;  %v5097_v62 = vpop.f32.mrb[46].mxu0  ;;  %5102 = vmatprep.subr.bf16.mxu1 %v3007_v14 }
 0xd6f   :  { %v2870_v49 = vpop.f32.mrb[47].mxu0  ;;  %5103 = vmatpush3.bf16.msra.mxu1 %v3007_v14  ;;  %v2901_v50 = vmul.f32 0.17677669, %v5097_v62  ;;  %v2908_v15 = vadd.f32 %v2900_v3, %v770_v30  ;;  %v774_v3 = vsel %vm766_vm14, 0.0, %v6561_v7  ;;  %vm8213_vm14 = vmmov %vm8205_vm0 }
 0xd70   :  { %v2899_v11 = vmul.f32 0.17677669, %v2870_v49  ;;  %v2906_v42 = vadd.f32 %v2898_v27, %v768_v53  ;;  %5132 = vmatprep.subr.bf16.mxu1 %v6560_v16  ;;  %v775_v49 = vsel %vm767_vm6, 0.0, %v6561_v7  ;;  %vm8215_vm6 = vmmov %vm8205_vm0 }
 0xd71   :  { %v2909_v55 = vadd.f32 %v2901_v50, %v771_v61  ;;  %v2921_v20 = vsel %vm8200_vm4, %v2908_v15, -inf  ;;  %vm8214_vm4 = vmmov %vm8205_vm0 }
 0xd72   :  { %v2915_v31 = vsel %vm8194_vm10, %v2906_v42, -inf  ;;  %v2907_v63 = vadd.f32 %v2899_v11, %v769_v39  ;;  %vm8208_vm10 = vmmov %vm8205_vm0 }
 0xd73   :  { %2916 = vmax.xlane.f32.xlu1 %v2915_v31  ;;  %v2924_v6 = vsel %vm8201_vm9, %v2909_v55, -inf  ;;  %vm8216_vm9 = vmmov %vm8205_vm0 }
 0xd74   :  { %v5100_v12 = vpop.f32.mrb[48].mxu0  ;;  %v2918_v19 = vsel %vm8199_vm8, %v2907_v63, -inf  ;;  %vm8212_vm8 = vmmov %vm8205_vm0 }
 0xd75   :  { %2919 = vmax.xlane.f32.xlu0 %v2918_v19  ;;  %v2883_v48 = vpop.f32.mrb[49].mxu0  ;;  %v2904_v14 = vmul.f32 0.17677669, %v5100_v12 }
 0xd76   :  { %v2902_v52 = vmul.f32 0.17677669, %v2883_v48  ;;  %v5101_v10 = vpop.f32.mrb[50].mxu0 }
 0xd77   :  { %2922 = vmax.xlane.f32.xlu1 %v2921_v20  ;;  %v2886_v53 = vpop.f32.mrb[51].mxu0  ;;  %v2905_v27 = vmul.f32 0.17677669, %v5101_v10  ;;  %v2912_v9 = vadd.f32 %v2904_v14, %v774_v3 }
 0xd78   :  { %v2903_v62 = vmul.f32 0.17677669, %v2886_v53  ;;  %v2910_v29 = vadd.f32 %v2902_v52, %v772_v40 }
 0xd79   :  { %2925 = vmax.xlane.f32.xlu0 %v2924_v6  ;;  %v2913_v35 = vadd.f32 %v2905_v27, %v775_v49  ;;  %v2933_v50 = vsel %vm8204_vm3, %v2912_v9, -inf  ;;  %vm776_vm3 = vcmp.eq.s32.totalorder %v7557_v32, %v7122_v44 }
 0xd7a   :  { %v2927_v39 = vsel %vm8202_vm12, %v2910_v29, -inf  ;;  %v2911_v30 = vadd.f32 %v2903_v62, %v773_v13  ;;  %vm8217_vm12 = vmmov %vm8205_vm0 }
 0xd7b   :  { %2928 = vmax.xlane.f32.xlu1 %v2927_v39  ;;  %v2936_v11 = vsel %vm8205_vm0, %v2913_v35, -inf  ;;  %vm778_vm0 = vcmp.eq.s32.totalorder %v7564_v36, %v7122_v44 }
 0xd7c   :  { %v2930_v1 = vsel %vm8203_vm13, %v2911_v30, -inf  ;;  %vm8218_vm13 = vmmov 0  }
 0xd7d   :  { %2931 = vmax.xlane.f32.xlu0 %v2930_v1 }
 0xd7f   :  { %2934 = vmax.xlane.f32.xlu1 %v2933_v50 }
 0xd81   :  { %2937 = vmax.xlane.f32.xlu0 %v2936_v11 }
 0xe00   :  { %v2917_v57 = vpop.xlane.xlu1 %2916 }
 0xe01   :  { %v2939_v61 = vsub.f32 %v2906_v42, %v2917_v57  ;;  %v4655_v57 = vld [vmem:[#allocation16] ss:$0 sm:$0xff] }
 0xe02   :  { %v2920_v59 = vpop.xlane.xlu0 %2919 }
 0xe03   :  { %v2947_v31 = vmul.f32 1.442695, %v2939_v61  ;;  %v2940_v18 = vsub.f32 %v2907_v63, %v2920_v59 }
 0xe04   :  { %v2923_v2 = vpop.xlane.xlu1 %2922 }
 0xe05   :  { %5591 = vpow2.f32 %v2947_v31  ;;  %v2949_v12 = vmul.f32 1.442695, %v2940_v18  ;;  %v2941_v19 = vsub.f32 %v2908_v15, %v2923_v2  ;;  %v2434_v2 = vadd.f32 %v7544_v47, %v4655_v57 }
 0xe06   :  { %v2926_v48 = vpop.xlane.xlu0 %2925 }
 0xe07   :  { %5593 = vpow2.f32 %v2949_v12  ;;  %v2951_v40 = vmul.f32 1.442695, %v2941_v19  ;;  %v2942_v14 = vsub.f32 %v2909_v55, %v2926_v48  ;;  %v2437_v48 = vadd.f32 %v7546_v58, %v4655_v57 }
 0xe08   :  { %v2929_v52 = vpop.xlane.xlu1 %2928 }
 0xe09   :  { %5595 = vpow2.f32 %v2951_v40  ;;  %v2953_v10 = vmul.f32 1.442695, %v2942_v14  ;;  %v2943_v20 = vsub.f32 %v2910_v29, %v2929_v52  ;;  %v2442_v14 = vadd.f32 %v7548_v21, %v4655_v57 }
 0xe0a   :  { %v2932_v53 = vpop.xlane.xlu0 %2931  ;;  %v7814_v52 = vadd.f32 %v2434_v2, %v7448_v33  ;;  %v7819_v47 = vadd.f32 %v2437_v48, %v7451_v46  ;;  %v5419_v33 = vld [vmem:[#allocation26] sm:$0xff]   ;;  %v5421_v46 = vld [vmem:[#allocation26 + $0x10] sm:$0xff]  }
 0xe0b   :  { %5597 = vpow2.f32 %v2953_v10  ;;  %v2955_v13 = vmul.f32 1.442695, %v2943_v20  ;;  %v2944_v3 = vsub.f32 %v2911_v30, %v2932_v53  ;;  %v2445_v10 = vadd.f32 %v7550_v56, %v4655_v57  ;;  %5113 = vmatpush3.bf16.msra.mxu0 %v5419_v33  ;;  %v5420_v56 = vld [vmem:[#allocation26 + $0x8] sm:$0xff]  }
 0xe0c   :  { %v2935_v42 = vpop.xlane.xlu1 %2934  ;;  %v7823_v58 = vadd.f32 %v2442_v14, %v7455_v60  ;;  %5114 = vmatprep.subr.bf16.mxu0 %v6560_v16 }
 0xe0d   :  { %5599 = vpow2.f32 %v2955_v13  ;;  %v2957_v27 = vmul.f32 1.442695, %v2944_v3  ;;  %v2945_v63 = vsub.f32 %v2912_v9, %v2935_v42  ;;  %v7827_v21 = vadd.f32 %v2445_v10, %v7460_v41 }
 0xe0e   :  { %v2938_v62 = vpop.xlane.xlu0 %2937 }
 0xe0f   :  { %v7787_v6 = vpop.eup %5591  ;;  %5601 = vpow2.f32 %v2957_v27  ;;  %v2959_v15 = vmul.f32 1.442695, %v2945_v63  ;;  %v2946_v49 = vsub.f32 %v2913_v35, %v2938_v62  ;;  %5115 = vmatpush3.bf16.msra.mxu0 %v5420_v56 }
 0xe10   :  { %v2963_v55 = vsel %vm8206_vm15, %v7787_v6, 0.0  ;;  %5116 = vmatprep.subr.bf16.mxu0 %v6560_v16  ;;  %vm777_vm15 = vcmp.eq.s32.totalorder %v7566_v45, %v7122_v44 }
 0xe11   :  { %v7791_v39 = vpop.eup %5593  ;;  %5603 = vpow2.f32 %v2959_v15  ;;  %v2961_v29 = vmul.f32 1.442695, %v2946_v49  ;;  %2964 = vadd.xlane.f32.xlu1 %v2963_v55 }
 0xe12   :  { %v2966_v30 = vsel %vm8207_vm5, %v7791_v39, 0.0  ;;  %vm784_vm5 = vmand %vm776_vm3, %vm7135_vm11 }
 0xe13   :  { %v7795_v1 = vpop.eup %5595  ;;  %5605 = vpow2.f32 %v2961_v29  ;;  %2967 = vadd.xlane.f32.xlu0 %v2966_v30  ;;  %5117 = vmatpush3.bf16.msra.mxu0 %v5421_v46 }
 0xe14   :  { %v2969_v9 = vsel %vm8208_vm10, %v7795_v1, 0.0  ;;  %5118 = vmatprep.subr.bf16.mxu0 %v6560_v16  ;;  %vm786_vm10 = vmand %vm778_vm0, %vm7135_vm11 }
 0xe15   :  { %v5598_v50 = vpop.eup %5597  ;;  %2970 = vadd.xlane.f32.xlu1 %v2969_v9 }
 0xe16   :  { %v2972_v35 = vsel %vm8209_vm1, %v5598_v50, 0.0  ;;  %vm779_vm1 = vcmp.eq.s32.totalorder %v7578_v37, %v7122_v44 }
 0xe17   :  { %v7800_v11 = vpop.eup %5599  ;;  %2973 = vadd.xlane.f32.xlu0 %v2972_v35 }
 0xe18   :  { %v2975_v61 = vsel %vm8210_vm2, %v7800_v11, 0.0  ;;  %vm785_vm2 = vmand %vm777_vm15, %vm7135_vm11 }
 0xe19   :  { %v5602_v59 = vpop.eup %5601  ;;  %2976 = vadd.xlane.f32.xlu1 %v2975_v61 }
 0xe1a   :  { %v2978_v31 = vsel %vm8211_vm7, %v5602_v59, 0.0  ;;  %vm787_vm7 = vmand %vm779_vm1, %vm7135_vm11 }
 0xe1b   :  { %v7805_v18 = vpop.eup %5603  ;;  %2979 = vadd.xlane.f32.xlu0 %v2978_v31 }
 0xe1c   :  { %v2981_v12 = vsel %vm8212_vm8, %v7805_v18, 0.0  ;;  %vm780_vm8 = vcmp.eq.s32.totalorder %v7612_v34, %v7122_v44 }
 0xe1d   :  { %v5606_v19 = vpop.eup %5605  ;;  %2982 = vadd.xlane.f32.xlu1 %v2981_v12 }
 0xe1e   :  { %v2984_v40 = vsel %vm8213_vm14, %v5606_v19, 0.0  ;;  %vm782_vm14 = vcmp.eq.s32.totalorder %v7637_v5, %v7122_v44 }
 0xe1f   :  { %2985 = vadd.xlane.f32.xlu0 %v2984_v40 }
 0xe21   :  { %2452 = vadd.xlane.f32.xlu1 %v7814_v52 }
 0xe23   :  { %2454 = vadd.xlane.f32.xlu0 %v7819_v47 }
 0xe25   :  { %2456 = vadd.xlane.f32.xlu1 %v7823_v58 }
 0xe27   :  { %2458 = vadd.xlane.f32.xlu0 %v7827_v21 }
 0xe9e   :  { %v2965_v60 = vpop.xlane.xlu1 %2964 }
 0xe9f   :  { %5607 = vrcp.f32 %v2965_v60 }
 0xea0   :  { %v2968_v20 = vpop.xlane.xlu0 %2967 }
 0xea1   :  { %5609 = vrcp.f32 %v2968_v20 }
 0xea2   :  { %v2971_v41 = vpop.xlane.xlu1 %2970 }
 0xea3   :  { %5611 = vrcp.f32 %v2971_v41 }
 0xea4   :  { %v2974_v53 = vpop.xlane.xlu0 %2973 }
 0xea5   :  { %5613 = vrcp.f32 %v2974_v53 }
 0xea6   :  { %v2977_v13 = vpop.xlane.xlu1 %2976 }
 0xea7   :  { %5615 = vrcp.f32 %v2977_v13 }
 0xea8   :  { %v2980_v3 = vpop.xlane.xlu0 %2979 }
 0xea9   :  { %v5608_v42 = vpop.eup %5607  ;;  %5617 = vrcp.f32 %v2980_v3 }
 0xeaa   :  { %v2983_v27 = vpop.xlane.xlu1 %2982  ;;  %v2988_v15 = vmul.f32 %v5608_v42, %v7787_v6 }
 0xeab   :  { %v5610_v63 = vpop.eup %5609  ;;  %5619 = vrcp.f32 %v2983_v27 }
 0xeac   :  { %v2986_v62 = vpop.xlane.xlu0 %2985  ;;  %v2990_v49 = vmul.f32 %v5610_v63, %v7791_v39 }
 0xead   :  { %v5612_v55 = vpop.eup %5611  ;;  %5621 = vrcp.f32 %v2986_v62 }
 0xeae   :  { %v3003_v29 = vpack.c.bf16 %v2990_v49, %v2988_v15  ;;  %v2992_v9 = vmul.f32 %v5612_v55, %v7795_v1 }
 0xeaf   :  { %v5614_v30 = vpop.eup %5613 }
 0xeb0   :  { %v2994_v35 = vmul.f32 %v5614_v30, %v5598_v50  ;;  %5104 = vmatprep.mubr.msk.bf16.mxu1 %vm8214_vm4, %v3003_v29  ;;  %v5422_v50 = vld [vmem:[#allocation26 + $0x18] sm:$0xff]   ;;  %vm781_vm4 = vcmp.eq.s32.totalorder %v7625_v43, %v7122_v44 }
 0xeb1   :  { %v5616_v57 = vpop.eup %5615  ;;  %5119 = vmatpush3.bf16.msra.mxu0 %v5422_v50  ;;  %vm789_vm0 = vmand %vm781_vm4, %vm7135_vm11 }
 0xeb2   :  { %v3004_v61 = vpack.c.bf16 %v2994_v35, %v2992_v9  ;;  %v2996_v2 = vmul.f32 %v5616_v57, %v7800_v11  ;;  %5120 = vmatprep.subr.bf16.mxu0 %v6560_v16  ;;  %v5423_v11 = vld [vmem:[#allocation26 + $0x20] sm:$0xff]  }
 0xeb3   :  { %v5618_v31 = vpop.eup %5617 }
 0xeb4   :  { %5105 = vmatmul.mubr.msk.bf16.vlgmr.msra.gmra.mrb[40].mxu1 %vm8215_vm6, %v3004_v61  ;;  %v2998_v12 = vmul.f32 %v5618_v31, %v5602_v59  ;;  %v5424_v59 = vld [vmem:[#allocation26 + $0x28] sm:$0xff]   ;;  %vm8219_vm6 = vcmask 261120  }
 0xeb5   :  { %v5620_v6 = vpop.eup %5619  ;;  %5121 = vmatpush3.bf16.msra.mxu0 %v5423_v11  ;;  %v5427_v31 = vld [vmem:[#allocation35] ss:$8 sps:$4 sm:$0xff]   ;;  %vm8222_vm3 = vmmov %vm8219_vm6 }
 0xeb6   :  { %v3005_v48 = vpack.c.bf16 %v2998_v12, %v2996_v2  ;;  %v3000_v40 = vmul.f32 %v5620_v6, %v7805_v18  ;;  %5122 = vmatprep.subr.bf16.mxu0 %v6560_v16  ;;  %v5425_v18 = vld [vmem:[#allocation26 + $0x30] sm:$0xff]   ;;  %v2453_v12 = vpop.xlane.xlu1 %2452  ;;  %v2455_v6 = vpop.xlane.xlu0 %2454  ;;  %vm8223_vm15 = vmmov %vm8222_vm3 }
 0xeb7   :  { %v5622_v39 = vpop.eup %5621  ;;  %v5429_v2 = vld [vmem:[#allocation35 + $0x4] ss:$8 sps:$4 sm:$0xff]   ;;  %vm8225_vm1 = vmmov %vm8222_vm3 }
 0xeb8   :  { %5108 = vmatprep.mubr.msk.bf16.mxu1 %vm8216_vm9, %v3005_v48  ;;  %v3002_v14 = vmul.f32 %v5622_v39, %v5606_v19  ;;  %v5426_v19 = vld [vmem:[#allocation26 + $0x38] sm:$0xff]   ;;  %v4704_v48 = vld [vmem:[#allocation28] ss:$0 sm:$0xff]  ;;  %v2460_v39 = vmul.f32 0.0078125, %v2453_v12  ;;  %vm788_vm9 = vmand %vm780_vm8, %vm7135_vm11 }
 0xeb9   :  { %5123 = vmatpush3.bf16.msra.mxu0 %v5424_v59  ;;  %vm8229_vm8 = vmmov %vm8225_vm1 }
 0xeba   :  { %v3006_v1 = vpack.c.bf16 %v3002_v14, %v3000_v40  ;;  %5124 = vmatprep.subr.bf16.mxu0 %v6560_v16  ;;  %v2457_v40 = vpop.xlane.xlu1 %2456  ;;  %v2459_v59 = vpop.xlane.xlu0 %2458  ;;  %vm8231_vm4 = vmmov %vm8225_vm1 }
 0xebc   :  { %5109 = vmatmul.mubr.msk.bf16.gmra.mrb[44].mxu1 %vm8217_vm12, %v3006_v1  ;;  %v2461_v1 = vmul.f32 0.0078125, %v2455_v6  ;;  %vm7953_vm12 = vmand %vm782_vm14, %vm7135_vm11 }
 0xebd   :  { %5148 = vmatprep.mubr.msk.bf16.mxu1 %vm8218_vm13, %v6560_v16  ;;  %5125 = vmatpush3.bf16.msra.mxu0 %v5425_v18  ;;  %vm8230_vm14 = vmmov %vm8225_vm1 }
 0xebe   :  { %5126 = vmatprep.subr.bf16.mxu0 %v6560_v16 }
 0xec1   :  { %5127 = vmatpush3.bf16.msra.mxu0 %v5426_v19  ;;  %v7858_v19 = vsub.f32 %v7814_v52, %v2460_v39 }
 0xec2   :  { %3477 = vmatprep.subr.bf16.mxu0 %v5429_v2 }
 0xf87   :  { %v5106_v10 = vpop.f32.mrb[40].mxu1 }
 0xf88   :  { %v3087_v33 = vmul.f32 %v5106_v10, %v7078_v23  ;;  %v3054_v56 = vpop.f32.mrb[41].mxu1  ;;  %v2462_v10 = vmul.f32 0.0078125, %v2457_v40 }
 0xf89   :  { %v3085_v46 = vmul.f32 %v7075_v17, %v3054_v56  ;;  %v5107_v60 = vpop.f32.mrb[42].mxu1 }
 0xf8a   :  { %v3088_v20 = vmul.f32 %v5107_v60, %v7078_v23  ;;  %v3057_v41 = vpop.f32.mrb[43].mxu1  ;;  %v7864_v60 = vsub.f32 %v7819_v47, %v2461_v1 }
 0xf8b   :  { %v3089_v53 = vadd.f32 %v3087_v33, %v3085_v46  ;;  %v3086_v13 = vmul.f32 %v7075_v17, %v3057_v41 }
 0xf8c   :  { %v2469_v47 = vmul.f32 %v7864_v60, %v7864_v60 }
 0xf8d   :  { %v3090_v3 = vadd.f32 %v3088_v20, %v3086_v13  ;;  %v2463_v20 = vmul.f32 0.0078125, %v2459_v59  ;;  %v5432_v13 = vld [vmem:[#allocation35 + $0x14] ss:$8 sps:$4 sm:$0xff]  }
 0xf8f   :  { %v5110_v42 = vpop.f32.mrb[44].mxu1  ;;  %v7877_v52 = vsub.f32 %v7827_v21, %v2463_v20  ;;  %v5433_v21 = vld [vmem:[#allocation35 + $0x20] ss:$8 sps:$4 sm:$0xff]  }
 0xf90   :  { %v3070_v27 = vpop.f32.mrb[45].mxu1  ;;  %v3095_v49 = vmul.f32 %v5110_v42, %v7084_v26  ;;  %v5435_v42 = vld [vmem:[#allocation35 + $0x24] ss:$8 sps:$4 sm:$0xff]  }
 0xf91   :  { %v3091_v63 = vmul.f32 %v7081_v24, %v3070_v27  ;;  %v5111_v62 = vpop.f32.mrb[46].mxu1  ;;  %v5438_v27 = vld [vmem:[#allocation35 + $0x34] ss:$8 sps:$4 sm:$0xff]  }
 0xf92   :  { %v3073_v15 = vpop.f32.mrb[47].mxu1  ;;  %v3096_v9 = vmul.f32 %v5111_v62, %v7084_v26  ;;  %v5441_v62 = vld [vmem:[#allocation35 + $0x44] ss:$8 sps:$4 sm:$0xff]  }
 0xf93   :  { %v3093_v55 = vadd.f32 %v3091_v63, %v3089_v53  ;;  %v3092_v29 = vmul.f32 %v7081_v24, %v3073_v15  ;;  %v7871_v53 = vsub.f32 %v7823_v58, %v2462_v10  ;;  %v2471_v58 = vmul.f32 %v7877_v52, %v7877_v52  ;;  %v5436_v63 = vld [vmem:[#allocation35 + $0x30] ss:$8 sps:$4 sm:$0xff]   ;;  %v5439_v15 = vld [vmem:[#allocation35 + $0x40] ss:$8 sps:$4 sm:$0xff]  }
 0xf95   :  { %v3097_v30 = vadd.f32 %v3095_v49, %v3093_v55  ;;  %v3094_v35 = vadd.f32 %v3092_v29, %v3090_v3  ;;  %v5430_v3 = vld [vmem:[#allocation35 + $0x10] ss:$8 sps:$4 sm:$0xff]   ;;  %v5444_v49 = vld [vmem:[#allocation35 + $0x54] ss:$8 sps:$4 sm:$0xff]   ;;  %v5447_v29 = vld [vmem:[#allocation35 + $0x64] ss:$8 sps:$4 sm:$0xff]  }
 0xf96   :  { %v5442_v55 = vld [vmem:[#allocation35 + $0x50] ss:$8 sps:$4 sm:$0xff]  }
 0xf97   :  { %v3098_v57 = vadd.f32 %v3096_v9, %v3094_v35  ;;  %v5450_v9 = vld [vmem:[#allocation35 + $0x74] ss:$8 sps:$4 sm:$0xff]   ;;  %v5448_v35 = vld [vmem:[#allocation35 + $0x70] ss:$8 sps:$4 sm:$0xff]  }
 0xf99   :  { %v3099_v61 = vpack.c.bf16 %v3098_v57, %v3097_v30  ;;  %v5445_v30 = vld [vmem:[#allocation35 + $0x60] ss:$8 sps:$4 sm:$0xff]  }
 0xf9a   :  { %v5451_v57 = vld [vmem:[#allocation32] sm:$0xff]  }
 0xf9b   :  { %5129 = vmatmul.mubr.bf16.vlgmr.msra.gmra.mrb[52].mxu0 %v3099_v61  ;;  %5133 = vmatpush3.bf16.msra.mxu1 %v5451_v57  ;;  %v5452_v61 = vld [vmem:[#allocation32 + $0x8] sm:$0xff]   ;;  %v5454_v57 = vld [vmem:[#allocation32 + $0x18] sm:$0xff]  }
 0xf9c   :  { %3509 = vmatprep.mubr.bf16.mxu0 %v6558_v0  ;;  %3478 = vmatpush1.bf16.msra.mxu0 %v5427_v31 }
 0xf9d   :  { %3479 = vmatprep.subr.bf16.mxu0 %v5432_v13  ;;  %5134 = vmatprep.subr.bf16.mxu1 %v6560_v16  ;;  %v4672_v13 = vld [vmem:[#allocation17] ss:$0 sm:$0xff] }
 0xf9f   :  { %5135 = vmatpush3.bf16.msra.mxu1 %v5452_v61 }
 0xfa0   :  { %3480 = vmatpush1.bf16.msra.mxu0 %v5430_v3  ;;  %5136 = vmatprep.subr.bf16.mxu1 %v6560_v16 }
 0xfa1   :  { %3481 = vmatprep.subr.bf16.mxu0 %v5435_v42 }
 0xfa4   :  { %3482 = vmatpush1.bf16.msra.mxu0 %v5433_v21 }
 0xfa5   :  { %3483 = vmatprep.subr.bf16.mxu0 %v5438_v27 }
 0xfa8   :  { %3484 = vmatpush1.bf16.msra.mxu0 %v5436_v63  ;;  %v5453_v63 = vld [vmem:[#allocation32 + $0x10] sm:$0xff]  }
 0xfa9   :  { %3485 = vmatprep.subr.bf16.mxu0 %v5441_v62  ;;  %5137 = vmatpush3.bf16.msra.mxu1 %v5453_v63 }
 0xfaa   :  { %5138 = vmatprep.subr.bf16.mxu1 %v6560_v16 }
 0xfac   :  { %3486 = vmatpush1.bf16.msra.mxu0 %v5439_v15  ;;  %v4673_v15 = vld [vmem:[#allocation19] ss:$0 sm:$0xff] }
 0xfad   :  { %3487 = vmatprep.subr.bf16.mxu0 %v5444_v49  ;;  %5139 = vmatpush3.bf16.msra.mxu1 %v5454_v57 }
 0xfae   :  { %5140 = vmatprep.subr.bf16.mxu1 %v6560_v16 }
 0xfb0   :  { %3488 = vmatpush1.bf16.msra.mxu0 %v5442_v55 }
 0xfb1   :  { %3489 = vmatprep.subr.bf16.mxu0 %v5447_v29 }
 0xfb4   :  { %3490 = vmatpush1.bf16.msra.mxu0 %v5445_v30 }
 0xfb5   :  { %3491 = vmatprep.subr.bf16.mxu0 %v5450_v9 }
 0xfb8   :  { %3492 = vmatpush1.bf16.msra.mxu0 %v5448_v35 }
0x106e   :  { %v3205_v14 = vpop.f32.mrb[52].mxu0 }
0x106f   :  { %v3206_v50 = vadd.f32 %v4704_v48, %v3205_v14  ;;  %v5130_v11 = vpop.f32.mrb[53].mxu0 }
0x1070   :  { %v3208_v18 = vpop.f32.mrb[54].mxu0 }
0x1071   :  { %v7861_v33 = vadd.f32 %v3206_v50, %v7465_v8  ;;  %v3209_v56 = vadd.f32 %v4704_v48, %v3208_v18  ;;  %v5131_v46 = vpop.f32.mrb[55].mxu0  ;;  %v2468_v8 = vmul.f32 %v7858_v19, %v7858_v19 }
0x1073   :  { %v7867_v41 = vadd.f32 %v3209_v56, %v7469_v38  ;;  %3214 = vadd.xlane.f32.xlu1 %v7861_v33  ;;  %v2470_v38 = vmul.f32 %v7871_v53, %v7871_v53 }
0x1075   :  { %3216 = vadd.xlane.f32.xlu0 %v7867_v41 }
0x1077   :  { %2472 = vadd.xlane.f32.xlu1 %v2468_v8 }
0x1079   :  { %2474 = vadd.xlane.f32.xlu0 %v2469_v47 }
0x107b   :  { %2476 = vadd.xlane.f32.xlu1 %v2470_v38 }
0x107d   :  { %2478 = vadd.xlane.f32.xlu0 %v2471_v58 }
0x1100   :  { %v3215_v31 = vpop.xlane.xlu1 %3214 }
0x1101   :  { %v3218_v2 = vmul.f32 0.0078125, %v3215_v31  ;;  %v5455_v31 = vld [vmem:[#allocation32 + $0x20] sm:$0xff]  }
0x1102   :  { %v3217_v12 = vpop.xlane.xlu0 %3216  ;;  %5141 = vmatpush3.bf16.msra.mxu1 %v5455_v31 }
0x1103   :  { %v7888_v6 = vsub.f32 %v7861_v33, %v3218_v2  ;;  %v3219_v48 = vmul.f32 0.0078125, %v3217_v12  ;;  %5142 = vmatprep.subr.bf16.mxu1 %v6560_v16 }
0x1104   :  { %v2473_v39 = vpop.xlane.xlu1 %2472 }
0x1105   :  { %v7891_v40 = vsub.f32 %v7867_v41, %v3219_v48  ;;  %v2480_v14 = vmul.f32 0.0078125, %v2473_v39  ;;  %v3222_v1 = vmul.f32 %v7888_v6, %v7888_v6  ;;  %v5456_v48 = vld [vmem:[#allocation32 + $0x28] sm:$0xff]   ;;  %v5458_v39 = vld [vmem:[#allocation32 + $0x38] sm:$0xff]  }
0x1106   :  { %v2475_v50 = vpop.xlane.xlu0 %2474  ;;  %5143 = vmatpush3.bf16.msra.mxu1 %v5456_v48 }
0x1107   :  { %v2484_v11 = vadd.f32 1e-05, %v2480_v14  ;;  %v2481_v59 = vmul.f32 0.0078125, %v2475_v50  ;;  %3224 = vadd.xlane.f32.xlu1 %v3222_v1  ;;  %v3223_v18 = vmul.f32 %v7891_v40, %v7891_v40  ;;  %5144 = vmatprep.subr.bf16.mxu1 %v6560_v16 }
0x1108   :  { %v2477_v10 = vpop.xlane.xlu1 %2476 }
0x1109   :  { %5623 = vrsqrt.f32 %v2484_v11  ;;  %v2485_v56 = vadd.f32 1e-05, %v2481_v59  ;;  %v2482_v46 = vmul.f32 0.0078125, %v2477_v10  ;;  %3226 = vadd.xlane.f32.xlu0 %v3223_v18 }
0x110a   :  { %v2479_v20 = vpop.xlane.xlu0 %2478 }
0x110b   :  { %5625 = vrsqrt.f32 %v2485_v56  ;;  %v2486_v8 = vadd.f32 1e-05, %v2482_v46  ;;  %v2483_v47 = vmul.f32 0.0078125, %v2479_v20  ;;  %v4713_v56 = vld [vmem:[#allocation29] ss:$0 sm:$0xff] }
0x110d   :  { %5627 = vrsqrt.f32 %v2486_v8  ;;  %v2487_v38 = vadd.f32 1e-05, %v2483_v47 }
0x110f   :  { %5629 = vrsqrt.f32 %v2487_v38  ;;  %v4714_v38 = vld [vmem:[#allocation31] ss:$0 sm:$0xff] }
0x1113   :  { %v5624_v58 = vpop.eup %5623 }
0x1114   :  { %v2492_v3 = vmul.f32 %v5624_v58, %v7858_v19 }
0x1115   :  { %v5626_v42 = vpop.eup %5625 }
0x1116   :  { %v2493_v21 = vmul.f32 %v5626_v42, %v7864_v60  ;;  %v2503_v27 = vmul.f32 %v4672_v13, %v2492_v3 }
0x1117   :  { %v5628_v62 = vpop.eup %5627 }
0x1118   :  { %v2504_v49 = vmul.f32 %v4672_v13, %v2493_v21  ;;  %v2514_v29 = vadd.f32 %v4673_v15, %v2503_v27  ;;  %v2494_v9 = vmul.f32 %v5628_v62, %v7871_v53  ;;  %v3385_v21 = vld [vmem:[#allocation37] sm:$0x3] }
0x1119   :  { %v5630_v55 = vpop.eup %5629  ;;  %v3390_v27 = vrot.slane %v3385_v21, %v7059_v28  ;;  %v3394_v62 = vrot.slane %v3385_v21, %v7064_v4 }
0x111a   :  { %v2515_v30 = vadd.f32 %v4673_v15, %v2504_v49  ;;  %v2495_v35 = vmul.f32 %v5630_v55, %v7877_v52  ;;  %v2505_v60 = vmul.f32 %v4672_v13, %v2494_v9  ;;  %v5457_v52 = vld [vmem:[#allocation32 + $0x30] sm:$0xff]  }
0x111b   :  { %5145 = vmatpush3.bf16.msra.mxu1 %v5457_v52 }
0x111c   :  { %v3367_v19 = vpack.c.bf16 %v2515_v30, %v2514_v29  ;;  %v2506_v61 = vmul.f32 %v4672_v13, %v2495_v35  ;;  %v2516_v12 = vadd.f32 %v4673_v15, %v2505_v60  ;;  %5146 = vmatprep.subr.bf16.mxu1 %v6560_v16 }
0x111e   :  { %3510 = vmatmul.mubr.bf16.vlgmr.msra.gmra.mrb[56].mxu0 %v3367_v19  ;;  %v2517_v2 = vadd.f32 %v4673_v15, %v2506_v61 }
0x111f   :  { %3519 = vmatprep.mubr.bf16.mxu0 %v6558_v0  ;;  %5147 = vmatpush3.bf16.msra.mxu1 %v5458_v39  ;;  %v4715_v39 = vld [vmem:[#allocation34] ss:$0 sm:$0xff] }
0x1120   :  { %v3368_v53 = vpack.c.bf16 %v2517_v2, %v2516_v12 }
0x1126   :  { %3520 = vmatmul.mubr.bf16.gmra.mrb[60].mxu0 %v3368_v53 }
0x1194   :  { %v3225_v14 = vpop.xlane.xlu1 %3224 }
0x1195   :  { %v3228_v1 = vmul.f32 0.0078125, %v3225_v14 }
0x1196   :  { %v3227_v50 = vpop.xlane.xlu0 %3226 }
0x1197   :  { %v3230_v11 = vadd.f32 1e-05, %v3228_v1  ;;  %v3229_v59 = vmul.f32 0.0078125, %v3227_v50 }
0x1199   :  { %5631 = vrsqrt.f32 %v3230_v11  ;;  %v3231_v18 = vadd.f32 1e-05, %v3229_v59 }
0x119b   :  { %5633 = vrsqrt.f32 %v3231_v18 }
0x11a3   :  { %v5632_v10 = vpop.eup %5631 }
0x11a4   :  { %v3234_v46 = vmul.f32 %v5632_v10, %v7888_v6 }
0x11a5   :  { %v5634_v20 = vpop.eup %5633 }
0x11a6   :  { %v3243_v8 = vmul.f32 %v4713_v56, %v3234_v46  ;;  %v3235_v47 = vmul.f32 %v5634_v20, %v7891_v40 }
0x11a8   :  { %v3244_v58 = vmul.f32 %v4713_v56, %v3235_v47  ;;  %v3252_v13 = vadd.f32 %v4714_v38, %v3243_v8 }
0x11aa   :  { %v3253_v3 = vadd.f32 %v4714_v38, %v3244_v58 }
0x11ac   :  { %v3254_v42 = vpack.c.bf16 %v3253_v3, %v3252_v13 }
0x11ae   :  { %5149 = vmatmul.mubr.bf16.vlgmr.msra.gmra.mrb[48].mxu1 %v3254_v42 }
0x11f1   :  { %v3511_v63 = vpop.f32.mrb[56].mxu0 }
0x11f2   :  { %v3513_v15 = vpop.f32.mrb[57].mxu0  ;;  %v3512_v55 = vadd.f32 %v3511_v63, %v3390_v27  ;;  %v792_v63 = vsel %vm784_vm5, 0.0, %v6561_v7 }
0x11f3   :  { %v3515_v49 = vpop.f32.mrb[58].mxu0  ;;  %v3514_v30 = vadd.f32 %v3513_v15, %v3394_v62 }
0x11f4   :  { %v3516_v6 = vadd.f32 %v3515_v49, %v3390_v27  ;;  %v3517_v29 = vpop.f32.mrb[59].mxu0  ;;  %v793_v49 = vsel %vm785_vm2, 0.0, %v6561_v7  ;;  %vm8227_vm2 = vmmov %vm8225_vm1 }
0x11f5   :  { %v3518_v9 = vadd.f32 %v3517_v29, %v3394_v62 }
0x11f6   :  { %v3542_v40 = vpack.c.bf16 %v3516_v6, %v3512_v55  ;;  %v794_v55 = vsel %vm786_vm10, 0.0, %v6561_v7  ;;  %vm8224_vm10 = vmmov %vm8222_vm3 }
0x11f7   :  { %v3717_v35 = vpack.c.bf16 %v3518_v9, %v3514_v30  ;;  %v795_v30 = vsel %vm787_vm7, 0.0, %v6561_v7  ;;  %vm8228_vm7 = vmmov %vm8225_vm1 }
0x11f8   :  { %5152 = vmatprep.subr.bf16.mxu0 %v3542_v40 }
0x11f9   :  { %v3521_v57 = vpop.f32.mrb[60].mxu0  ;;  %5153 = vmatpush3.bf16.xpose.msra.mxu0 %v3542_v40  ;;  %5164 = vmatprep.subr.bf16.mxu1 %v3717_v35 }
0x11fa   :  { %v3523_v19 = vpop.f32.mrb[61].mxu0  ;;  %5165 = vmatpush3.bf16.msra.mxu1 %v3717_v35  ;;  %v3522_v60 = vadd.f32 %v3521_v57, %v3390_v27 }
0x11fb   :  { %v3525_v61 = vpop.f32.mrb[62].mxu0  ;;  %v3524_v12 = vadd.f32 %v3523_v19, %v3394_v62 }
0x11fc   :  { %v3526_v31 = vadd.f32 %v3525_v61, %v3390_v27  ;;  %v3527_v2 = vpop.f32.mrb[63].mxu0  ;;  %v796_v61 = vsel %vm788_vm9, 0.0, %v6561_v7  ;;  %vm8233_vm9 = vmmov %vm8225_vm1 }
0x11fd   :  { %v3528_v48 = vadd.f32 %v3527_v2, %v3394_v62 }
0x11fe   :  { %v3543_v53 = vpack.c.bf16 %v3526_v31, %v3522_v60 }
0x11ff   :  { %v3718_v52 = vpack.c.bf16 %v3528_v48, %v3524_v12  ;;  %v798_v48 = vsel %vm7953_vm12, 0.0, %v6561_v7  ;;  %vm8234_vm12 = vmmov %vm8225_vm1 }
0x1200   :  { %5154 = vmatprep.subr.bf16.mxu0 %v3543_v53 }
0x1201   :  { %5155 = vmatpush3.bf16.xpose.msra.mxu0 %v3543_v53  ;;  %5166 = vmatprep.subr.bf16.mxu1 %v3718_v52 }
0x1202   :  { %5167 = vmatpush3.bf16.msra.mxu1 %v3718_v52  ;;  %5176 = vmatprep.subr.bf16.mxu0 %v6560_v16 }
0x1281   :  { %v3360_v14 = vpop.f32.mrb[48].mxu1 }
0x1282   :  { %v3361_v1 = vadd.f32 %v4715_v39, %v3360_v14  ;;  %v5150_v50 = vpop.f32.mrb[49].mxu1 }
0x1283   :  { %v3363_v11 = vpop.f32.mrb[50].mxu1 }
0x1284   :  { %v3364_v59 = vadd.f32 %v4715_v39, %v3363_v11  ;;  %v5151_v18 = vpop.f32.mrb[51].mxu1  ;;  %v3532_v10 = vmul.f32 %v7078_v23, %v3361_v1  ;;  %v3530_v56 = vmul.f32 %v7075_v17, %v3361_v1  ;;  %v3534_v46 = vmul.f32 %v7081_v24, %v3361_v1 }
0x1285   :  { %v3536_v20 = vmul.f32 %v7084_v26, %v3361_v1 }
0x1286   :  { %v3533_v8 = vmul.f32 %v7078_v23, %v3364_v59  ;;  %v3531_v47 = vmul.f32 %v7075_v17, %v3364_v59  ;;  %v3535_v38 = vmul.f32 %v7081_v24, %v3364_v59  ;;  %v3537_v58 = vmul.f32 %v7084_v26, %v3364_v59 }
0x1288   :  { %v3539_v13 = vpack.c.bf16 %v3533_v8, %v3532_v10  ;;  %v3538_v3 = vpack.c.bf16 %v3531_v47, %v3530_v56  ;;  %v3540_v42 = vpack.c.bf16 %v3535_v38, %v3534_v46  ;;  %v3541_v21 = vpack.c.bf16 %v3537_v58, %v3536_v20 }
0x128a   :  { %5156 = vmatprep.mubr.bf16.mxu0 %v3538_v3 }
0x128b   :  { %5157 = vmatmul.mubr.bf16.vlgmr.msra.gmra.mrb[64].mxu0 %v3539_v13 }
0x128c   :  { %5160 = vmatprep.mubr.bf16.mxu0 %v3540_v42 }
0x1293   :  { %5161 = vmatmul.mubr.bf16.gmra.mrb[68].mxu0 %v3541_v21 }
0x1294   :  { %5192 = vmatprep.mubr.msk.bf16.mxu0 %vm8218_vm13, %v6560_v16  ;;  %vm783_vm13 = vcmp.eq.s32.totalorder %v7664_v51, %v7122_v44  ;;  %v797_v51 = vsel %vm789_vm0, 0.0, %v6561_v7  ;;  %vm8237_vm0 = vmmov %vm8225_vm1 }
0x1295   :  { %vm791_vm5 = vmand %vm783_vm13, %vm7135_vm11 }
0x1296   :  { %v799_v1 = vsel %vm791_vm5, 0.0, %v6561_v7  ;;  %vm8226_vm11 = vmmov %vm8225_vm1 }
0x1297   :  { %vm8235_vm13 = vmmov %vm8225_vm1 }
0x1298   :  { %vm8239_vm5 = vmmov %vm8237_vm0 }
0x135e   :  { %v5158_v27 = vpop.f32.mrb[64].mxu0 }
0x135f   :  { %v3578_v32 = vpop.f32.mrb[65].mxu0  ;;  %v3611_v36 = vmul.f32 0.17677669, %v5158_v27 }
0x1360   :  { %v3609_v62 = vmul.f32 0.17677669, %v3578_v32  ;;  %v5159_v15 = vpop.f32.mrb[66].mxu0 }
0x1361   :  { %v3581_v45 = vpop.f32.mrb[67].mxu0  ;;  %v3612_v37 = vmul.f32 0.17677669, %v5159_v15  ;;  %v3619_v35 = vadd.f32 %v3611_v36, %v794_v55 }
0x1362   :  { %v3610_v6 = vmul.f32 0.17677669, %v3581_v45  ;;  %v3617_v29 = vadd.f32 %v3609_v62, %v792_v63 }
0x1363   :  { %v3620_v57 = vadd.f32 %v3612_v37, %v795_v30  ;;  %v3631_v12 = vsel %vm8223_vm15, %v3619_v35, -inf  ;;  %vm8238_vm15 = vmmov %vm8237_vm0 }
0x1364   :  { %v3625_v9 = vsel %vm8219_vm6, %v3617_v29, -inf  ;;  %v3618_v40 = vadd.f32 %v3610_v6, %v793_v49  ;;  %vm8232_vm6 = vmmov %vm8225_vm1 }
0x1365   :  { %3626 = vmax.xlane.f32.xlu1 %v3625_v9  ;;  %v3634_v39 = vsel %vm8224_vm10, %v3620_v57, -inf  ;;  %vm8240_vm10 = vmmov %vm8237_vm0 }
0x1366   :  { %v5162_v5 = vpop.f32.mrb[68].mxu0  ;;  %v3628_v43 = vsel %vm8222_vm3, %v3618_v40, -inf  ;;  %vm8236_vm3 = vmmov %vm8225_vm1 }
0x1367   :  { %3629 = vmax.xlane.f32.xlu0 %v3628_v43  ;;  %v3594_v19 = vpop.f32.mrb[69].mxu0  ;;  %v3615_v60 = vmul.f32 0.17677669, %v5162_v5 }
0x1368   :  { %v3613_v31 = vmul.f32 0.17677669, %v3594_v19  ;;  %v5163_v2 = vpop.f32.mrb[70].mxu0 }
0x1369   :  { %3632 = vmax.xlane.f32.xlu1 %v3631_v12  ;;  %v3597_v44 = vpop.f32.mrb[71].mxu0  ;;  %v3616_v53 = vmul.f32 0.17677669, %v5163_v2  ;;  %v3623_v11 = vadd.f32 %v3615_v60, %v798_v48 }
0x136a   :  { %v3614_v52 = vmul.f32 0.17677669, %v3597_v44  ;;  %v3621_v14 = vadd.f32 %v3613_v31, %v796_v61 }
0x136b   :  { %3635 = vmax.xlane.f32.xlu0 %v3634_v39  ;;  %v3624_v18 = vadd.f32 %v3616_v53, %v799_v1  ;;  %v3643_v10 = vsel %vm8227_vm2, %v3623_v11, -inf  ;;  %v5459_v53 = vld [vmem:[#allocation38] sm:$0xff]   ;;  %v5461_v39 = vld [vmem:[#allocation38 + $0x10] sm:$0xff]  }
0x136c   :  { %v3637_v50 = vsel %vm8225_vm1, %v3621_v14, -inf  ;;  %v3622_v54 = vadd.f32 %v3614_v52, %v797_v51  ;;  %5177 = vmatpush3.bf16.msra.mxu0 %v5459_v53  ;;  %v5460_v52 = vld [vmem:[#allocation38 + $0x8] sm:$0xff]  }
0x136d   :  { %3638 = vmax.xlane.f32.xlu1 %v3637_v50  ;;  %v3646_v56 = vsel %vm8228_vm7, %v3624_v18, -inf  ;;  %5178 = vmatprep.subr.bf16.mxu0 %v6560_v16 }
0x136e   :  { %v3640_v59 = vsel %vm8226_vm11, %v3622_v54, -inf }
0x136f   :  { %3641 = vmax.xlane.f32.xlu0 %v3640_v59 }
0x1370   :  { %5179 = vmatpush3.bf16.msra.mxu0 %v5460_v52 }
0x1371   :  { %3644 = vmax.xlane.f32.xlu1 %v3643_v10  ;;  %5180 = vmatprep.subr.bf16.mxu0 %v6560_v16 }
0x1373   :  { %3647 = vmax.xlane.f32.xlu0 %v3646_v56 }
0x1374   :  { %5181 = vmatpush3.bf16.msra.mxu0 %v5461_v39 }
0x1375   :  { %5182 = vmatprep.subr.bf16.mxu0 %v6560_v16 }
0x13f2   :  { %v3627_v46 = vpop.xlane.xlu1 %3626 }
0x13f3   :  { %v3649_v20 = vsub.f32 %v3617_v29, %v3627_v46 }
0x13f4   :  { %v3630_v8 = vpop.xlane.xlu0 %3629 }
0x13f5   :  { %v3657_v47 = vmul.f32 1.442695, %v3649_v20  ;;  %v3650_v7 = vsub.f32 %v3618_v40, %v3630_v8 }
0x13f6   :  { %v3633_v38 = vpop.xlane.xlu1 %3632 }
0x13f7   :  { %5635 = vpow2.f32 %v3657_v47  ;;  %v3659_v58 = vmul.f32 1.442695, %v3650_v7  ;;  %v3651_v13 = vsub.f32 %v3619_v35, %v3633_v38 }
0x13f8   :  { %v3636_v3 = vpop.xlane.xlu0 %3635 }
0x13f9   :  { %5637 = vpow2.f32 %v3659_v58  ;;  %v3661_v42 = vmul.f32 1.442695, %v3651_v13  ;;  %v3652_v21 = vsub.f32 %v3620_v57, %v3636_v3 }
0x13fa   :  { %v3639_v27 = vpop.xlane.xlu1 %3638 }
0x13fb   :  { %5639 = vpow2.f32 %v3661_v42  ;;  %v3663_v32 = vmul.f32 1.442695, %v3652_v21  ;;  %v3653_v63 = vsub.f32 %v3621_v14, %v3639_v27 }
0x13fc   :  { %v3642_v36 = vpop.xlane.xlu0 %3641 }
0x13fd   :  { %5641 = vpow2.f32 %v3663_v32  ;;  %v3665_v62 = vmul.f32 1.442695, %v3653_v63  ;;  %v3654_v15 = vsub.f32 %v3622_v54, %v3642_v36 }
0x13fe   :  { %v3645_v45 = vpop.xlane.xlu1 %3644 }
0x13ff   :  { %5643 = vpow2.f32 %v3665_v62  ;;  %v3667_v49 = vmul.f32 1.442695, %v3654_v15  ;;  %v3655_v55 = vsub.f32 %v3623_v11, %v3645_v45 }
0x1400   :  { %v3648_v37 = vpop.xlane.xlu0 %3647 }
0x1401   :  { %v5636_v6 = vpop.eup %5635  ;;  %5645 = vpow2.f32 %v3667_v49  ;;  %v3669_v29 = vmul.f32 1.442695, %v3655_v55  ;;  %v3656_v30 = vsub.f32 %v3624_v18, %v3648_v37  ;;  %v5462_v55 = vld [vmem:[#allocation38 + $0x18] sm:$0xff]   ;;  %v5463_v37 = vld [vmem:[#allocation38 + $0x20] sm:$0xff]  }
0x1402   :  { %v3673_v9 = vsel %vm8229_vm8, %v5636_v6, 0.0  ;;  %5183 = vmatpush3.bf16.msra.mxu0 %v5462_v55  ;;  %v5488_v55 = vld [vmem:[#allocation44 + $0x70] ss:$8 sps:$4 sm:$0xff]  }
0x1403   :  { %v5638_v40 = vpop.eup %5637  ;;  %5647 = vpow2.f32 %v3669_v29  ;;  %v3671_v35 = vmul.f32 1.442695, %v3656_v30  ;;  %3674 = vadd.xlane.f32.xlu1 %v3673_v9  ;;  %5184 = vmatprep.subr.bf16.mxu0 %v6560_v16  ;;  %v5465_v29 = vld [vmem:[#allocation38 + $0x30] sm:$0xff]   ;;  %v5466_v30 = vld [vmem:[#allocation38 + $0x38] sm:$0xff]  }
0x1404   :  { %v3676_v34 = vsel %vm8230_vm14, %v5638_v40, 0.0 }
0x1405   :  { %v5640_v5 = vpop.eup %5639  ;;  %5649 = vpow2.f32 %v3671_v35  ;;  %3677 = vadd.xlane.f32.xlu0 %v3676_v34 }
0x1406   :  { %v3679_v43 = vsel %vm8231_vm4, %v5640_v5, 0.0  ;;  %5185 = vmatpush3.bf16.msra.mxu0 %v5463_v37  ;;  %v5490_v37 = vld [vmem:[#allocation44 + $0x74] ss:$8 sps:$4 sm:$0xff]   ;;  %vm4443_vm4 = vcmask 7168  }
0x1407   :  { %v5642_v57 = vpop.eup %5641  ;;  %3680 = vadd.xlane.f32.xlu1 %v3679_v43  ;;  %5186 = vmatprep.subr.bf16.mxu0 %v6560_v16 }
0x1408   :  { %v3682_v19 = vsel %vm8232_vm6, %v5642_v57, 0.0 }
0x1409   :  { %v5644_v61 = vpop.eup %5643  ;;  %3683 = vadd.xlane.f32.xlu0 %v3682_v19 }
0x140a   :  { %v3685_v60 = vsel %vm8233_vm9, %v5644_v61, 0.0 }
0x140b   :  { %v5646_v31 = vpop.eup %5645  ;;  %3686 = vadd.xlane.f32.xlu1 %v3685_v60 }
0x140c   :  { %v3688_v2 = vsel %vm8234_vm12, %v5646_v31, 0.0 }
0x140d   :  { %v5648_v12 = vpop.eup %5647  ;;  %3689 = vadd.xlane.f32.xlu0 %v3688_v2 }
0x140e   :  { %v3691_v44 = vsel %vm8235_vm13, %v5648_v12, 0.0 }
0x140f   :  { %v5650_v51 = vpop.eup %5649  ;;  %3692 = vadd.xlane.f32.xlu1 %v3691_v44 }
0x1410   :  { %v3694_v48 = vsel %vm8236_vm3, %v5650_v51, 0.0 }
0x1411   :  { %3695 = vadd.xlane.f32.xlu0 %v3694_v48 }
0x1490   :  { %v3675_v14 = vpop.xlane.xlu1 %3674 }
0x1491   :  { %5651 = vrcp.f32 %v3675_v14 }
0x1492   :  { %v3678_v1 = vpop.xlane.xlu0 %3677 }
0x1493   :  { %5653 = vrcp.f32 %v3678_v1 }
0x1494   :  { %v3681_v50 = vpop.xlane.xlu1 %3680 }
0x1495   :  { %5655 = vrcp.f32 %v3681_v50 }
0x1496   :  { %v3684_v54 = vpop.xlane.xlu0 %3683 }
0x1497   :  { %5657 = vrcp.f32 %v3684_v54 }
0x1498   :  { %v3687_v11 = vpop.xlane.xlu1 %3686 }
0x1499   :  { %5659 = vrcp.f32 %v3687_v11 }
0x149a   :  { %v3690_v59 = vpop.xlane.xlu0 %3689 }
0x149b   :  { %v5652_v18 = vpop.eup %5651  ;;  %5661 = vrcp.f32 %v3690_v59 }
0x149c   :  { %v3693_v10 = vpop.xlane.xlu1 %3692  ;;  %v3698_v20 = vmul.f32 %v5652_v18, %v5636_v6  ;;  %v5464_v6 = vld [vmem:[#allocation38 + $0x28] sm:$0xff]  }
0x149d   :  { %v5654_v56 = vpop.eup %5653  ;;  %5663 = vrcp.f32 %v3693_v10  ;;  %5187 = vmatpush3.bf16.msra.mxu0 %v5464_v6  ;;  %v5689_v6 = vld [vmem:[%s8144_s8 + $0x40] sm:$0xff]  }
0x149e   :  { %v3696_v46 = vpop.xlane.xlu0 %3695  ;;  %v3700_v8 = vmul.f32 %v5654_v56, %v5638_v40  ;;  %5188 = vmatprep.subr.bf16.mxu0 %v6560_v16 }
0x149f   :  { %v5656_v47 = vpop.eup %5655  ;;  %5665 = vrcp.f32 %v3696_v46 }
0x14a0   :  { %v3713_v7 = vpack.c.bf16 %v3700_v8, %v3698_v20  ;;  %v3702_v58 = vmul.f32 %v5656_v47, %v5640_v5  ;;  %v5472_v20 = vld [vmem:[#allocation44 + $0x14] ss:$8 sps:$4 sm:$0xff]   ;;  %v5470_v8 = vld [vmem:[#allocation44 + $0x10] ss:$8 sps:$4 sm:$0xff]  }
0x14a1   :  { %v5658_v38 = vpop.eup %5657  ;;  %5189 = vmatpush3.bf16.msra.mxu0 %v5465_v29  ;;  %v5491_v29 = vld [vmem:[#allocation47 + $0x40] sm:$0xff]  }
0x14a2   :  { %v3704_v13 = vmul.f32 %v5658_v38, %v5642_v57  ;;  %5168 = vmatprep.mubr.msk.bf16.mxu1 %vm8237_vm0, %v3713_v7  ;;  %5190 = vmatprep.subr.bf16.mxu0 %v6560_v16 }
0x14a3   :  { %v5660_v3 = vpop.eup %5659 }
0x14a4   :  { %v3714_v42 = vpack.c.bf16 %v3704_v13, %v3702_v58  ;;  %v3706_v27 = vmul.f32 %v5660_v3, %v5644_v61 }
0x14a5   :  { %v5662_v21 = vpop.eup %5661  ;;  %5191 = vmatpush3.bf16.msra.mxu0 %v5466_v30  ;;  %v5492_v30 = vld [vmem:[#allocation47] sm:$0xff]  }
0x14a6   :  { %5169 = vmatmul.mubr.msk.bf16.vlgmr.msra.gmra.mrb[52].mxu1 %vm8238_vm15, %v3714_v42  ;;  %v3708_v32 = vmul.f32 %v5662_v21, %v5646_v31  ;;  %v5475_v42 = vld [vmem:[#allocation44 + $0x24] ss:$8 sps:$4 sm:$0xff]   ;;  %v5473_v21 = vld [vmem:[#allocation44 + $0x20] ss:$8 sps:$4 sm:$0xff]   ;;  %4952 = vmatprep.subr.bf16.mxu0 %v5491_v29 }
0x14a7   :  { %v5664_v63 = vpop.eup %5663 }
0x14a8   :  { %v3715_v36 = vpack.c.bf16 %v3708_v32, %v3706_v27  ;;  %v3710_v15 = vmul.f32 %v5664_v63, %v5648_v12  ;;  %v5478_v27 = vld [vmem:[#allocation44 + $0x34] ss:$8 sps:$4 sm:$0xff]   ;;  %v5476_v32 = vld [vmem:[#allocation44 + $0x30] ss:$8 sps:$4 sm:$0xff]   ;;  %v5481_v63 = vld [vmem:[#allocation44 + $0x44] ss:$8 sps:$4 sm:$0xff]  }
0x14a9   :  { %v5666_v62 = vpop.eup %5665 }
0x14aa   :  { %5172 = vmatprep.mubr.msk.bf16.mxu1 %vm8239_vm5, %v3715_v36  ;;  %v3712_v45 = vmul.f32 %v5666_v62, %v5650_v51  ;;  %v5479_v36 = vld [vmem:[#allocation44 + $0x40] ss:$8 sps:$4 sm:$0xff]   ;;  %v5484_v62 = vld [vmem:[#allocation44 + $0x54] ss:$8 sps:$4 sm:$0xff]  }
0x14ac   :  { %v3716_v49 = vpack.c.bf16 %v3712_v45, %v3710_v15  ;;  %v5482_v15 = vld [vmem:[#allocation44 + $0x50] ss:$8 sps:$4 sm:$0xff]   ;;  %v5487_v45 = vld [vmem:[#allocation44 + $0x64] ss:$8 sps:$4 sm:$0xff]  }
0x14ae   :  { %5173 = vmatmul.mubr.msk.bf16.gmra.mrb[56].mxu1 %vm8240_vm10, %v3716_v49  ;;  %v5485_v49 = vld [vmem:[#allocation44 + $0x60] ss:$8 sps:$4 sm:$0xff]  }
0x14af   :  { %4106 = vmatprep.mubr.bf16.mxu1 %v6558_v0 }
0x1579   :  { %v5170_v9 = vpop.f32.mrb[52].mxu1 }
0x157a   :  { %v3798_v0 = vmul.f32 %v5170_v9, %v7078_v23  ;;  %v3765_v40 = vpop.f32.mrb[53].mxu1  ;;  %v5493_v9 = vld [vmem:[#allocation47 + $0x48] sm:$0xff]  }
0x157b   :  { %v3796_v35 = vmul.f32 %v7075_v17, %v3765_v40  ;;  %v5171_v34 = vpop.f32.mrb[54].mxu1  ;;  %v5495_v40 = vld [vmem:[#allocation47 + $0x50] sm:$0xff]  }
0x157c   :  { %v3799_v5 = vmul.f32 %v5171_v34, %v7078_v23  ;;  %v3768_v43 = vpop.f32.mrb[55].mxu1  ;;  %v5497_v34 = vld [vmem:[#allocation47 + $0x58] sm:$0xff]  }
0x157d   :  { %v3800_v57 = vadd.f32 %v3798_v0, %v3796_v35  ;;  %v3797_v19 = vmul.f32 %v7075_v17, %v3768_v43  ;;  %v4744_v17 = vld [vmem:[#allocation40] ss:$0 sm:$0xff]  ;;  %v5494_v0 = vld [vmem:[#allocation47 + $0x8] sm:$0xff]   ;;  %v5496_v35 = vld [vmem:[#allocation47 + $0x10] sm:$0xff]  }
0x157e   :  { %v5499_v43 = vld [vmem:[#allocation47 + $0x60] sm:$0xff]  }
0x157f   :  { %v3801_v61 = vadd.f32 %v3799_v5, %v3797_v19  ;;  %v5498_v5 = vld [vmem:[#allocation47 + $0x18] sm:$0xff]   ;;  %v5501_v19 = vld [vmem:[#allocation47 + $0x68] sm:$0xff]  }
0x1581   :  { %v5174_v60 = vpop.f32.mrb[56].mxu1 }
0x1582   :  { %v3781_v31 = vpop.f32.mrb[57].mxu1  ;;  %v3806_v51 = vmul.f32 %v5174_v60, %v7084_v26 }
0x1583   :  { %v3802_v2 = vmul.f32 %v7081_v24, %v3781_v31  ;;  %v5175_v12 = vpop.f32.mrb[58].mxu1 }
0x1584   :  { %v3784_v44 = vpop.f32.mrb[59].mxu1  ;;  %v3807_v39 = vmul.f32 %v5175_v12, %v7084_v26  ;;  %v5469_v26 = vld [vmem:[#allocation44 + $0x4] ss:$8 sps:$4 sm:$0xff]  }
0x1585   :  { %v3804_v48 = vadd.f32 %v3802_v2, %v3800_v57  ;;  %v3803_v53 = vmul.f32 %v7081_v24, %v3784_v44  ;;  %v5467_v24 = vld [vmem:[#allocation44] ss:$8 sps:$4 sm:$0xff]   ;;  %4074 = vmatprep.subr.bf16.mxu1 %v5469_v26  ;;  %v5695_v26 = vld [vmem:[%s8144_s8 + $0x58] sm:$0xff]  }
0x1586   :  { %4075 = vmatpush1.bf16.msra.mxu1 %v5467_v24  ;;  %v5500_v57 = vld [vmem:[#allocation47 + $0x20] sm:$0xff]  }
0x1587   :  { %v3808_v52 = vadd.f32 %v3806_v51, %v3804_v48  ;;  %v3805_v23 = vadd.f32 %v3803_v53, %v3801_v61  ;;  %4076 = vmatprep.subr.bf16.mxu1 %v5472_v20  ;;  %v4753_v48 = vld [vmem:[#allocation41] ss:$0 sm:$0xff]  ;;  %v5694_v24 = vld [vmem:[%s8144_s8 + $0x10] sm:$0xff]   ;;  %v5696_v20 = vld [vmem:[%s8144_s8 + $0x18] sm:$0xff]  }
0x1589   :  { %v3809_v14 = vadd.f32 %v3807_v39, %v3805_v23 }
0x158a   :  { %4077 = vmatpush1.bf16.msra.mxu1 %v5470_v8  ;;  %v5697_v8 = vld [vmem:[%s8144_s8 + $0x60] sm:$0xff]  }
0x158b   :  { %v3810_v1 = vpack.c.bf16 %v3809_v14, %v3808_v52  ;;  %4078 = vmatprep.subr.bf16.mxu1 %v5475_v42  ;;  %v4754_v14 = vld [vmem:[#allocation43] ss:$0 sm:$0xff]  ;;  %v5503_v42 = vld [vmem:[#allocation47 + $0x70] sm:$0xff]  }
0x158d   :  { %5193 = vmatmul.mubr.bf16.vlgmr.msra.gmra.mrb[72].mxu0 %v3810_v1 }
0x158e   :  { %4079 = vmatpush1.bf16.msra.mxu1 %v5473_v21  ;;  %4953 = vmatpush3.bf16.msra.mxu0 %v5492_v30  ;;  %v5504_v21 = vld [vmem:[#allocation47 + $0x30] sm:$0xff]  }
0x158f   :  { %4080 = vmatprep.subr.bf16.mxu1 %v5478_v27  ;;  %4954 = vmatprep.subr.bf16.mxu0 %v5493_v9  ;;  %v5505_v27 = vld [vmem:[#allocation47 + $0x78] sm:$0xff]  }
0x1592   :  { %4081 = vmatpush1.bf16.msra.mxu1 %v5476_v32  ;;  %4955 = vmatpush3.bf16.msra.mxu0 %v5494_v0  ;;  %v5506_v32 = vld [vmem:[#allocation47 + $0x38] sm:$0xff]  }
0x1593   :  { %4082 = vmatprep.subr.bf16.mxu1 %v5481_v63  ;;  %4956 = vmatprep.subr.bf16.mxu0 %v5495_v40  ;;  %v3982_v63 = vld [vmem:[#allocation46] sm:$0x3] }
0x1596   :  { %4083 = vmatpush1.bf16.msra.mxu1 %v5479_v36  ;;  %4957 = vmatpush3.bf16.msra.mxu0 %v5496_v35  ;;  %v3987_v36 = vrot.slane %v3982_v63, %v7059_v28  ;;  %v4771_v28 = vld [vmem:[#allocation49] ss:$0 sm:$0xff] }
0x1597   :  { %4084 = vmatprep.subr.bf16.mxu1 %v5484_v62  ;;  %4958 = vmatprep.subr.bf16.mxu0 %v5497_v34  ;;  %v3991_v62 = vrot.slane %v3982_v63, %v7064_v4 }
0x159a   :  { %4085 = vmatpush1.bf16.msra.mxu1 %v5482_v15  ;;  %4959 = vmatpush3.bf16.msra.mxu0 %v5498_v5 }
0x159b   :  { %4086 = vmatprep.subr.bf16.mxu1 %v5487_v45  ;;  %4960 = vmatprep.subr.bf16.mxu0 %v5499_v43 }
0x159e   :  { %4087 = vmatpush1.bf16.msra.mxu1 %v5485_v49  ;;  %4961 = vmatpush3.bf16.msra.mxu0 %v5500_v57 }
0x159f   :  { %4088 = vmatprep.subr.bf16.mxu1 %v5490_v37  ;;  %4962 = vmatprep.subr.bf16.mxu0 %v5501_v19 }
0x15a2   :  { %4089 = vmatpush1.bf16.msra.mxu1 %v5488_v55 }
0x15a3   :  { %4974 = vmatprep.subr.bf16.mxu1 %v5689_v6 }
0x1660   :  { %v3916_v50 = vpop.f32.mrb[72].mxu0 }
0x1661   :  { %v3917_v54 = vadd.f32 %v4744_v17, %v3916_v50  ;;  %v5194_v11 = vpop.f32.mrb[73].mxu0 }
0x1662   :  { %v3919_v59 = vpop.f32.mrb[74].mxu0  ;;  %v5690_v11 = vld [vmem:[%s8144_s8] sm:$0xff]  }
0x1663   :  { %v8005_v18 = vadd.f32 %v3917_v54, %v7861_v33  ;;  %v3920_v10 = vadd.f32 %v4744_v17, %v3919_v59  ;;  %v5195_v56 = vpop.f32.mrb[75].mxu0  ;;  %v5691_v59 = vld [vmem:[%s8144_s8 + $0x48] sm:$0xff]  }
0x1664   :  { %v5693_v56 = vld [vmem:[%s8144_s8 + $0x50] sm:$0xff]  }
0x1665   :  { %v8008_v46 = vadd.f32 %v3920_v10, %v7867_v41  ;;  %3925 = vadd.xlane.f32.xlu1 %v8005_v18  ;;  %v5692_v10 = vld [vmem:[%s8144_s8 + $0x8] sm:$0xff]  }
0x1667   :  { %3927 = vadd.xlane.f32.xlu0 %v8008_v46 }
0x16f2   :  { %v3926_v47 = vpop.xlane.xlu1 %3925 }
0x16f3   :  { %v3929_v33 = vmul.f32 0.0078125, %v3926_v47  ;;  %v5698_v47 = vld [vmem:[%s8144_s8 + $0x20] sm:$0xff]  }
0x16f4   :  { %v3928_v7 = vpop.xlane.xlu0 %3927 }
0x16f5   :  { %v8013_v38 = vsub.f32 %v8005_v18, %v3929_v33  ;;  %v3930_v41 = vmul.f32 0.0078125, %v3928_v7  ;;  %v5699_v33 = vld [vmem:[%s8144_s8 + $0x68] sm:$0xff]  }
0x16f6   :  { %v5700_v7 = vld [vmem:[%s8144_s8 + $0x28] sm:$0xff]  }
0x16f7   :  { %v8016_v58 = vsub.f32 %v8008_v46, %v3930_v41  ;;  %v3933_v13 = vmul.f32 %v8013_v38, %v8013_v38  ;;  %v5702_v41 = vld [vmem:[%s8144_s8 + $0x30] sm:$0xff]  }
0x16f9   :  { %3935 = vadd.xlane.f32.xlu1 %v3933_v13  ;;  %v3934_v3 = vmul.f32 %v8016_v58, %v8016_v58  ;;  %v5704_v13 = vld [vmem:[%s8144_s8 + $0x38] sm:$0xff]  }
0x16fb   :  { %3937 = vadd.xlane.f32.xlu0 %v3934_v3  ;;  %v5502_v3 = vld [vmem:[#allocation47 + $0x28] sm:$0xff]  }
0x16fc   :  { %4963 = vmatpush3.bf16.msra.mxu0 %v5502_v3 }
0x16fd   :  { %4964 = vmatprep.subr.bf16.mxu0 %v5503_v42 }
0x1700   :  { %4965 = vmatpush3.bf16.msra.mxu0 %v5504_v21 }
0x1701   :  { %4966 = vmatprep.subr.bf16.mxu0 %v5505_v27  ;;  %v8045_v27 = vld [vmem:[%s8241_s15] sm:$0xff] }
0x1702   :  { %vm4437_vm8 = vcmp.ne.s32.totalorder %v8045_v27, 4294967196 }
0x1704   :  { %4967 = vmatpush3.bf16.msra.mxu0 %v5506_v32  ;;  %v8049_v32 = vld [vmem:[%s8241_s15 + $0x8] sm:$0xff] }
0x1705   :  { %vm4438_vm14 = vcmp.ne.s32.totalorder %v8049_v32, 4294967196 }
0x1786   :  { %v3936_v61 = vpop.xlane.xlu1 %3935 }
0x1787   :  { %v3939_v60 = vmul.f32 0.0078125, %v3936_v61 }
0x1788   :  { %v3938_v31 = vpop.xlane.xlu0 %3937 }
0x1789   :  { %v3941_v2 = vadd.f32 1e-05, %v3939_v60  ;;  %v3940_v12 = vmul.f32 0.0078125, %v3938_v31 }
0x178b   :  { %5667 = vrsqrt.f32 %v3941_v2  ;;  %v3942_v44 = vadd.f32 1e-05, %v3940_v12 }
0x178d   :  { %5669 = vrsqrt.f32 %v3942_v44 }
0x1795   :  { %v5668_v51 = vpop.eup %5667 }
0x1796   :  { %v3945_v53 = vmul.f32 %v5668_v51, %v8013_v38  ;;  %v5701_v38 = vld [vmem:[%s8144_s8 + $0x70] sm:$0xff]  }
0x1797   :  { %v5670_v52 = vpop.eup %5669 }
0x1798   :  { %v3954_v39 = vmul.f32 %v4753_v48, %v3945_v53  ;;  %v3946_v23 = vmul.f32 %v5670_v52, %v8016_v58  ;;  %v5703_v58 = vld [vmem:[%s8144_s8 + $0x78] sm:$0xff]  }
0x179a   :  { %v3955_v1 = vmul.f32 %v4753_v48, %v3946_v23  ;;  %v3963_v17 = vadd.f32 %v4754_v14, %v3954_v39 }
0x179c   :  { %v3964_v50 = vadd.f32 %v4754_v14, %v3955_v1 }
0x179e   :  { %v3965_v54 = vpack.c.bf16 %v3964_v50, %v3963_v17 }
0x17a0   :  { %4107 = vmatmul.mubr.bf16.vlgmr.msra.gmra.mrb[60].mxu1 %v3965_v54 }
0x17a1   :  { %4975 = vmatpush3.bf16.xpose.msra.mxu1 %v5690_v11 }
0x17a2   :  { %4976 = vmatprep.subr.bf16.mxu1 %v5691_v59 }
0x17a9   :  { %4977 = vmatpush3.bf16.xpose.msra.mxu1 %v5692_v10  ;;  %v4788_v10 = vld [vmem:[#allocation50] ss:$0 sm:$0xff] }
0x17aa   :  { %4978 = vmatprep.subr.bf16.mxu1 %v5693_v56 }
0x17b1   :  { %4979 = vmatpush3.bf16.xpose.msra.mxu1 %v5694_v24 }
0x17b2   :  { %4980 = vmatprep.subr.bf16.mxu1 %v5695_v26 }
0x17b9   :  { %4981 = vmatpush3.bf16.xpose.msra.mxu1 %v5696_v20 }
0x17ba   :  { %4982 = vmatprep.subr.bf16.mxu1 %v5697_v8  ;;  %v4789_v8 = vld [vmem:[#allocation52] ss:$0 sm:$0xff] }
0x17c1   :  { %4983 = vmatpush3.bf16.xpose.msra.mxu1 %v5698_v47 }
0x17c2   :  { %4984 = vmatprep.subr.bf16.mxu1 %v5699_v33 }
0x17c9   :  { %4985 = vmatpush3.bf16.xpose.msra.mxu1 %v5700_v7 }
0x17ca   :  { %4986 = vmatprep.subr.bf16.mxu1 %v5701_v38 }
0x17d1   :  { %4987 = vmatpush3.bf16.xpose.msra.mxu1 %v5702_v41 }
0x17d2   :  { %4988 = vmatprep.subr.bf16.mxu1 %v5703_v58 }
0x17d9   :  { %4989 = vmatpush3.bf16.xpose.msra.mxu1 %v5704_v13 }
0x1873   :  { %v4108_v15 = vpop.f32.mrb[60].mxu1 }
0x1874   :  { %v4109_v45 = vadd.f32 %v4108_v15, %v3987_v36  ;;  %v4110_v49 = vpop.f32.mrb[61].mxu1 }
0x1875   :  { %v4111_v55 = vadd.f32 %v4110_v49, %v3991_v62  ;;  %v4112_v37 = vpop.f32.mrb[62].mxu1 }
0x1876   :  { %v4113_v6 = vadd.f32 %v4112_v37, %v3987_v36  ;;  %v4114_v29 = vpop.f32.mrb[63].mxu1  ;;  %v4117_v9 = vmax.f32 %v4109_v45, 0.0 }
0x1877   :  { %v4115_v30 = vadd.f32 %v4114_v29, %v3991_v62  ;;  %v4118_v40 = vmax.f32 %v4111_v55, 0.0 }
0x1878   :  { %v4119_v0 = vmax.f32 %v4113_v6, 0.0 }
0x1879   :  { %v4120_v35 = vmax.f32 %v4115_v30, 0.0 }
0x187a   :  { %v4121_v34 = vpack.c.bf16 %v4119_v0, %v4117_v9 }
0x187b   :  { %v4122_v5 = vpack.c.bf16 %v4120_v35, %v4118_v40 }
0x187d   :  { %4290 = vmatprep.mubr.bf16.mxu0 %v4122_v5 }
0x187e   :  { %4291 = vmatmul.mubr.bf16.vlgmr.msra.gmra.mrb[76].mxu0 %v4121_v34 }
0x1951   :  { %v4968_v43 = vpop.f32.mrb[76].mxu0 }
0x1952   :  { %v4969_v57 = vpop.f32.mrb[77].mxu0 }
0x1953   :  { %v4970_v4 = vadd.f32 %v4969_v57, %v4968_v43  ;;  %v4971_v19 = vpop.f32.mrb[78].mxu0 }
0x1954   :  { %v4972_v61 = vpop.f32.mrb[79].mxu0 }
0x1955   :  { %v4293_v60 = vadd.f32 %v4970_v4, %v4771_v28  ;;  %v4973_v31 = vadd.f32 %v4972_v61, %v4971_v19 }
0x1957   :  { %v4296_v2 = vadd.f32 %v4973_v31, %v4771_v28  ;;  %v4299_v12 = vadd.f32 %v4293_v60, %v8005_v18 }
0x1959   :  { %4301 = vadd.xlane.f32.xlu1 %v4299_v12  ;;  %v4300_v44 = vadd.f32 %v4296_v2, %v8008_v46 }
0x195b   :  { %4303 = vadd.xlane.f32.xlu0 %v4300_v44 }
0x19e6   :  { %v4302_v51 = vpop.xlane.xlu1 %4301 }
0x19e7   :  { %v4305_v48 = vmul.f32 0.0078125, %v4302_v51 }
0x19e8   :  { %v4304_v53 = vpop.xlane.xlu0 %4303 }
0x19e9   :  { %v4307_v52 = vsub.f32 %v4299_v12, %v4305_v48  ;;  %v4306_v39 = vmul.f32 0.0078125, %v4304_v53 }
0x19eb   :  { %v4308_v23 = vsub.f32 %v4300_v44, %v4306_v39  ;;  %v4309_v14 = vmul.f32 %v4307_v52, %v4307_v52 }
0x19ed   :  { %4311 = vadd.xlane.f32.xlu1 %v4309_v14  ;;  %v4310_v1 = vmul.f32 %v4308_v23, %v4308_v23 }
0x19ef   :  { %4313 = vadd.xlane.f32.xlu0 %v4310_v1 }
0x1a7a   :  { %v4312_v17 = vpop.xlane.xlu1 %4311 }
0x1a7b   :  { %v4315_v50 = vmul.f32 0.0078125, %v4312_v17 }
0x1a7c   :  { %v4314_v54 = vpop.xlane.xlu0 %4313 }
0x1a7d   :  { %v4317_v11 = vadd.f32 1e-05, %v4315_v50  ;;  %v4316_v59 = vmul.f32 0.0078125, %v4314_v54 }
0x1a7f   :  { %5671 = vrsqrt.f32 %v4317_v11  ;;  %v4318_v18 = vadd.f32 1e-05, %v4316_v59 }
0x1a81   :  { %5673 = vrsqrt.f32 %v4318_v18 }
0x1a89   :  { %v5672_v46 = vpop.eup %5671 }
0x1a8a   :  { %v4321_v56 = vmul.f32 %v5672_v46, %v4307_v52 }
0x1a8b   :  { %v5674_v24 = vpop.eup %5673 }
0x1a8c   :  { %v4322_v26 = vmul.f32 %v5674_v24, %v4308_v23  ;;  %v4330_v20 = vmul.f32 %v4788_v10, %v4321_v56 }
0x1a8e   :  { %v4331_v47 = vmul.f32 %v4788_v10, %v4322_v26  ;;  %v4339_v33 = vadd.f32 %v4789_v8, %v4330_v20 }
0x1a90   :  { %v4340_v7 = vadd.f32 %v4789_v8, %v4331_v47 }
0x1a92   :  { %v4341_v38 = vpack.c.bf16 %v4340_v7, %v4339_v33 }
0x1a94   :  { %4990 = vmatprep.mubr.bf16.mxu1 %v4341_v38 }
0x1a95   :  { %4991 = vmatmul.mubr.bf16.vlgmr.msra.gmra.mrb[64].mxu1 %v4341_v38 }
0x1b68   :  { %v4376_v41 = vpop.f32.mrb[64].mxu1 }
0x1b69   :  { %v4378_v58 = vpop.f32.mrb[65].mxu1 }
0x1b6a   :  { %v4387_v13 = vmax.f32 %v4376_v41, %v4378_v58  ;;  %v4380_v3 = vpop.f32.mrb[66].mxu1 }
0x1b6b   :  { %v4382_v42 = vpop.f32.mrb[67].mxu1 }
0x1b6c   :  { %v4390_v21 = vmax.f32 %v4380_v3, %v4382_v42  ;;  %4388 = vmax.xlane.f32.xlu1 %v4387_v13 }
0x1b6e   :  { %4391 = vmax.xlane.f32.xlu0 %v4390_v21 }
0x1b7d   :  { %4418 = vperm.xlu1 %5290, %v8045_v27  }
0x1b84   :  { %4421 = vperm.xlu0 %5289, %v8049_v32  }
0x1bf9   :  { %v4389_v63 = vpop.xlane.xlu1 %4388 }
0x1bfa   :  { %v4393_v36 = vsub.f32 %v4376_v41, %v4389_v63  ;;  %v4394_v62 = vsub.f32 %v4378_v58, %v4389_v63 }
0x1bfb   :  { %v4392_v15 = vpop.xlane.xlu0 %4391 }
0x1bfc   :  { %v4397_v45 = vmul.f32 1.442695, %v4393_v36  ;;  %v4399_v49 = vmul.f32 1.442695, %v4394_v62  ;;  %v4395_v55 = vsub.f32 %v4380_v3, %v4392_v15  ;;  %v4396_v37 = vsub.f32 %v4382_v42, %v4392_v15 }
0x1bfd   :  { %v4419_v6 = vpop.permute.xlu1 %4418 }
0x1bfe   :  { %5675 = vpow2.f32 %v4397_v45  ;;  %v4401_v29 = vmul.f32 1.442695, %v4395_v55  ;;  %v4403_v30 = vmul.f32 1.442695, %v4396_v37  ;;  %vm4423_vm1 = vcmp.eq.s32.totalorder %v6964_v22, %v4419_v6 }
0x1bff   :  { %5677 = vpow2.f32 %v4399_v49  ;;  %vm4424_vm11 = vcmp.eq.s32.totalorder %v6967_v25, %v4419_v6  ;;  %v4427_v9 = vsel %vm4423_vm1, %v4376_v41, 0.0 }
0x1c00   :  { %5679 = vpow2.f32 %v4401_v29  ;;  %v4428_v0 = vsel %vm4424_vm11, %v4378_v58, 0.0 }
0x1c01   :  { %5681 = vpow2.f32 %v4403_v30  ;;  %v4431_v40 = vadd.f32 %v4428_v0, %v4427_v9 }
0x1c03   :  { %v4422_v35 = vpop.permute.xlu0 %4421 }
0x1c04   :  { %vm4425_vm2 = vcmp.eq.s32.totalorder %v6964_v22, %v4422_v35  ;;  %vm4426_vm7 = vcmp.eq.s32.totalorder %v6967_v25, %v4422_v35  ;;  %v4790_v22 = vsel %vm4437_vm8, 1.0, %v6560_v16  ;;  %v4791_v25 = vsel %vm4438_vm14, 1.0, %v6560_v16 }
0x1c05   :  { %v4429_v34 = vsel %vm4425_vm2, %v4380_v3, 0.0  ;;  %v4430_v5 = vsel %vm4426_vm7, %v4382_v42, 0.0  ;;  %v4460_v31 = vsel %vm4443_vm4, %v4790_v22, 0.0  ;;  %v4461_v2 = vsel %vm4443_vm4, %v4791_v25, 0.0 }
0x1c06   :  { %v4434_v43 = vadd.f32 %v4430_v5, %v4429_v34  ;;  %v4462_v12 = vadd.f32 %v4461_v2, %v4460_v31 }
0x1c08   :  { %v5676_v28 = vpop.eup %5675 }
0x1c09   :  { %v5678_v57 = vpop.eup %5677 }
0x1c0a   :  { %v5680_v4 = vpop.eup %5679  ;;  %v4405_v19 = vadd.f32 %v5678_v57, %v5676_v28 }
0x1c0b   :  { %v5682_v61 = vpop.eup %5681 }
0x1c0c   :  { %4406 = vadd.xlane.f32.xlu1 %v4405_v19  ;;  %v4408_v60 = vadd.f32 %v5682_v61, %v5680_v4 }
0x1c0e   :  { %4409 = vadd.xlane.f32.xlu0 %v4408_v60 }
0x1c10   :  { %4432 = vadd.xlane.f32.xlu1 %v4431_v40 }
0x1c12   :  { %4435 = vadd.xlane.f32.xlu0 %v4434_v43 }
0x1c16   :  { %4463 = vadd.xlane.f32.xlu0 %v4462_v12 }
0x1c99   :  { %v4407_v44 = vpop.xlane.xlu1 %4406 }
0x1c9a   :  { %5683 = vlog2.f32 %v4407_v44 }
0x1c9b   :  { %v4410_v51 = vpop.xlane.xlu0 %4409 }
0x1c9c   :  { %5685 = vlog2.f32 %v4410_v51 }
0x1c9d   :  { %v4433_v14 = vpop.xlane.xlu1 %4432 }
0x1c9f   :  { %v4436_v50 = vpop.xlane.xlu0 %4435 }
0x1ca3   :  { %v4464_v10 = vpop.xlane.xlu0 %4463 }
0x1ca4   :  { %v5684_v48 = vpop.eup %5683  ;;  %v4465_v56 = vrot.slane %v4464_v10, 4 }
0x1ca5   :  { %v4412_v53 = vmul.f32 0.6931472, %v5684_v48 }
0x1ca6   :  { %v5686_v52 = vpop.eup %5685  ;;  %v4466_v24 = vadd.f32 %v4465_v56, %v4464_v10 }
0x1ca7   :  { %v4414_v39 = vmul.f32 0.6931472, %v5686_v52  ;;  %v4415_v23 = vadd.f32 %v4412_v53, %v4389_v63 }
0x1ca8   :  { %v4467_v26 = vrot.slane %v4466_v24, 2 }
0x1ca9   :  { %v4439_v1 = vsub.f32 %v4415_v23, %v4433_v14  ;;  %v4416_v17 = vadd.f32 %v4414_v39, %v4392_v15 }
0x1caa   :  { %v4468_v33 = vadd.f32 %v4467_v26, %v4466_v24 }
0x1cab   :  { %v4441_v16 = vsel %vm4437_vm8, %v4439_v1, 0.0  ;;  %v4440_v54 = vsub.f32 %v4416_v17, %v4436_v50 }
0x1cac   :  { %v4444_v59 = vsel %vm4443_vm4, %v4441_v16, 0.0  ;;  %v4469_v41 = vrot.slane %v4468_v33, 1 }
0x1cad   :  { %v4442_v11 = vsel %vm4438_vm14, %v4440_v54, 0.0 }
0x1cae   :  { %v4445_v18 = vsel %vm4443_vm4, %v4442_v11, 0.0  ;;  %v4470_v3 = vadd.f32 %v4469_v41, %v4468_v33 }
0x1caf   :  { %v4446_v46 = vadd.f32 %v4445_v18, %v4444_v59 }
0x1cb1   :  { %4447 = vadd.xlane.f32.xlu1 %v4446_v46 }
0x1d3e   :  { %v4448_v20 = vpop.xlane.xlu1 %4447 }
0x1d3f   :  { %v4449_v8 = vrot.slane %v4448_v20, 4 }
0x1d41   :  { %v4450_v47 = vadd.f32 %v4449_v8, %v4448_v20 }
0x1d43   :  { %v4451_v7 = vrot.slane %v4450_v47, 2 }
0x1d45   :  { %v4452_v38 = vadd.f32 %v4451_v7, %v4450_v47 }
0x1d47   :  { %v4453_v58 = vrot.slane %v4452_v38, 1 }
0x1d49   :  { %v4454_v13 = vadd.f32 %v4453_v58, %v4452_v38 }
0x1d4b   :  { %5196 = vpush %v4454_v13 }
0x1d4c   :  { %5198 = vpush %v4470_v3 }
0x1d7c   :  { %s5197_s20 = spop %5196 }
0x1d7d   :  { %s5199_s16 = spop %5198 }
0x1d7e   :  { %v4472_v42 = vstv %s5199_s16 }
0x1d7f   :  { %5687 = vrcp.f32 %v4472_v42 }
0x1d89   :  { %v5688_v21 = vpop.eup %5687 }
0x1d8a   :  { %5200 = vpush %v5688_v21 }
0x1dbb   :  { %s5201_s9 = spop %5200 }
0x1dbc   :  { %s4475_s6 = smul.f32 %s5201_s9, %s5197_s20 }
0x1dbe   :  { %4477 = sst [smem:[#allocation53]] %s4475_s6 }
0x1dbf   :  { %6440 = shalt.err (!%p6437_p0)
}
0x1dc0   :  { %s6563_s30 = smov [#allocation53]  }
0x1dc1   :  { %4485 = dma.smem_to_hbm %s6563_s30, 16, %s6782_s24, [#allocation4]  }
0x1dc2   :  { %6475 = dma.done.wait [#allocation4], 16  }
0x1dc3   :  { %6476 = vsyncadd [#allocation4], 4294967280 }
0x1dc4   :  { %4489 = sfence }
0x1dc5   :  { %4490 = vsyncpa [#allocation3], 1 }
0x1dc6   :  { %4491 = vsyncpa [#allocation6], 1 }
0x1dc7   :  { %4492 = vsyncpa [#allocation9], 1 }
0x1dc8   :  { %4493 = vsyncpa [#allocation12], 1 }
0x1dc9   :  { %4494 = vsyncpa [#allocation15], 1 }
0x1dca   :  { %4495 = vsyncpa [#allocation18], 1 }
0x1dcb   :  { %4496 = vsyncpa [#allocation21], 1 }
0x1dcc   :  { %4497 = vsyncpa [#allocation24], 1 }
0x1dcd   :  { %4498 = vsyncpa [#allocation27], 1 }
0x1dce   :  { %4499 = vsyncpa [#allocation30], 1 }
0x1dcf   :  { %4500 = vsyncpa [#allocation33], 1 }
0x1dd0   :  { %4501 = vsyncpa [#allocation36], 1 }
0x1dd1   :  { %4502 = vsyncpa [#allocation39], 1 }
0x1dd2   :  { %4503 = vsyncpa [#allocation42], 1 }
0x1dd3   :  { %4504 = vsyncpa [#allocation45], 1 }
0x1dd4   :  { %4505 = vsyncpa [#allocation48], 1 }
0x1dd5   :  { %4506 = vsyncpa [#allocation51], 1 }
0x1dd6   :  { %4507 = vsyncpa [#allocation4], 1 }

</bundles_post_ra>
